<compile_context>
chip_gen: v7x
topology: tpu7x:2x2x1
jax: 0.10.0
libtpu: 0.0.40
codegen_flags: <defaults>
</compile_context>

<pallas_src>
import functools

import numpy as np
import jax
import jax.numpy as jnp
from jax.experimental import pallas as pl
from jax.experimental.pallas import tpu as pltpu

LANE = 128


def _round_up(n, m):
    return (n + m - 1) // m * m


def _gelu(x):
    # tanh-approx GELU (tanh runs on the EUP slot, free next to MXU/VALU work)
    c = 0.7978845608028654  # sqrt(2/pi)
    return 0.5 * x * (1.0 + jnp.tanh(c * (x + 0.044715 * x * x * x)))


def _masked_layernorm(x, gamma, beta, c_true, eps=1e-5):
    # x: (L, Cp) with lanes >= c_true exactly zero; statistics over the true C only.
    s1 = jnp.sum(x, axis=-1, keepdims=True)
    s2 = jnp.sum(x * x, axis=-1, keepdims=True)
    mu = s1 / c_true
    var = s2 / c_true - mu * mu
    y = (x - mu) * jax.lax.rsqrt(var + eps)
    return y * gamma + beta          # padded lanes: gamma = beta = 0 -> stay zero


# --------------------------------------------------------------------------- kernel

def _block_kernel(*refs, C, focal_level, kernel_sizes):
    (x_ref, n1g_ref, n1b_ref, wq_ref, bq_ref, wc_ref, bc_ref,
     wg_ref, bg_ref) = refs[:9]
    conv_refs = refs[9:9 + 2 * focal_level]
    (hw_ref, hb_ref, pw_ref, pb_ref, n2g_ref, n2b_ref,
     f1w_ref, f1b_ref, f2w_ref, f2b_ref, o_ref) = refs[9 + 2 * focal_level:]

    x = x_ref[0]                                          # (L, Cp) f32, padded lanes zero

    # ---- norm1 ----------------------------------------------------------------
    xn = _masked_layernorm(x, n1g_ref[...], n1b_ref[...], C)

    # ---- FocalModulation: f = [q | ctx | gates] as three lane-dense matmuls ----
    q     = jnp.dot(xn, wq_ref[...], preferred_element_type=jnp.float32) + bq_ref[...]
    ctx   = jnp.dot(xn, wc_ref[...], preferred_element_type=jnp.float32) + bc_ref[...]
    gates = jnp.dot(xn, wg_ref[...], preferred_element_type=jnp.float32) + bg_ref[...]

    ctx_all = jnp.zeros_like(ctx)
    for l in range(focal_level):
        s_ref = conv_refs[2 * l]                          # (k*k, L, L) 0/1 shift matrices
        w_ref = conv_refs[2 * l + 1]                      # (k*k, Cp)  depthwise taps
        k = kernel_sizes[l]
        acc = jnp.zeros_like(ctx)
        for tap in range(k * k):
            # spatial shift + zero-pad edge mask as one MXU matmul (no misaligned slices)
            shifted = jnp.dot(s_ref[tap], ctx, preferred_element_type=jnp.float32)
            acc = acc + shifted * w_ref[pl.ds(tap, 1), :]
        ctx = _gelu(acc)                                  # fused GELU epilogue
        ctx_all = ctx_all + ctx * gates[:, l:l + 1]

    ctx_global = _gelu(jnp.mean(ctx, axis=0, keepdims=True))           # (1, Cp)
    ctx_all = ctx_all + ctx_global * gates[:, focal_level:focal_level + 1]

    # h (1x1 conv) fused with q*modulator and proj: modulator never leaves VMEM
    modulator = jnp.dot(ctx_all, hw_ref[...], preferred_element_type=jnp.float32) + hb_ref[...]
    x_out = jnp.dot(q * modulator, pw_ref[...], preferred_element_type=jnp.float32) + pb_ref[...]

    x = x + x_out                                         # residual 1 (gamma_1 = 1)

    # ---- MLP --------------------------------------------------------------------
    xn2 = _masked_layernorm(x, n2g_ref[...], n2b_ref[...], C)
    h = _gelu(jnp.dot(xn2, f1w_ref[...], preferred_element_type=jnp.float32) + f1b_ref[...])
    y = jnp.dot(h, f2w_ref[...], preferred_element_type=jnp.float32) + f2b_ref[...]
    o_ref[0] = (x + y).astype(o_ref.dtype)                # residual 2 (gamma_2 = 1)


# --------------------------------------------------------------------------- wrapper

def _pad2(a, rows, cols):
    return jnp.zeros((rows, cols), a.dtype).at[:a.shape[0], :a.shape[1]].set(a)


def _pad_row(v, cols):
    return jnp.zeros((1, cols), v.dtype).at[0, :v.shape[0]].set(v)


def _shift_matrices(H, W, k):
    """S[tap, t, s] = 1 iff flat source token s feeds output token t for conv tap (zero-pad)."""
    p = k // 2
    S = np.zeros((k * k, H * W, H * W), np.float32)
    for dy in range(k):
        for dx in range(k):
            for hh in range(H):
                for ww in range(W):
                    r, c = hh + dy - p, ww + dx - p
                    if 0 <= r < H and 0 <= c < W:
                        S[dy * k + dx, hh * W + ww, r * W + c] = 1.0
    return jnp.asarray(S)


def focalnet_block(x, params, H, W, *, focal_level, focal_window,
                   focal_factor=2, mlp_ratio=4.0):
    """x: (B, L=H*W, C) f32 -> (B, L, C). Matches FocalNetBlock.forward (eval mode)."""
    B, L, C = x.shape
    assert L == H * W
    hidden = int(C * mlp_ratio)
    Cp = _round_up(C, LANE)
    Hp = _round_up(hidden, LANE)
    Gp = LANE
    ks = [focal_factor * l + focal_window for l in range(focal_level)]

    # split the single f linear into q / ctx / gate column blocks (exactly equivalent)
    f_w, f_b = params["f_w"], params["f_b"]
    w_q, w_c, w_g = f_w[:, :C], f_w[:, C:2 * C], f_w[:, 2 * C:]
    b_q, b_c, b_g = f_b[:C], f_b[C:2 * C], f_b[2 * C:]

    x_p = jnp.zeros((B, L, Cp), x.dtype).at[:, :, :C].set(x)

    inputs = [
        x_p,
        _pad_row(params["norm1_g"], Cp), _pad_row(params["norm1_b"], Cp),
        _pad2(w_q, Cp, Cp), _pad_row(b_q, Cp),
        _pad2(w_c, Cp, Cp), _pad_row(b_c, Cp),
        _pad2(w_g, Cp, Gp), _pad_row(b_g, Gp),
    ]
    for l, k in enumerate(ks):
        inputs.append(_shift_matrices(H, W, k))
        inputs.append(_pad2(params["focal_w"][l].reshape(k * k, C), k * k, Cp))
    inputs += [
        _pad2(params["h_w"], Cp, Cp), _pad_row(params["h_b"], Cp),
        _pad2(params["proj_w"], Cp, Cp), _pad_row(params["proj_b"], Cp),
        _pad_row(params["norm2_g"], Cp), _pad_row(params["norm2_b"], Cp),
        _pad2(params["fc1_w"], Cp, Hp), _pad_row(params["fc1_b"], Hp),
        _pad2(params["fc2_w"], Hp, Cp), _pad_row(params["fc2_b"], Cp),
    ]

    def _resident(a):                       # full-array block, same index every grid step
        nd = a.ndim
        return pl.BlockSpec(a.shape, lambda b, _nd=nd: (0,) * _nd)

    in_specs = [pl.BlockSpec((1, L, Cp), lambda b: (b, 0, 0))]
    in_specs += [_resident(a) for a in inputs[1:]]

    out = pl.pallas_call(
        functools.partial(_block_kernel, C=C, focal_level=focal_level,
                          kernel_sizes=tuple(ks)),
        out_shape=jax.ShapeDtypeStruct((B, L, Cp), x.dtype),
        grid=(B,),
        in_specs=in_specs,
        out_specs=pl.BlockSpec((1, L, Cp), lambda b: (b, 0, 0)),
        compiler_params=pltpu.CompilerParams(dimension_semantics=("parallel",)),
    )(*inputs)
    return out[:, :, :C]


# ------------------------------------------------------------------ pure-JAX reference

def _ref_mm(a, b):
    return jnp.dot(a, b, precision=jax.lax.Precision.HIGHEST)


def focalnet_block_ref(x, params, H, W, *, focal_level, focal_window,
                       focal_factor=2, mlp_ratio=4.0):
    B, L, C = x.shape

    def ln(v, g, b):
        mu = jnp.mean(v, axis=-1, keepdims=True)
        var = jnp.mean(jnp.square(v - mu), axis=-1, keepdims=True)
        return (v - mu) * jax.lax.rsqrt(var + 1e-5) * g + b

    shortcut = x
    xn = ln(x, params["norm1_g"], params["norm1_b"]).reshape(B, H, W, C)
    y = _ref_mm(xn, params["f_w"]) + params["f_b"]
    q, ctx, gates = y[..., :C], y[..., C:2 * C], y[..., 2 * C:]
    ctx_all = jnp.zeros_like(ctx)
    for l in range(focal_level):
        k = focal_factor * l + focal_window
        w = params["focal_w"][l].reshape(k, k, 1, C)
        ctx = jax.lax.conv_general_dilated(
            ctx, w, window_strides=(1, 1), padding=[(k // 2, k // 2)] * 2,
            dimension_numbers=("NHWC", "HWIO", "NHWC"), feature_group_count=C,
            precision=jax.lax.Precision.HIGHEST)
        ctx = _gelu(ctx)
        ctx_all = ctx_all + ctx * gates[..., l:l + 1]
    ctx_global = _gelu(jnp.mean(ctx, axis=(1, 2), keepdims=True))
    ctx_all = ctx_all + ctx_global * gates[..., focal_level:focal_level + 1]
    modulator = _ref_mm(ctx_all, params["h_w"]) + params["h_b"]
    x_out = _ref_mm((q * modulator).reshape(B, L, C), params["proj_w"]) + params["proj_b"]
    x1 = shortcut + x_out
    xn2 = ln(x1, params["norm2_g"], params["norm2_b"])
    h = _gelu(_ref_mm(xn2, params["fc1_w"]) + params["fc1_b"])
    return x1 + _ref_mm(h, params["fc2_w"]) + params["fc2_b"]


# ----------------------------------------------------------------------------- main

def init_params(key, dim, focal_level, focal_window, focal_factor, mlp_ratio):
    hidden = int(dim * mlp_ratio)
    n_f = 2 * dim + focal_level + 1
    ks = [focal_factor * l + focal_window for l in range(focal_level)]
    keys = iter(jax.random.split(key, 32))
    nrm = lambda shape, s: jax.random.normal(next(keys), shape, jnp.float32) * s
    return dict(
        norm1_g=1.0 + nrm((dim,), 0.05), norm1_b=nrm((dim,), 0.05),
        f_w=nrm((dim, n_f), 0.05), f_b=nrm((n_f,), 0.05),
        focal_w=[nrm((k, k, dim), 0.1) for k in ks],
        h_w=nrm((dim, dim), 0.05), h_b=nrm((dim,), 0.05),
        proj_w=nrm((dim, dim), 0.05), proj_b=nrm((dim,), 0.05),
        norm2_g=1.0 + nrm((dim,), 0.05), norm2_b=nrm((dim,), 0.05),
        fc1_w=nrm((dim, hidden), 0.05), fc1_b=nrm((hidden,), 0.05),
        fc2_w=nrm((hidden, dim), 0.05), fc2_b=nrm((dim,), 0.05),
    )


if __name__ == "__main__":
    B, H, W, C = 2, 8, 8, 16
    FOCAL_LEVEL, FOCAL_WINDOW, FOCAL_FACTOR, MLP_RATIO = 2, 3, 2, 4.0

    key = jax.random.PRNGKey(0)
    pkey, xkey = jax.random.split(key)
    params = init_params(pkey, C, FOCAL_LEVEL, FOCAL_WINDOW, FOCAL_FACTOR, MLP_RATIO)
    x = jax.random.normal(xkey, (B, H * W, C), jnp.float32)

    out = focalnet_block(x, params, H, W, focal_level=FOCAL_LEVEL,
                         focal_window=FOCAL_WINDOW, focal_factor=FOCAL_FACTOR,
                         mlp_ratio=MLP_RATIO)
    out = jax.block_until_ready(out)
    assert out.shape == (B, H * W, C), out.shape
    assert bool(jnp.all(jnp.isfinite(out)))

    ref = focalnet_block_ref(x, params, H, W, focal_level=FOCAL_LEVEL,
                             focal_window=FOCAL_WINDOW, focal_factor=FOCAL_FACTOR,
                             mlp_ratio=MLP_RATIO)
    max_err = float(jnp.max(jnp.abs(out - ref)))
    assert max_err < 2e-2, f"kernel/reference mismatch: max |err| = {max_err}"
    print("KERNEL_OK")
</pallas_src>

<mosaic_0001>
module attributes {stable_mosaic.version = 11 : i64} {
  func.func @_block_kernel(%arg0: i32, %arg1: memref<1x64x128xf32, #tpu.memory_space<vmem>>, %arg2: memref<1x128xf32, #tpu.memory_space<vmem>>, %arg3: memref<1x128xf32, #tpu.memory_space<vmem>>, %arg4: memref<128x128xf32, #tpu.memory_space<vmem>>, %arg5: memref<1x128xf32, #tpu.memory_space<vmem>>, %arg6: memref<128x128xf32, #tpu.memory_space<vmem>>, %arg7: memref<1x128xf32, #tpu.memory_space<vmem>>, %arg8: memref<128x128xf32, #tpu.memory_space<vmem>>, %arg9: memref<1x128xf32, #tpu.memory_space<vmem>>, %arg10: memref<9x64x64xf32, #tpu.memory_space<vmem>>, %arg11: memref<9x128xf32, #tpu.memory_space<vmem>>, %arg12: memref<25x64x64xf32, #tpu.memory_space<vmem>>, %arg13: memref<25x128xf32, #tpu.memory_space<vmem>>, %arg14: memref<128x128xf32, #tpu.memory_space<vmem>>, %arg15: memref<1x128xf32, #tpu.memory_space<vmem>>, %arg16: memref<128x128xf32, #tpu.memory_space<vmem>>, %arg17: memref<1x128xf32, #tpu.memory_space<vmem>>, %arg18: memref<1x128xf32, #tpu.memory_space<vmem>>, %arg19: memref<1x128xf32, #tpu.memory_space<vmem>>, %arg20: memref<128x128xf32, #tpu.memory_space<vmem>>, %arg21: memref<1x128xf32, #tpu.memory_space<vmem>>, %arg22: memref<128x128xf32, #tpu.memory_space<vmem>>, %arg23: memref<1x128xf32, #tpu.memory_space<vmem>>, %arg24: memref<1x64x128xf32, #tpu.memory_space<vmem>>) attributes {dimension_semantics = [#tpu.dimension_semantics<parallel>], iteration_bounds = array<i64: 2>, scalar_prefetch = 0 : i64, scratch_operands = 0 : i64, tpu.core_type = #tpu.core_type<tc>, window_params = [{transform_indices = @transform_0, window_bounds = array<i64: 1, 64, 128>}, {pipeline_mode = #tpu.pipeline_mode<synchronous>, transform_indices = @transform_1, window_bounds = array<i64: 1, 128>}, {pipeline_mode = #tpu.pipeline_mode<synchronous>, transform_indices = @transform_2, window_bounds = array<i64: 1, 128>}, {pipeline_mode = #tpu.pipeline_mode<synchronous>, transform_indices = @transform_3, window_bounds = array<i64: 128, 128>}, {pipeline_mode = #tpu.pipeline_mode<synchronous>, transform_indices = @transform_4, window_bounds = array<i64: 1, 128>}, {pipeline_mode = #tpu.pipeline_mode<synchronous>, transform_indices = @transform_5, window_bounds = array<i64: 128, 128>}, {pipeline_mode = #tpu.pipeline_mode<synchronous>, transform_indices = @transform_6, window_bounds = array<i64: 1, 128>}, {pipeline_mode = #tpu.pipeline_mode<synchronous>, transform_indices = @transform_7, window_bounds = array<i64: 128, 128>}, {pipeline_mode = #tpu.pipeline_mode<synchronous>, transform_indices = @transform_8, window_bounds = array<i64: 1, 128>}, {pipeline_mode = #tpu.pipeline_mode<synchronous>, transform_indices = @transform_9, window_bounds = array<i64: 9, 64, 64>}, {pipeline_mode = #tpu.pipeline_mode<synchronous>, transform_indices = @transform_10, window_bounds = array<i64: 9, 128>}, {pipeline_mode = #tpu.pipeline_mode<synchronous>, transform_indices = @transform_11, window_bounds = array<i64: 25, 64, 64>}, {pipeline_mode = #tpu.pipeline_mode<synchronous>, transform_indices = @transform_12, window_bounds = array<i64: 25, 128>}, {pipeline_mode = #tpu.pipeline_mode<synchronous>, transform_indices = @transform_13, window_bounds = array<i64: 128, 128>}, {pipeline_mode = #tpu.pipeline_mode<synchronous>, transform_indices = @transform_14, window_bounds = array<i64: 1, 128>}, {pipeline_mode = #tpu.pipeline_mode<synchronous>, transform_indices = @transform_15, window_bounds = array<i64: 128, 128>}, {pipeline_mode = #tpu.pipeline_mode<synchronous>, transform_indices = @transform_16, window_bounds = array<i64: 1, 128>}, {pipeline_mode = #tpu.pipeline_mode<synchronous>, transform_indices = @transform_17, window_bounds = array<i64: 1, 128>}, {pipeline_mode = #tpu.pipeline_mode<synchronous>, transform_indices = @transform_18, window_bounds = array<i64: 1, 128>}, {pipeline_mode = #tpu.pipeline_mode<synchronous>, transform_indices = @transform_19, window_bounds = array<i64: 128, 128>}, {pipeline_mode = #tpu.pipeline_mode<synchronous>, transform_indices = @transform_20, window_bounds = array<i64: 1, 128>}, {pipeline_mode = #tpu.pipeline_mode<synchronous>, transform_indices = @transform_21, window_bounds = array<i64: 128, 128>}, {pipeline_mode = #tpu.pipeline_mode<synchronous>, transform_indices = @transform_22, window_bounds = array<i64: 1, 128>}, {transform_indices = @transform_23, window_bounds = array<i64: 1, 64, 128>}]} {
    %c0 = arith.constant 0 : index
    %c0_0 = arith.constant 0 : index
    %c0_1 = arith.constant 0 : index
    %0 = vector.load %arg1[%c0, %c0_0, %c0_1] : memref<1x64x128xf32, #tpu.memory_space<vmem>>, vector<1x64x128xf32>
    %1 = vector.shape_cast %0 : vector<1x64x128xf32> to vector<64x128xf32>
    %c0_2 = arith.constant 0 : index
    %c0_3 = arith.constant 0 : index
    %2 = vector.load %arg2[%c0_2, %c0_3] : memref<1x128xf32, #tpu.memory_space<vmem>>, vector<1x128xf32>
    %c0_4 = arith.constant 0 : index
    %c0_5 = arith.constant 0 : index
    %3 = vector.load %arg3[%c0_4, %c0_5] : memref<1x128xf32, #tpu.memory_space<vmem>>, vector<1x128xf32>
    %cst = arith.constant dense<0.000000e+00> : vector<64xf32>
    %4 = vector.multi_reduction <add>, %1, %cst [1] : vector<64x128xf32> to vector<64xf32>
    %5 = vector.shape_cast %4 : vector<64xf32> to vector<64x1xf32>
    %6 = arith.mulf %1, %1 : vector<64x128xf32>
    %cst_6 = arith.constant dense<0.000000e+00> : vector<64xf32>
    %7 = vector.multi_reduction <add>, %6, %cst_6 [1] : vector<64x128xf32> to vector<64xf32>
    %8 = vector.shape_cast %7 : vector<64xf32> to vector<64x1xf32>
    %cst_7 = arith.constant 1.600000e+01 : f32
    %9 = vector.broadcast %cst_7 : f32 to vector<64x1xf32>
    %10 = arith.divf %5, %9 : vector<64x1xf32>
    %cst_8 = arith.constant 1.600000e+01 : f32
    %11 = vector.broadcast %cst_8 : f32 to vector<64x1xf32>
    %12 = arith.divf %8, %11 : vector<64x1xf32>
    %13 = arith.mulf %10, %10 : vector<64x1xf32>
    %14 = arith.subf %12, %13 : vector<64x1xf32>
    %15 = vector.broadcast %10 : vector<64x1xf32> to vector<64x128xf32>
    %16 = arith.subf %1, %15 : vector<64x128xf32>
    %cst_9 = arith.constant 9.99999974E-6 : f32
    %17 = vector.broadcast %cst_9 : f32 to vector<64x1xf32>
    %18 = arith.addf %14, %17 : vector<64x1xf32>
    %19 = math.rsqrt %18 : vector<64x1xf32>
    %20 = vector.broadcast %19 : vector<64x1xf32> to vector<64x128xf32>
    %21 = arith.mulf %16, %20 : vector<64x128xf32>
    %22 = vector.broadcast %2 : vector<1x128xf32> to vector<64x128xf32>
    %23 = arith.mulf %21, %22 : vector<64x128xf32>
    %24 = vector.broadcast %3 : vector<1x128xf32> to vector<64x128xf32>
    %25 = arith.addf %23, %24 : vector<64x128xf32>
    %c0_10 = arith.constant 0 : index
    %c0_11 = arith.constant 0 : index
    %26 = vector.load %arg4[%c0_10, %c0_11] : memref<128x128xf32, #tpu.memory_space<vmem>>, vector<128x128xf32>
    %cst_12 = arith.constant dense<0.000000e+00> : vector<64x128xf32>
    %27 = tpu.matmul %25, %26, %cst_12 {dimension_numbers = #tpu.dot_dimension_numbers<[1], [0], [0], [1], [0, 0, 1, 1], [], []>} : vector<64x128xf32>, vector<128x128xf32>, vector<64x128xf32> -> vector<64x128xf32>
    %c0_13 = arith.constant 0 : index
    %c0_14 = arith.constant 0 : index
    %28 = vector.load %arg5[%c0_13, %c0_14] : memref<1x128xf32, #tpu.memory_space<vmem>>, vector<1x128xf32>
    %29 = vector.broadcast %28 : vector<1x128xf32> to vector<64x128xf32>
    %30 = arith.addf %27, %29 : vector<64x128xf32>
    %c0_15 = arith.constant 0 : index
    %c0_16 = arith.constant 0 : index
    %31 = vector.load %arg6[%c0_15, %c0_16] : memref<128x128xf32, #tpu.memory_space<vmem>>, vector<128x128xf32>
    %cst_17 = arith.constant dense<0.000000e+00> : vector<64x128xf32>
    %32 = tpu.matmul %25, %31, %cst_17 {dimension_numbers = #tpu.dot_dimension_numbers<[1], [0], [0], [1], [0, 0, 1, 1], [], []>} : vector<64x128xf32>, vector<128x128xf32>, vector<64x128xf32> -> vector<64x128xf32>
    %c0_18 = arith.constant 0 : index
    %c0_19 = arith.constant 0 : index
    %33 = vector.load %arg7[%c0_18, %c0_19] : memref<1x128xf32, #tpu.memory_space<vmem>>, vector<1x128xf32>
    %34 = vector.broadcast %33 : vector<1x128xf32> to vector<64x128xf32>
    %35 = arith.addf %32, %34 : vector<64x128xf32>
    %c0_20 = arith.constant 0 : index
    %c0_21 = arith.constant 0 : index
    %36 = vector.load %arg8[%c0_20, %c0_21] : memref<128x128xf32, #tpu.memory_space<vmem>>, vector<128x128xf32>
    %cst_22 = arith.constant dense<0.000000e+00> : vector<64x128xf32>
    %37 = tpu.matmul %25, %36, %cst_22 {dimension_numbers = #tpu.dot_dimension_numbers<[1], [0], [0], [1], [0, 0, 1, 1], [], []>} : vector<64x128xf32>, vector<128x128xf32>, vector<64x128xf32> -> vector<64x128xf32>
    %c0_23 = arith.constant 0 : index
    %c0_24 = arith.constant 0 : index
    %38 = vector.load %arg9[%c0_23, %c0_24] : memref<1x128xf32, #tpu.memory_space<vmem>>, vector<1x128xf32>
    %39 = vector.broadcast %38 : vector<1x128xf32> to vector<64x128xf32>
    %40 = arith.addf %37, %39 : vector<64x128xf32>
    %cst_25 = arith.constant 0.000000e+00 : f32
    %41 = vector.broadcast %cst_25 : f32 to vector<64x128xf32>
    %cst_26 = arith.constant 0.000000e+00 : f32
    %42 = vector.broadcast %cst_26 : f32 to vector<64x128xf32>
    %c0_27 = arith.constant 0 : index
    %c0_28 = arith.constant 0 : index
    %c0_29 = arith.constant 0 : index
    %43 = vector.load %arg10[%c0_27, %c0_28, %c0_29] : memref<9x64x64xf32, #tpu.memory_space<vmem>>, vector<1x64x64xf32>
    %44 = vector.shape_cast %43 : vector<1x64x64xf32> to vector<64x64xf32>
    %cst_30 = arith.constant dense<0.000000e+00> : vector<64x128xf32>
    %45 = tpu.matmul %44, %35, %cst_30 {dimension_numbers = #tpu.dot_dimension_numbers<[1], [0], [0], [1], [0, 0, 1, 1], [], []>} : vector<64x64xf32>, vector<64x128xf32>, vector<64x128xf32> -> vector<64x128xf32>
    %c0_31 = arith.constant 0 : index
    %c0_32 = arith.constant 0 : index
    %46 = vector.load %arg11[%c0_31, %c0_32] : memref<9x128xf32, #tpu.memory_space<vmem>>, vector<1x128xf32>
    %47 = vector.broadcast %46 : vector<1x128xf32> to vector<64x128xf32>
    %48 = arith.mulf %45, %47 : vector<64x128xf32>
    %49 = arith.addf %42, %48 : vector<64x128xf32>
    %c1 = arith.constant 1 : index
    %c0_33 = arith.constant 0 : index
    %c0_34 = arith.constant 0 : index
    %50 = vector.load %arg10[%c1, %c0_33, %c0_34] : memref<9x64x64xf32, #tpu.memory_space<vmem>>, vector<1x64x64xf32>
    %51 = vector.shape_cast %50 : vector<1x64x64xf32> to vector<64x64xf32>
    %cst_35 = arith.constant dense<0.000000e+00> : vector<64x128xf32>
    %52 = tpu.matmul %51, %35, %cst_35 {dimension_numbers = #tpu.dot_dimension_numbers<[1], [0], [0], [1], [0, 0, 1, 1], [], []>} : vector<64x64xf32>, vector<64x128xf32>, vector<64x128xf32> -> vector<64x128xf32>
    %c1_36 = arith.constant 1 : index
    %c0_37 = arith.constant 0 : index
    %53 = vector.load %arg11[%c1_36, %c0_37] : memref<9x128xf32, #tpu.memory_space<vmem>>, vector<1x128xf32>
    %54 = vector.broadcast %53 : vector<1x128xf32> to vector<64x128xf32>
    %55 = arith.mulf %52, %54 : vector<64x128xf32>
    %56 = arith.addf %49, %55 : vector<64x128xf32>
    %c2 = arith.constant 2 : index
    %c0_38 = arith.constant 0 : index
    %c0_39 = arith.constant 0 : index
    %57 = vector.load %arg10[%c2, %c0_38, %c0_39] : memref<9x64x64xf32, #tpu.memory_space<vmem>>, vector<1x64x64xf32>
    %58 = vector.shape_cast %57 : vector<1x64x64xf32> to vector<64x64xf32>
    %cst_40 = arith.constant dense<0.000000e+00> : vector<64x128xf32>
    %59 = tpu.matmul %58, %35, %cst_40 {dimension_numbers = #tpu.dot_dimension_numbers<[1], [0], [0], [1], [0, 0, 1, 1], [], []>} : vector<64x64xf32>, vector<64x128xf32>, vector<64x128xf32> -> vector<64x128xf32>
    %c2_41 = arith.constant 2 : index
    %c0_42 = arith.constant 0 : index
    %60 = vector.load %arg11[%c2_41, %c0_42] : memref<9x128xf32, #tpu.memory_space<vmem>>, vector<1x128xf32>
    %61 = vector.broadcast %60 : vector<1x128xf32> to vector<64x128xf32>
    %62 = arith.mulf %59, %61 : vector<64x128xf32>
    %63 = arith.addf %56, %62 : vector<64x128xf32>
    %c3 = arith.constant 3 : index
    %c0_43 = arith.constant 0 : index
    %c0_44 = arith.constant 0 : index
    %64 = vector.load %arg10[%c3, %c0_43, %c0_44] : memref<9x64x64xf32, #tpu.memory_space<vmem>>, vector<1x64x64xf32>
    %65 = vector.shape_cast %64 : vector<1x64x64xf32> to vector<64x64xf32>
    %cst_45 = arith.constant dense<0.000000e+00> : vector<64x128xf32>
    %66 = tpu.matmul %65, %35, %cst_45 {dimension_numbers = #tpu.dot_dimension_numbers<[1], [0], [0], [1], [0, 0, 1, 1], [], []>} : vector<64x64xf32>, vector<64x128xf32>, vector<64x128xf32> -> vector<64x128xf32>
    %c3_46 = arith.constant 3 : index
    %c0_47 = arith.constant 0 : index
    %67 = vector.load %arg11[%c3_46, %c0_47] : memref<9x128xf32, #tpu.memory_space<vmem>>, vector<1x128xf32>
    %68 = vector.broadcast %67 : vector<1x128xf32> to vector<64x128xf32>
    %69 = arith.mulf %66, %68 : vector<64x128xf32>
    %70 = arith.addf %63, %69 : vector<64x128xf32>
    %c4 = arith.constant 4 : index
    %c0_48 = arith.constant 0 : index
    %c0_49 = arith.constant 0 : index
    %71 = vector.load %arg10[%c4, %c0_48, %c0_49] : memref<9x64x64xf32, #tpu.memory_space<vmem>>, vector<1x64x64xf32>
    %72 = vector.shape_cast %71 : vector<1x64x64xf32> to vector<64x64xf32>
    %cst_50 = arith.constant dense<0.000000e+00> : vector<64x128xf32>
    %73 = tpu.matmul %72, %35, %cst_50 {dimension_numbers = #tpu.dot_dimension_numbers<[1], [0], [0], [1], [0, 0, 1, 1], [], []>} : vector<64x64xf32>, vector<64x128xf32>, vector<64x128xf32> -> vector<64x128xf32>
    %c4_51 = arith.constant 4 : index
    %c0_52 = arith.constant 0 : index
    %74 = vector.load %arg11[%c4_51, %c0_52] : memref<9x128xf32, #tpu.memory_space<vmem>>, vector<1x128xf32>
    %75 = vector.broadcast %74 : vector<1x128xf32> to vector<64x128xf32>
    %76 = arith.mulf %73, %75 : vector<64x128xf32>
    %77 = arith.addf %70, %76 : vector<64x128xf32>
    %c5 = arith.constant 5 : index
    %c0_53 = arith.constant 0 : index
    %c0_54 = arith.constant 0 : index
    %78 = vector.load %arg10[%c5, %c0_53, %c0_54] : memref<9x64x64xf32, #tpu.memory_space<vmem>>, vector<1x64x64xf32>
    %79 = vector.shape_cast %78 : vector<1x64x64xf32> to vector<64x64xf32>
    %cst_55 = arith.constant dense<0.000000e+00> : vector<64x128xf32>
    %80 = tpu.matmul %79, %35, %cst_55 {dimension_numbers = #tpu.dot_dimension_numbers<[1], [0], [0], [1], [0, 0, 1, 1], [], []>} : vector<64x64xf32>, vector<64x128xf32>, vector<64x128xf32> -> vector<64x128xf32>
    %c5_56 = arith.constant 5 : index
    %c0_57 = arith.constant 0 : index
    %81 = vector.load %arg11[%c5_56, %c0_57] : memref<9x128xf32, #tpu.memory_space<vmem>>, vector<1x128xf32>
    %82 = vector.broadcast %81 : vector<1x128xf32> to vector<64x128xf32>
    %83 = arith.mulf %80, %82 : vector<64x128xf32>
    %84 = arith.addf %77, %83 : vector<64x128xf32>
    %c6 = arith.constant 6 : index
    %c0_58 = arith.constant 0 : index
    %c0_59 = arith.constant 0 : index
    %85 = vector.load %arg10[%c6, %c0_58, %c0_59] : memref<9x64x64xf32, #tpu.memory_space<vmem>>, vector<1x64x64xf32>
    %86 = vector.shape_cast %85 : vector<1x64x64xf32> to vector<64x64xf32>
    %cst_60 = arith.constant dense<0.000000e+00> : vector<64x128xf32>
    %87 = tpu.matmul %86, %35, %cst_60 {dimension_numbers = #tpu.dot_dimension_numbers<[1], [0], [0], [1], [0, 0, 1, 1], [], []>} : vector<64x64xf32>, vector<64x128xf32>, vector<64x128xf32> -> vector<64x128xf32>
    %c6_61 = arith.constant 6 : index
    %c0_62 = arith.constant 0 : index
    %88 = vector.load %arg11[%c6_61, %c0_62] : memref<9x128xf32, #tpu.memory_space<vmem>>, vector<1x128xf32>
    %89 = vector.broadcast %88 : vector<1x128xf32> to vector<64x128xf32>
    %90 = arith.mulf %87, %89 : vector<64x128xf32>
    %91 = arith.addf %84, %90 : vector<64x128xf32>
    %c7 = arith.constant 7 : index
    %c0_63 = arith.constant 0 : index
    %c0_64 = arith.constant 0 : index
    %92 = vector.load %arg10[%c7, %c0_63, %c0_64] : memref<9x64x64xf32, #tpu.memory_space<vmem>>, vector<1x64x64xf32>
    %93 = vector.shape_cast %92 : vector<1x64x64xf32> to vector<64x64xf32>
    %cst_65 = arith.constant dense<0.000000e+00> : vector<64x128xf32>
    %94 = tpu.matmul %93, %35, %cst_65 {dimension_numbers = #tpu.dot_dimension_numbers<[1], [0], [0], [1], [0, 0, 1, 1], [], []>} : vector<64x64xf32>, vector<64x128xf32>, vector<64x128xf32> -> vector<64x128xf32>
    %c7_66 = arith.constant 7 : index
    %c0_67 = arith.constant 0 : index
    %95 = vector.load %arg11[%c7_66, %c0_67] : memref<9x128xf32, #tpu.memory_space<vmem>>, vector<1x128xf32>
    %96 = vector.broadcast %95 : vector<1x128xf32> to vector<64x128xf32>
    %97 = arith.mulf %94, %96 : vector<64x128xf32>
    %98 = arith.addf %91, %97 : vector<64x128xf32>
    %c8 = arith.constant 8 : index
    %c0_68 = arith.constant 0 : index
    %c0_69 = arith.constant 0 : index
    %99 = vector.load %arg10[%c8, %c0_68, %c0_69] : memref<9x64x64xf32, #tpu.memory_space<vmem>>, vector<1x64x64xf32>
    %100 = vector.shape_cast %99 : vector<1x64x64xf32> to vector<64x64xf32>
    %cst_70 = arith.constant dense<0.000000e+00> : vector<64x128xf32>
    %101 = tpu.matmul %100, %35, %cst_70 {dimension_numbers = #tpu.dot_dimension_numbers<[1], [0], [0], [1], [0, 0, 1, 1], [], []>} : vector<64x64xf32>, vector<64x128xf32>, vector<64x128xf32> -> vector<64x128xf32>
    %c8_71 = arith.constant 8 : index
    %c0_72 = arith.constant 0 : index
    %102 = vector.load %arg11[%c8_71, %c0_72] : memref<9x128xf32, #tpu.memory_space<vmem>>, vector<1x128xf32>
    %103 = vector.broadcast %102 : vector<1x128xf32> to vector<64x128xf32>
    %104 = arith.mulf %101, %103 : vector<64x128xf32>
    %105 = arith.addf %98, %104 : vector<64x128xf32>
    %cst_73 = arith.constant 5.000000e-01 : f32
    %106 = vector.broadcast %cst_73 : f32 to vector<64x128xf32>
    %107 = arith.mulf %106, %105 : vector<64x128xf32>
    %cst_74 = arith.constant 4.471500e-02 : f32
    %108 = vector.broadcast %cst_74 : f32 to vector<64x128xf32>
    %109 = arith.mulf %108, %105 : vector<64x128xf32>
    %110 = arith.mulf %109, %105 : vector<64x128xf32>
    %111 = arith.mulf %110, %105 : vector<64x128xf32>
    %112 = arith.addf %105, %111 : vector<64x128xf32>
    %cst_75 = arith.constant 0.797884583 : f32
    %113 = vector.broadcast %cst_75 : f32 to vector<64x128xf32>
    %114 = arith.mulf %113, %112 : vector<64x128xf32>
    %115 = math.tanh %114 : vector<64x128xf32>
    %cst_76 = arith.constant 1.000000e+00 : f32
    %116 = vector.broadcast %cst_76 : f32 to vector<64x128xf32>
    %117 = arith.addf %116, %115 : vector<64x128xf32>
    %118 = arith.mulf %107, %117 : vector<64x128xf32>
    %119 = vector.extract_strided_slice %40 {offsets = [0, 0], sizes = [64, 1], strides = [1, 1]} : vector<64x128xf32> to vector<64x1xf32>
    %120 = vector.broadcast %119 : vector<64x1xf32> to vector<64x128xf32>
    %121 = arith.mulf %118, %120 : vector<64x128xf32>
    %122 = arith.addf %41, %121 : vector<64x128xf32>
    %cst_77 = arith.constant 0.000000e+00 : f32
    %123 = vector.broadcast %cst_77 : f32 to vector<64x128xf32>
    %c0_78 = arith.constant 0 : index
    %c0_79 = arith.constant 0 : index
    %c0_80 = arith.constant 0 : index
    %124 = vector.load %arg12[%c0_78, %c0_79, %c0_80] : memref<25x64x64xf32, #tpu.memory_space<vmem>>, vector<1x64x64xf32>
    %125 = vector.shape_cast %124 : vector<1x64x64xf32> to vector<64x64xf32>
    %cst_81 = arith.constant dense<0.000000e+00> : vector<64x128xf32>
    %126 = tpu.matmul %125, %118, %cst_81 {dimension_numbers = #tpu.dot_dimension_numbers<[1], [0], [0], [1], [0, 0, 1, 1], [], []>} : vector<64x64xf32>, vector<64x128xf32>, vector<64x128xf32> -> vector<64x128xf32>
    %c0_82 = arith.constant 0 : index
    %c0_83 = arith.constant 0 : index
    %127 = vector.load %arg13[%c0_82, %c0_83] : memref<25x128xf32, #tpu.memory_space<vmem>>, vector<1x128xf32>
    %128 = vector.broadcast %127 : vector<1x128xf32> to vector<64x128xf32>
    %129 = arith.mulf %126, %128 : vector<64x128xf32>
    %130 = arith.addf %123, %129 : vector<64x128xf32>
    %c1_84 = arith.constant 1 : index
    %c0_85 = arith.constant 0 : index
    %c0_86 = arith.constant 0 : index
    %131 = vector.load %arg12[%c1_84, %c0_85, %c0_86] : memref<25x64x64xf32, #tpu.memory_space<vmem>>, vector<1x64x64xf32>
    %132 = vector.shape_cast %131 : vector<1x64x64xf32> to vector<64x64xf32>
    %cst_87 = arith.constant dense<0.000000e+00> : vector<64x128xf32>
    %133 = tpu.matmul %132, %118, %cst_87 {dimension_numbers = #tpu.dot_dimension_numbers<[1], [0], [0], [1], [0, 0, 1, 1], [], []>} : vector<64x64xf32>, vector<64x128xf32>, vector<64x128xf32> -> vector<64x128xf32>
    %c1_88 = arith.constant 1 : index
    %c0_89 = arith.constant 0 : index
    %134 = vector.load %arg13[%c1_88, %c0_89] : memref<25x128xf32, #tpu.memory_space<vmem>>, vector<1x128xf32>
    %135 = vector.broadcast %134 : vector<1x128xf32> to vector<64x128xf32>
    %136 = arith.mulf %133, %135 : vector<64x128xf32>
    %137 = arith.addf %130, %136 : vector<64x128xf32>
    %c2_90 = arith.constant 2 : index
    %c0_91 = arith.constant 0 : index
    %c0_92 = arith.constant 0 : index
    %138 = vector.load %arg12[%c2_90, %c0_91, %c0_92] : memref<25x64x64xf32, #tpu.memory_space<vmem>>, vector<1x64x64xf32>
    %139 = vector.shape_cast %138 : vector<1x64x64xf32> to vector<64x64xf32>
    %cst_93 = arith.constant dense<0.000000e+00> : vector<64x128xf32>
    %140 = tpu.matmul %139, %118, %cst_93 {dimension_numbers = #tpu.dot_dimension_numbers<[1], [0], [0], [1], [0, 0, 1, 1], [], []>} : vector<64x64xf32>, vector<64x128xf32>, vector<64x128xf32> -> vector<64x128xf32>
    %c2_94 = arith.constant 2 : index
    %c0_95 = arith.constant 0 : index
    %141 = vector.load %arg13[%c2_94, %c0_95] : memref<25x128xf32, #tpu.memory_space<vmem>>, vector<1x128xf32>
    %142 = vector.broadcast %141 : vector<1x128xf32> to vector<64x128xf32>
    %143 = arith.mulf %140, %142 : vector<64x128xf32>
    %144 = arith.addf %137, %143 : vector<64x128xf32>
    %c3_96 = arith.constant 3 : index
    %c0_97 = arith.constant 0 : index
    %c0_98 = arith.constant 0 : index
    %145 = vector.load %arg12[%c3_96, %c0_97, %c0_98] : memref<25x64x64xf32, #tpu.memory_space<vmem>>, vector<1x64x64xf32>
    %146 = vector.shape_cast %145 : vector<1x64x64xf32> to vector<64x64xf32>
    %cst_99 = arith.constant dense<0.000000e+00> : vector<64x128xf32>
    %147 = tpu.matmul %146, %118, %cst_99 {dimension_numbers = #tpu.dot_dimension_numbers<[1], [0], [0], [1], [0, 0, 1, 1], [], []>} : vector<64x64xf32>, vector<64x128xf32>, vector<64x128xf32> -> vector<64x128xf32>
    %c3_100 = arith.constant 3 : index
    %c0_101 = arith.constant 0 : index
    %148 = vector.load %arg13[%c3_100, %c0_101] : memref<25x128xf32, #tpu.memory_space<vmem>>, vector<1x128xf32>
    %149 = vector.broadcast %148 : vector<1x128xf32> to vector<64x128xf32>
    %150 = arith.mulf %147, %149 : vector<64x128xf32>
    %151 = arith.addf %144, %150 : vector<64x128xf32>
    %c4_102 = arith.constant 4 : index
    %c0_103 = arith.constant 0 : index
    %c0_104 = arith.constant 0 : index
    %152 = vector.load %arg12[%c4_102, %c0_103, %c0_104] : memref<25x64x64xf32, #tpu.memory_space<vmem>>, vector<1x64x64xf32>
    %153 = vector.shape_cast %152 : vector<1x64x64xf32> to vector<64x64xf32>
    %cst_105 = arith.constant dense<0.000000e+00> : vector<64x128xf32>
    %154 = tpu.matmul %153, %118, %cst_105 {dimension_numbers = #tpu.dot_dimension_numbers<[1], [0], [0], [1], [0, 0, 1, 1], [], []>} : vector<64x64xf32>, vector<64x128xf32>, vector<64x128xf32> -> vector<64x128xf32>
    %c4_106 = arith.constant 4 : index
    %c0_107 = arith.constant 0 : index
    %155 = vector.load %arg13[%c4_106, %c0_107] : memref<25x128xf32, #tpu.memory_space<vmem>>, vector<1x128xf32>
    %156 = vector.broadcast %155 : vector<1x128xf32> to vector<64x128xf32>
    %157 = arith.mulf %154, %156 : vector<64x128xf32>
    %158 = arith.addf %151, %157 : vector<64x128xf32>
    %c5_108 = arith.constant 5 : index
    %c0_109 = arith.constant 0 : index
    %c0_110 = arith.constant 0 : index
    %159 = vector.load %arg12[%c5_108, %c0_109, %c0_110] : memref<25x64x64xf32, #tpu.memory_space<vmem>>, vector<1x64x64xf32>
    %160 = vector.shape_cast %159 : vector<1x64x64xf32> to vector<64x64xf32>
    %cst_111 = arith.constant dense<0.000000e+00> : vector<64x128xf32>
    %161 = tpu.matmul %160, %118, %cst_111 {dimension_numbers = #tpu.dot_dimension_numbers<[1], [0], [0], [1], [0, 0, 1, 1], [], []>} : vector<64x64xf32>, vector<64x128xf32>, vector<64x128xf32> -> vector<64x128xf32>
    %c5_112 = arith.constant 5 : index
    %c0_113 = arith.constant 0 : index
    %162 = vector.load %arg13[%c5_112, %c0_113] : memref<25x128xf32, #tpu.memory_space<vmem>>, vector<1x128xf32>
    %163 = vector.broadcast %162 : vector<1x128xf32> to vector<64x128xf32>
    %164 = arith.mulf %161, %163 : vector<64x128xf32>
    %165 = arith.addf %158, %164 : vector<64x128xf32>
    %c6_114 = arith.constant 6 : index
    %c0_115 = arith.constant 0 : index
    %c0_116 = arith.constant 0 : index
    %166 = vector.load %arg12[%c6_114, %c0_115, %c0_116] : memref<25x64x64xf32, #tpu.memory_space<vmem>>, vector<1x64x64xf32>
    %167 = vector.shape_cast %166 : vector<1x64x64xf32> to vector<64x64xf32>
    %cst_117 = arith.constant dense<0.000000e+00> : vector<64x128xf32>
    %168 = tpu.matmul %167, %118, %cst_117 {dimension_numbers = #tpu.dot_dimension_numbers<[1], [0], [0], [1], [0, 0, 1, 1], [], []>} : vector<64x64xf32>, vector<64x128xf32>, vector<64x128xf32> -> vector<64x128xf32>
    %c6_118 = arith.constant 6 : index
    %c0_119 = arith.constant 0 : index
    %169 = vector.load %arg13[%c6_118, %c0_119] : memref<25x128xf32, #tpu.memory_space<vmem>>, vector<1x128xf32>
    %170 = vector.broadcast %169 : vector<1x128xf32> to vector<64x128xf32>
    %171 = arith.mulf %168, %170 : vector<64x128xf32>
    %172 = arith.addf %165, %171 : vector<64x128xf32>
    %c7_120 = arith.constant 7 : index
    %c0_121 = arith.constant 0 : index
    %c0_122 = arith.constant 0 : index
    %173 = vector.load %arg12[%c7_120, %c0_121, %c0_122] : memref<25x64x64xf32, #tpu.memory_space<vmem>>, vector<1x64x64xf32>
    %174 = vector.shape_cast %173 : vector<1x64x64xf32> to vector<64x64xf32>
    %cst_123 = arith.constant dense<0.000000e+00> : vector<64x128xf32>
    %175 = tpu.matmul %174, %118, %cst_123 {dimension_numbers = #tpu.dot_dimension_numbers<[1], [0], [0], [1], [0, 0, 1, 1], [], []>} : vector<64x64xf32>, vector<64x128xf32>, vector<64x128xf32> -> vector<64x128xf32>
    %c7_124 = arith.constant 7 : index
    %c0_125 = arith.constant 0 : index
    %176 = vector.load %arg13[%c7_124, %c0_125] : memref<25x128xf32, #tpu.memory_space<vmem>>, vector<1x128xf32>
    %177 = vector.broadcast %176 : vector<1x128xf32> to vector<64x128xf32>
    %178 = arith.mulf %175, %177 : vector<64x128xf32>
    %179 = arith.addf %172, %178 : vector<64x128xf32>
    %c8_126 = arith.constant 8 : index
    %c0_127 = arith.constant 0 : index
    %c0_128 = arith.constant 0 : index
    %180 = vector.load %arg12[%c8_126, %c0_127, %c0_128] : memref<25x64x64xf32, #tpu.memory_space<vmem>>, vector<1x64x64xf32>
    %181 = vector.shape_cast %180 : vector<1x64x64xf32> to vector<64x64xf32>
    %cst_129 = arith.constant dense<0.000000e+00> : vector<64x128xf32>
    %182 = tpu.matmul %181, %118, %cst_129 {dimension_numbers = #tpu.dot_dimension_numbers<[1], [0], [0], [1], [0, 0, 1, 1], [], []>} : vector<64x64xf32>, vector<64x128xf32>, vector<64x128xf32> -> vector<64x128xf32>
    %c8_130 = arith.constant 8 : index
    %c0_131 = arith.constant 0 : index
    %183 = vector.load %arg13[%c8_130, %c0_131] : memref<25x128xf32, #tpu.memory_space<vmem>>, vector<1x128xf32>
    %184 = vector.broadcast %183 : vector<1x128xf32> to vector<64x128xf32>
    %185 = arith.mulf %182, %184 : vector<64x128xf32>
    %186 = arith.addf %179, %185 : vector<64x128xf32>
    %c9 = arith.constant 9 : index
    %c0_132 = arith.constant 0 : index
    %c0_133 = arith.constant 0 : index
    %187 = vector.load %arg12[%c9, %c0_132, %c0_133] : memref<25x64x64xf32, #tpu.memory_space<vmem>>, vector<1x64x64xf32>
    %188 = vector.shape_cast %187 : vector<1x64x64xf32> to vector<64x64xf32>
    %cst_134 = arith.constant dense<0.000000e+00> : vector<64x128xf32>
    %189 = tpu.matmul %188, %118, %cst_134 {dimension_numbers = #tpu.dot_dimension_numbers<[1], [0], [0], [1], [0, 0, 1, 1], [], []>} : vector<64x64xf32>, vector<64x128xf32>, vector<64x128xf32> -> vector<64x128xf32>
    %c9_135 = arith.constant 9 : index
    %c0_136 = arith.constant 0 : index
    %190 = vector.load %arg13[%c9_135, %c0_136] : memref<25x128xf32, #tpu.memory_space<vmem>>, vector<1x128xf32>
    %191 = vector.broadcast %190 : vector<1x128xf32> to vector<64x128xf32>
    %192 = arith.mulf %189, %191 : vector<64x128xf32>
    %193 = arith.addf %186, %192 : vector<64x128xf32>
    %c10 = arith.constant 10 : index
    %c0_137 = arith.constant 0 : index
    %c0_138 = arith.constant 0 : index
    %194 = vector.load %arg12[%c10, %c0_137, %c0_138] : memref<25x64x64xf32, #tpu.memory_space<vmem>>, vector<1x64x64xf32>
    %195 = vector.shape_cast %194 : vector<1x64x64xf32> to vector<64x64xf32>
    %cst_139 = arith.constant dense<0.000000e+00> : vector<64x128xf32>
    %196 = tpu.matmul %195, %118, %cst_139 {dimension_numbers = #tpu.dot_dimension_numbers<[1], [0], [0], [1], [0, 0, 1, 1], [], []>} : vector<64x64xf32>, vector<64x128xf32>, vector<64x128xf32> -> vector<64x128xf32>
    %c10_140 = arith.constant 10 : index
    %c0_141 = arith.constant 0 : index
    %197 = vector.load %arg13[%c10_140, %c0_141] : memref<25x128xf32, #tpu.memory_space<vmem>>, vector<1x128xf32>
    %198 = vector.broadcast %197 : vector<1x128xf32> to vector<64x128xf32>
    %199 = arith.mulf %196, %198 : vector<64x128xf32>
    %200 = arith.addf %193, %199 : vector<64x128xf32>
    %c11 = arith.constant 11 : index
    %c0_142 = arith.constant 0 : index
    %c0_143 = arith.constant 0 : index
    %201 = vector.load %arg12[%c11, %c0_142, %c0_143] : memref<25x64x64xf32, #tpu.memory_space<vmem>>, vector<1x64x64xf32>
    %202 = vector.shape_cast %201 : vector<1x64x64xf32> to vector<64x64xf32>
    %cst_144 = arith.constant dense<0.000000e+00> : vector<64x128xf32>
    %203 = tpu.matmul %202, %118, %cst_144 {dimension_numbers = #tpu.dot_dimension_numbers<[1], [0], [0], [1], [0, 0, 1, 1], [], []>} : vector<64x64xf32>, vector<64x128xf32>, vector<64x128xf32> -> vector<64x128xf32>
    %c11_145 = arith.constant 11 : index
    %c0_146 = arith.constant 0 : index
    %204 = vector.load %arg13[%c11_145, %c0_146] : memref<25x128xf32, #tpu.memory_space<vmem>>, vector<1x128xf32>
    %205 = vector.broadcast %204 : vector<1x128xf32> to vector<64x128xf32>
    %206 = arith.mulf %203, %205 : vector<64x128xf32>
    %207 = arith.addf %200, %206 : vector<64x128xf32>
    %c12 = arith.constant 12 : index
    %c0_147 = arith.constant 0 : index
    %c0_148 = arith.constant 0 : index
    %208 = vector.load %arg12[%c12, %c0_147, %c0_148] : memref<25x64x64xf32, #tpu.memory_space<vmem>>, vector<1x64x64xf32>
    %209 = vector.shape_cast %208 : vector<1x64x64xf32> to vector<64x64xf32>
    %cst_149 = arith.constant dense<0.000000e+00> : vector<64x128xf32>
    %210 = tpu.matmul %209, %118, %cst_149 {dimension_numbers = #tpu.dot_dimension_numbers<[1], [0], [0], [1], [0, 0, 1, 1], [], []>} : vector<64x64xf32>, vector<64x128xf32>, vector<64x128xf32> -> vector<64x128xf32>
    %c12_150 = arith.constant 12 : index
    %c0_151 = arith.constant 0 : index
    %211 = vector.load %arg13[%c12_150, %c0_151] : memref<25x128xf32, #tpu.memory_space<vmem>>, vector<1x128xf32>
    %212 = vector.broadcast %211 : vector<1x128xf32> to vector<64x128xf32>
    %213 = arith.mulf %210, %212 : vector<64x128xf32>
    %214 = arith.addf %207, %213 : vector<64x128xf32>
    %c13 = arith.constant 13 : index
    %c0_152 = arith.constant 0 : index
    %c0_153 = arith.constant 0 : index
    %215 = vector.load %arg12[%c13, %c0_152, %c0_153] : memref<25x64x64xf32, #tpu.memory_space<vmem>>, vector<1x64x64xf32>
    %216 = vector.shape_cast %215 : vector<1x64x64xf32> to vector<64x64xf32>
    %cst_154 = arith.constant dense<0.000000e+00> : vector<64x128xf32>
    %217 = tpu.matmul %216, %118, %cst_154 {dimension_numbers = #tpu.dot_dimension_numbers<[1], [0], [0], [1], [0, 0, 1, 1], [], []>} : vector<64x64xf32>, vector<64x128xf32>, vector<64x128xf32> -> vector<64x128xf32>
    %c13_155 = arith.constant 13 : index
    %c0_156 = arith.constant 0 : index
    %218 = vector.load %arg13[%c13_155, %c0_156] : memref<25x128xf32, #tpu.memory_space<vmem>>, vector<1x128xf32>
    %219 = vector.broadcast %218 : vector<1x128xf32> to vector<64x128xf32>
    %220 = arith.mulf %217, %219 : vector<64x128xf32>
    %221 = arith.addf %214, %220 : vector<64x128xf32>
    %c14 = arith.constant 14 : index
    %c0_157 = arith.constant 0 : index
    %c0_158 = arith.constant 0 : index
    %222 = vector.load %arg12[%c14, %c0_157, %c0_158] : memref<25x64x64xf32, #tpu.memory_space<vmem>>, vector<1x64x64xf32>
    %223 = vector.shape_cast %222 : vector<1x64x64xf32> to vector<64x64xf32>
    %cst_159 = arith.constant dense<0.000000e+00> : vector<64x128xf32>
    %224 = tpu.matmul %223, %118, %cst_159 {dimension_numbers = #tpu.dot_dimension_numbers<[1], [0], [0], [1], [0, 0, 1, 1], [], []>} : vector<64x64xf32>, vector<64x128xf32>, vector<64x128xf32> -> vector<64x128xf32>
    %c14_160 = arith.constant 14 : index
    %c0_161 = arith.constant 0 : index
    %225 = vector.load %arg13[%c14_160, %c0_161] : memref<25x128xf32, #tpu.memory_space<vmem>>, vector<1x128xf32>
    %226 = vector.broadcast %225 : vector<1x128xf32> to vector<64x128xf32>
    %227 = arith.mulf %224, %226 : vector<64x128xf32>
    %228 = arith.addf %221, %227 : vector<64x128xf32>
    %c15 = arith.constant 15 : index
    %c0_162 = arith.constant 0 : index
    %c0_163 = arith.constant 0 : index
    %229 = vector.load %arg12[%c15, %c0_162, %c0_163] : memref<25x64x64xf32, #tpu.memory_space<vmem>>, vector<1x64x64xf32>
    %230 = vector.shape_cast %229 : vector<1x64x64xf32> to vector<64x64xf32>
    %cst_164 = arith.constant dense<0.000000e+00> : vector<64x128xf32>
    %231 = tpu.matmul %230, %118, %cst_164 {dimension_numbers = #tpu.dot_dimension_numbers<[1], [0], [0], [1], [0, 0, 1, 1], [], []>} : vector<64x64xf32>, vector<64x128xf32>, vector<64x128xf32> -> vector<64x128xf32>
    %c15_165 = arith.constant 15 : index
    %c0_166 = arith.constant 0 : index
    %232 = vector.load %arg13[%c15_165, %c0_166] : memref<25x128xf32, #tpu.memory_space<vmem>>, vector<1x128xf32>
    %233 = vector.broadcast %232 : vector<1x128xf32> to vector<64x128xf32>
    %234 = arith.mulf %231, %233 : vector<64x128xf32>
    %235 = arith.addf %228, %234 : vector<64x128xf32>
    %c16 = arith.constant 16 : index
    %c0_167 = arith.constant 0 : index
    %c0_168 = arith.constant 0 : index
    %236 = vector.load %arg12[%c16, %c0_167, %c0_168] : memref<25x64x64xf32, #tpu.memory_space<vmem>>, vector<1x64x64xf32>
    %237 = vector.shape_cast %236 : vector<1x64x64xf32> to vector<64x64xf32>
    %cst_169 = arith.constant dense<0.000000e+00> : vector<64x128xf32>
    %238 = tpu.matmul %237, %118, %cst_169 {dimension_numbers = #tpu.dot_dimension_numbers<[1], [0], [0], [1], [0, 0, 1, 1], [], []>} : vector<64x64xf32>, vector<64x128xf32>, vector<64x128xf32> -> vector<64x128xf32>
    %c16_170 = arith.constant 16 : index
    %c0_171 = arith.constant 0 : index
    %239 = vector.load %arg13[%c16_170, %c0_171] : memref<25x128xf32, #tpu.memory_space<vmem>>, vector<1x128xf32>
    %240 = vector.broadcast %239 : vector<1x128xf32> to vector<64x128xf32>
    %241 = arith.mulf %238, %240 : vector<64x128xf32>
    %242 = arith.addf %235, %241 : vector<64x128xf32>
    %c17 = arith.constant 17 : index
    %c0_172 = arith.constant 0 : index
    %c0_173 = arith.constant 0 : index
    %243 = vector.load %arg12[%c17, %c0_172, %c0_173] : memref<25x64x64xf32, #tpu.memory_space<vmem>>, vector<1x64x64xf32>
    %244 = vector.shape_cast %243 : vector<1x64x64xf32> to vector<64x64xf32>
    %cst_174 = arith.constant dense<0.000000e+00> : vector<64x128xf32>
    %245 = tpu.matmul %244, %118, %cst_174 {dimension_numbers = #tpu.dot_dimension_numbers<[1], [0], [0], [1], [0, 0, 1, 1], [], []>} : vector<64x64xf32>, vector<64x128xf32>, vector<64x128xf32> -> vector<64x128xf32>
    %c17_175 = arith.constant 17 : index
    %c0_176 = arith.constant 0 : index
    %246 = vector.load %arg13[%c17_175, %c0_176] : memref<25x128xf32, #tpu.memory_space<vmem>>, vector<1x128xf32>
    %247 = vector.broadcast %246 : vector<1x128xf32> to vector<64x128xf32>
    %248 = arith.mulf %245, %247 : vector<64x128xf32>
    %249 = arith.addf %242, %248 : vector<64x128xf32>
    %c18 = arith.constant 18 : index
    %c0_177 = arith.constant 0 : index
    %c0_178 = arith.constant 0 : index
    %250 = vector.load %arg12[%c18, %c0_177, %c0_178] : memref<25x64x64xf32, #tpu.memory_space<vmem>>, vector<1x64x64xf32>
    %251 = vector.shape_cast %250 : vector<1x64x64xf32> to vector<64x64xf32>
    %cst_179 = arith.constant dense<0.000000e+00> : vector<64x128xf32>
    %252 = tpu.matmul %251, %118, %cst_179 {dimension_numbers = #tpu.dot_dimension_numbers<[1], [0], [0], [1], [0, 0, 1, 1], [], []>} : vector<64x64xf32>, vector<64x128xf32>, vector<64x128xf32> -> vector<64x128xf32>
    %c18_180 = arith.constant 18 : index
    %c0_181 = arith.constant 0 : index
    %253 = vector.load %arg13[%c18_180, %c0_181] : memref<25x128xf32, #tpu.memory_space<vmem>>, vector<1x128xf32>
    %254 = vector.broadcast %253 : vector<1x128xf32> to vector<64x128xf32>
    %255 = arith.mulf %252, %254 : vector<64x128xf32>
    %256 = arith.addf %249, %255 : vector<64x128xf32>
    %c19 = arith.constant 19 : index
    %c0_182 = arith.constant 0 : index
    %c0_183 = arith.constant 0 : index
    %257 = vector.load %arg12[%c19, %c0_182, %c0_183] : memref<25x64x64xf32, #tpu.memory_space<vmem>>, vector<1x64x64xf32>
    %258 = vector.shape_cast %257 : vector<1x64x64xf32> to vector<64x64xf32>
    %cst_184 = arith.constant dense<0.000000e+00> : vector<64x128xf32>
    %259 = tpu.matmul %258, %118, %cst_184 {dimension_numbers = #tpu.dot_dimension_numbers<[1], [0], [0], [1], [0, 0, 1, 1], [], []>} : vector<64x64xf32>, vector<64x128xf32>, vector<64x128xf32> -> vector<64x128xf32>
    %c19_185 = arith.constant 19 : index
    %c0_186 = arith.constant 0 : index
    %260 = vector.load %arg13[%c19_185, %c0_186] : memref<25x128xf32, #tpu.memory_space<vmem>>, vector<1x128xf32>
    %261 = vector.broadcast %260 : vector<1x128xf32> to vector<64x128xf32>
    %262 = arith.mulf %259, %261 : vector<64x128xf32>
    %263 = arith.addf %256, %262 : vector<64x128xf32>
    %c20 = arith.constant 20 : index
    %c0_187 = arith.constant 0 : index
    %c0_188 = arith.constant 0 : index
    %264 = vector.load %arg12[%c20, %c0_187, %c0_188] : memref<25x64x64xf32, #tpu.memory_space<vmem>>, vector<1x64x64xf32>
    %265 = vector.shape_cast %264 : vector<1x64x64xf32> to vector<64x64xf32>
    %cst_189 = arith.constant dense<0.000000e+00> : vector<64x128xf32>
    %266 = tpu.matmul %265, %118, %cst_189 {dimension_numbers = #tpu.dot_dimension_numbers<[1], [0], [0], [1], [0, 0, 1, 1], [], []>} : vector<64x64xf32>, vector<64x128xf32>, vector<64x128xf32> -> vector<64x128xf32>
    %c20_190 = arith.constant 20 : index
    %c0_191 = arith.constant 0 : index
    %267 = vector.load %arg13[%c20_190, %c0_191] : memref<25x128xf32, #tpu.memory_space<vmem>>, vector<1x128xf32>
    %268 = vector.broadcast %267 : vector<1x128xf32> to vector<64x128xf32>
    %269 = arith.mulf %266, %268 : vector<64x128xf32>
    %270 = arith.addf %263, %269 : vector<64x128xf32>
    %c21 = arith.constant 21 : index
    %c0_192 = arith.constant 0 : index
    %c0_193 = arith.constant 0 : index
    %271 = vector.load %arg12[%c21, %c0_192, %c0_193] : memref<25x64x64xf32, #tpu.memory_space<vmem>>, vector<1x64x64xf32>
    %272 = vector.shape_cast %271 : vector<1x64x64xf32> to vector<64x64xf32>
    %cst_194 = arith.constant dense<0.000000e+00> : vector<64x128xf32>
    %273 = tpu.matmul %272, %118, %cst_194 {dimension_numbers = #tpu.dot_dimension_numbers<[1], [0], [0], [1], [0, 0, 1, 1], [], []>} : vector<64x64xf32>, vector<64x128xf32>, vector<64x128xf32> -> vector<64x128xf32>
    %c21_195 = arith.constant 21 : index
    %c0_196 = arith.constant 0 : index
    %274 = vector.load %arg13[%c21_195, %c0_196] : memref<25x128xf32, #tpu.memory_space<vmem>>, vector<1x128xf32>
    %275 = vector.broadcast %274 : vector<1x128xf32> to vector<64x128xf32>
    %276 = arith.mulf %273, %275 : vector<64x128xf32>
    %277 = arith.addf %270, %276 : vector<64x128xf32>
    %c22 = arith.constant 22 : index
    %c0_197 = arith.constant 0 : index
    %c0_198 = arith.constant 0 : index
    %278 = vector.load %arg12[%c22, %c0_197, %c0_198] : memref<25x64x64xf32, #tpu.memory_space<vmem>>, vector<1x64x64xf32>
    %279 = vector.shape_cast %278 : vector<1x64x64xf32> to vector<64x64xf32>
    %cst_199 = arith.constant dense<0.000000e+00> : vector<64x128xf32>
    %280 = tpu.matmul %279, %118, %cst_199 {dimension_numbers = #tpu.dot_dimension_numbers<[1], [0], [0], [1], [0, 0, 1, 1], [], []>} : vector<64x64xf32>, vector<64x128xf32>, vector<64x128xf32> -> vector<64x128xf32>
    %c22_200 = arith.constant 22 : index
    %c0_201 = arith.constant 0 : index
    %281 = vector.load %arg13[%c22_200, %c0_201] : memref<25x128xf32, #tpu.memory_space<vmem>>, vector<1x128xf32>
    %282 = vector.broadcast %281 : vector<1x128xf32> to vector<64x128xf32>
    %283 = arith.mulf %280, %282 : vector<64x128xf32>
    %284 = arith.addf %277, %283 : vector<64x128xf32>
    %c23 = arith.constant 23 : index
    %c0_202 = arith.constant 0 : index
    %c0_203 = arith.constant 0 : index
    %285 = vector.load %arg12[%c23, %c0_202, %c0_203] : memref<25x64x64xf32, #tpu.memory_space<vmem>>, vector<1x64x64xf32>
    %286 = vector.shape_cast %285 : vector<1x64x64xf32> to vector<64x64xf32>
    %cst_204 = arith.constant dense<0.000000e+00> : vector<64x128xf32>
    %287 = tpu.matmul %286, %118, %cst_204 {dimension_numbers = #tpu.dot_dimension_numbers<[1], [0], [0], [1], [0, 0, 1, 1], [], []>} : vector<64x64xf32>, vector<64x128xf32>, vector<64x128xf32> -> vector<64x128xf32>
    %c23_205 = arith.constant 23 : index
    %c0_206 = arith.constant 0 : index
    %288 = vector.load %arg13[%c23_205, %c0_206] : memref<25x128xf32, #tpu.memory_space<vmem>>, vector<1x128xf32>
    %289 = vector.broadcast %288 : vector<1x128xf32> to vector<64x128xf32>
    %290 = arith.mulf %287, %289 : vector<64x128xf32>
    %291 = arith.addf %284, %290 : vector<64x128xf32>
    %c24 = arith.constant 24 : index
    %c0_207 = arith.constant 0 : index
    %c0_208 = arith.constant 0 : index
    %292 = vector.load %arg12[%c24, %c0_207, %c0_208] : memref<25x64x64xf32, #tpu.memory_space<vmem>>, vector<1x64x64xf32>
    %293 = vector.shape_cast %292 : vector<1x64x64xf32> to vector<64x64xf32>
    %cst_209 = arith.constant dense<0.000000e+00> : vector<64x128xf32>
    %294 = tpu.matmul %293, %118, %cst_209 {dimension_numbers = #tpu.dot_dimension_numbers<[1], [0], [0], [1], [0, 0, 1, 1], [], []>} : vector<64x64xf32>, vector<64x128xf32>, vector<64x128xf32> -> vector<64x128xf32>
    %c24_210 = arith.constant 24 : index
    %c0_211 = arith.constant 0 : index
    %295 = vector.load %arg13[%c24_210, %c0_211] : memref<25x128xf32, #tpu.memory_space<vmem>>, vector<1x128xf32>
    %296 = vector.broadcast %295 : vector<1x128xf32> to vector<64x128xf32>
    %297 = arith.mulf %294, %296 : vector<64x128xf32>
    %298 = arith.addf %291, %297 : vector<64x128xf32>
    %cst_212 = arith.constant 5.000000e-01 : f32
    %299 = vector.broadcast %cst_212 : f32 to vector<64x128xf32>
    %300 = arith.mulf %299, %298 : vector<64x128xf32>
    %cst_213 = arith.constant 4.471500e-02 : f32
    %301 = vector.broadcast %cst_213 : f32 to vector<64x128xf32>
    %302 = arith.mulf %301, %298 : vector<64x128xf32>
    %303 = arith.mulf %302, %298 : vector<64x128xf32>
    %304 = arith.mulf %303, %298 : vector<64x128xf32>
    %305 = arith.addf %298, %304 : vector<64x128xf32>
    %cst_214 = arith.constant 0.797884583 : f32
    %306 = vector.broadcast %cst_214 : f32 to vector<64x128xf32>
    %307 = arith.mulf %306, %305 : vector<64x128xf32>
    %308 = math.tanh %307 : vector<64x128xf32>
    %cst_215 = arith.constant 1.000000e+00 : f32
    %309 = vector.broadcast %cst_215 : f32 to vector<64x128xf32>
    %310 = arith.addf %309, %308 : vector<64x128xf32>
    %311 = arith.mulf %300, %310 : vector<64x128xf32>
    %312 = vector.extract_strided_slice %40 {offsets = [0, 1], sizes = [64, 1], strides = [1, 1]} : vector<64x128xf32> to vector<64x1xf32>
    %313 = vector.broadcast %312 : vector<64x1xf32> to vector<64x128xf32>
    %314 = arith.mulf %311, %313 : vector<64x128xf32>
    %315 = arith.addf %122, %314 : vector<64x128xf32>
    %cst_216 = arith.constant dense<0.000000e+00> : vector<128xf32>
    %316 = vector.multi_reduction <add>, %311, %cst_216 [0] : vector<64x128xf32> to vector<128xf32>
    %317 = vector.shape_cast %316 : vector<128xf32> to vector<1x128xf32>
    %cst_217 = arith.constant 6.400000e+01 : f32
    %318 = vector.broadcast %cst_217 : f32 to vector<1x128xf32>
    %319 = arith.divf %317, %318 : vector<1x128xf32>
    %cst_218 = arith.constant 5.000000e-01 : f32
    %320 = vector.broadcast %cst_218 : f32 to vector<1x128xf32>
    %321 = arith.mulf %320, %319 : vector<1x128xf32>
    %cst_219 = arith.constant 4.471500e-02 : f32
    %322 = vector.broadcast %cst_219 : f32 to vector<1x128xf32>
    %323 = arith.mulf %322, %319 : vector<1x128xf32>
    %324 = arith.mulf %323, %319 : vector<1x128xf32>
    %325 = arith.mulf %324, %319 : vector<1x128xf32>
    %326 = arith.addf %319, %325 : vector<1x128xf32>
    %cst_220 = arith.constant 0.797884583 : f32
    %327 = vector.broadcast %cst_220 : f32 to vector<1x128xf32>
    %328 = arith.mulf %327, %326 : vector<1x128xf32>
    %329 = math.tanh %328 : vector<1x128xf32>
    %cst_221 = arith.constant 1.000000e+00 : f32
    %330 = vector.broadcast %cst_221 : f32 to vector<1x128xf32>
    %331 = arith.addf %330, %329 : vector<1x128xf32>
    %332 = arith.mulf %321, %331 : vector<1x128xf32>
    %333 = vector.extract_strided_slice %40 {offsets = [0, 2], sizes = [64, 1], strides = [1, 1]} : vector<64x128xf32> to vector<64x1xf32>
    %334 = vector.broadcast %332 : vector<1x128xf32> to vector<64x128xf32>
    %335 = vector.broadcast %333 : vector<64x1xf32> to vector<64x128xf32>
    %336 = arith.mulf %334, %335 : vector<64x128xf32>
    %337 = arith.addf %315, %336 : vector<64x128xf32>
    %c0_222 = arith.constant 0 : index
    %c0_223 = arith.constant 0 : index
    %338 = vector.load %arg14[%c0_222, %c0_223] : memref<128x128xf32, #tpu.memory_space<vmem>>, vector<128x128xf32>
    %cst_224 = arith.constant dense<0.000000e+00> : vector<64x128xf32>
    %339 = tpu.matmul %337, %338, %cst_224 {dimension_numbers = #tpu.dot_dimension_numbers<[1], [0], [0], [1], [0, 0, 1, 1], [], []>} : vector<64x128xf32>, vector<128x128xf32>, vector<64x128xf32> -> vector<64x128xf32>
    %c0_225 = arith.constant 0 : index
    %c0_226 = arith.constant 0 : index
    %340 = vector.load %arg15[%c0_225, %c0_226] : memref<1x128xf32, #tpu.memory_space<vmem>>, vector<1x128xf32>
    %341 = vector.broadcast %340 : vector<1x128xf32> to vector<64x128xf32>
    %342 = arith.addf %339, %341 : vector<64x128xf32>
    %343 = arith.mulf %30, %342 : vector<64x128xf32>
    %c0_227 = arith.constant 0 : index
    %c0_228 = arith.constant 0 : index
    %344 = vector.load %arg16[%c0_227, %c0_228] : memref<128x128xf32, #tpu.memory_space<vmem>>, vector<128x128xf32>
    %cst_229 = arith.constant dense<0.000000e+00> : vector<64x128xf32>
    %345 = tpu.matmul %343, %344, %cst_229 {dimension_numbers = #tpu.dot_dimension_numbers<[1], [0], [0], [1], [0, 0, 1, 1], [], []>} : vector<64x128xf32>, vector<128x128xf32>, vector<64x128xf32> -> vector<64x128xf32>
    %c0_230 = arith.constant 0 : index
    %c0_231 = arith.constant 0 : index
    %346 = vector.load %arg17[%c0_230, %c0_231] : memref<1x128xf32, #tpu.memory_space<vmem>>, vector<1x128xf32>
    %347 = vector.broadcast %346 : vector<1x128xf32> to vector<64x128xf32>
    %348 = arith.addf %345, %347 : vector<64x128xf32>
    %349 = arith.addf %1, %348 : vector<64x128xf32>
    %c0_232 = arith.constant 0 : index
    %c0_233 = arith.constant 0 : index
    %350 = vector.load %arg18[%c0_232, %c0_233] : memref<1x128xf32, #tpu.memory_space<vmem>>, vector<1x128xf32>
    %c0_234 = arith.constant 0 : index
    %c0_235 = arith.constant 0 : index
    %351 = vector.load %arg19[%c0_234, %c0_235] : memref<1x128xf32, #tpu.memory_space<vmem>>, vector<1x128xf32>
    %cst_236 = arith.constant dense<0.000000e+00> : vector<64xf32>
    %352 = vector.multi_reduction <add>, %349, %cst_236 [1] : vector<64x128xf32> to vector<64xf32>
    %353 = vector.shape_cast %352 : vector<64xf32> to vector<64x1xf32>
    %354 = arith.mulf %349, %349 : vector<64x128xf32>
    %cst_237 = arith.constant dense<0.000000e+00> : vector<64xf32>
    %355 = vector.multi_reduction <add>, %354, %cst_237 [1] : vector<64x128xf32> to vector<64xf32>
    %356 = vector.shape_cast %355 : vector<64xf32> to vector<64x1xf32>
    %cst_238 = arith.constant 1.600000e+01 : f32
    %357 = vector.broadcast %cst_238 : f32 to vector<64x1xf32>
    %358 = arith.divf %353, %357 : vector<64x1xf32>
    %cst_239 = arith.constant 1.600000e+01 : f32
    %359 = vector.broadcast %cst_239 : f32 to vector<64x1xf32>
    %360 = arith.divf %356, %359 : vector<64x1xf32>
    %361 = arith.mulf %358, %358 : vector<64x1xf32>
    %362 = arith.subf %360, %361 : vector<64x1xf32>
    %363 = vector.broadcast %358 : vector<64x1xf32> to vector<64x128xf32>
    %364 = arith.subf %349, %363 : vector<64x128xf32>
    %cst_240 = arith.constant 9.99999974E-6 : f32
    %365 = vector.broadcast %cst_240 : f32 to vector<64x1xf32>
    %366 = arith.addf %362, %365 : vector<64x1xf32>
    %367 = math.rsqrt %366 : vector<64x1xf32>
    %368 = vector.broadcast %367 : vector<64x1xf32> to vector<64x128xf32>
    %369 = arith.mulf %364, %368 : vector<64x128xf32>
    %370 = vector.broadcast %350 : vector<1x128xf32> to vector<64x128xf32>
    %371 = arith.mulf %369, %370 : vector<64x128xf32>
    %372 = vector.broadcast %351 : vector<1x128xf32> to vector<64x128xf32>
    %373 = arith.addf %371, %372 : vector<64x128xf32>
    %c0_241 = arith.constant 0 : index
    %c0_242 = arith.constant 0 : index
    %374 = vector.load %arg20[%c0_241, %c0_242] : memref<128x128xf32, #tpu.memory_space<vmem>>, vector<128x128xf32>
    %cst_243 = arith.constant dense<0.000000e+00> : vector<64x128xf32>
    %375 = tpu.matmul %373, %374, %cst_243 {dimension_numbers = #tpu.dot_dimension_numbers<[1], [0], [0], [1], [0, 0, 1, 1], [], []>} : vector<64x128xf32>, vector<128x128xf32>, vector<64x128xf32> -> vector<64x128xf32>
    %c0_244 = arith.constant 0 : index
    %c0_245 = arith.constant 0 : index
    %376 = vector.load %arg21[%c0_244, %c0_245] : memref<1x128xf32, #tpu.memory_space<vmem>>, vector<1x128xf32>
    %377 = vector.broadcast %376 : vector<1x128xf32> to vector<64x128xf32>
    %378 = arith.addf %375, %377 : vector<64x128xf32>
    %cst_246 = arith.constant 5.000000e-01 : f32
    %379 = vector.broadcast %cst_246 : f32 to vector<64x128xf32>
    %380 = arith.mulf %379, %378 : vector<64x128xf32>
    %cst_247 = arith.constant 4.471500e-02 : f32
    %381 = vector.broadcast %cst_247 : f32 to vector<64x128xf32>
    %382 = arith.mulf %381, %378 : vector<64x128xf32>
    %383 = arith.mulf %382, %378 : vector<64x128xf32>
    %384 = arith.mulf %383, %378 : vector<64x128xf32>
    %385 = arith.addf %378, %384 : vector<64x128xf32>
    %cst_248 = arith.constant 0.797884583 : f32
    %386 = vector.broadcast %cst_248 : f32 to vector<64x128xf32>
    %387 = arith.mulf %386, %385 : vector<64x128xf32>
    %388 = math.tanh %387 : vector<64x128xf32>
    %cst_249 = arith.constant 1.000000e+00 : f32
    %389 = vector.broadcast %cst_249 : f32 to vector<64x128xf32>
    %390 = arith.addf %389, %388 : vector<64x128xf32>
    %391 = arith.mulf %380, %390 : vector<64x128xf32>
    %c0_250 = arith.constant 0 : index
    %c0_251 = arith.constant 0 : index
    %392 = vector.load %arg22[%c0_250, %c0_251] : memref<128x128xf32, #tpu.memory_space<vmem>>, vector<128x128xf32>
    %cst_252 = arith.constant dense<0.000000e+00> : vector<64x128xf32>
    %393 = tpu.matmul %391, %392, %cst_252 {dimension_numbers = #tpu.dot_dimension_numbers<[1], [0], [0], [1], [0, 0, 1, 1], [], []>} : vector<64x128xf32>, vector<128x128xf32>, vector<64x128xf32> -> vector<64x128xf32>
    %c0_253 = arith.constant 0 : index
    %c0_254 = arith.constant 0 : index
    %394 = vector.load %arg23[%c0_253, %c0_254] : memref<1x128xf32, #tpu.memory_space<vmem>>, vector<1x128xf32>
    %395 = vector.broadcast %394 : vector<1x128xf32> to vector<64x128xf32>
    %396 = arith.addf %393, %395 : vector<64x128xf32>
    %397 = arith.addf %349, %396 : vector<64x128xf32>
    %c0_255 = arith.constant 0 : index
    %c0_256 = arith.constant 0 : index
    %c0_257 = arith.constant 0 : index
    %398 = vector.load %arg24[%c0_255, %c0_256, %c0_257] : memref<1x64x128xf32, #tpu.memory_space<vmem>>, vector<1x64x128xf32>
    %399 = vector.shape_cast %398 : vector<1x64x128xf32> to vector<64x128xf32>
    %400 = vector.shape_cast %397 : vector<64x128xf32> to vector<1x64x128xf32>
    tpu.vector_store %arg24[%c0_255, %c0_256, %c0_257], %400 {strides = array<i32>} : memref<1x64x128xf32, #tpu.memory_space<vmem>>, vector<1x64x128xf32>,
    return
  }
  func.func @transform_0(%arg0: i32) -> (i32, i32, i32) {
    %c0_i32 = arith.constant 0 : i32
    %c0_i32_0 = arith.constant 0 : i32
    %c0_i32_1 = arith.constant 0 : i32
    return %arg0, %c0_i32, %c0_i32_0 : i32, i32, i32
  }
  func.func @transform_1(%arg0: i32) -> (i32, i32) {
    %c0_i32 = arith.constant 0 : i32
    %c0_i32_0 = arith.constant 0 : i32
    %c0_i32_1 = arith.constant 0 : i32
    return %c0_i32, %c0_i32_0 : i32, i32
  }
  func.func @transform_2(%arg0: i32) -> (i32, i32) {
    %c0_i32 = arith.constant 0 : i32
    %c0_i32_0 = arith.constant 0 : i32
    %c0_i32_1 = arith.constant 0 : i32
    return %c0_i32, %c0_i32_0 : i32, i32
  }
  func.func @transform_3(%arg0: i32) -> (i32, i32) {
    %c0_i32 = arith.constant 0 : i32
    %c0_i32_0 = arith.constant 0 : i32
    %c0_i32_1 = arith.constant 0 : i32
    return %c0_i32, %c0_i32_0 : i32, i32
  }
  func.func @transform_4(%arg0: i32) -> (i32, i32) {
    %c0_i32 = arith.constant 0 : i32
    %c0_i32_0 = arith.constant 0 : i32
    %c0_i32_1 = arith.constant 0 : i32
    return %c0_i32, %c0_i32_0 : i32, i32
  }
  func.func @transform_5(%arg0: i32) -> (i32, i32) {
    %c0_i32 = arith.constant 0 : i32
    %c0_i32_0 = arith.constant 0 : i32
    %c0_i32_1 = arith.constant 0 : i32
    return %c0_i32, %c0_i32_0 : i32, i32
  }
  func.func @transform_6(%arg0: i32) -> (i32, i32) {
    %c0_i32 = arith.constant 0 : i32
    %c0_i32_0 = arith.constant 0 : i32
    %c0_i32_1 = arith.constant 0 : i32
    return %c0_i32, %c0_i32_0 : i32, i32
  }
  func.func @transform_7(%arg0: i32) -> (i32, i32) {
    %c0_i32 = arith.constant 0 : i32
    %c0_i32_0 = arith.constant 0 : i32
    %c0_i32_1 = arith.constant 0 : i32
    return %c0_i32, %c0_i32_0 : i32, i32
  }
  func.func @transform_8(%arg0: i32) -> (i32, i32) {
    %c0_i32 = arith.constant 0 : i32
    %c0_i32_0 = arith.constant 0 : i32
    %c0_i32_1 = arith.constant 0 : i32
    return %c0_i32, %c0_i32_0 : i32, i32
  }
  func.func @transform_9(%arg0: i32) -> (i32, i32, i32) {
    %c0_i32 = arith.constant 0 : i32
    %c0_i32_0 = arith.constant 0 : i32
    %c0_i32_1 = arith.constant 0 : i32
    %c0_i32_2 = arith.constant 0 : i32
    return %c0_i32, %c0_i32_0, %c0_i32_1 : i32, i32, i32
  }
  func.func @transform_10(%arg0: i32) -> (i32, i32) {
    %c0_i32 = arith.constant 0 : i32
    %c0_i32_0 = arith.constant 0 : i32
    %c0_i32_1 = arith.constant 0 : i32
    return %c0_i32, %c0_i32_0 : i32, i32
  }
  func.func @transform_11(%arg0: i32) -> (i32, i32, i32) {
    %c0_i32 = arith.constant 0 : i32
    %c0_i32_0 = arith.constant 0 : i32
    %c0_i32_1 = arith.constant 0 : i32
    %c0_i32_2 = arith.constant 0 : i32
    return %c0_i32, %c0_i32_0, %c0_i32_1 : i32, i32, i32
  }
  func.func @transform_12(%arg0: i32) -> (i32, i32) {
    %c0_i32 = arith.constant 0 : i32
    %c0_i32_0 = arith.constant 0 : i32
    %c0_i32_1 = arith.constant 0 : i32
    return %c0_i32, %c0_i32_0 : i32, i32
  }
  func.func @transform_13(%arg0: i32) -> (i32, i32) {
    %c0_i32 = arith.constant 0 : i32
    %c0_i32_0 = arith.constant 0 : i32
    %c0_i32_1 = arith.constant 0 : i32
    return %c0_i32, %c0_i32_0 : i32, i32
  }
  func.func @transform_14(%arg0: i32) -> (i32, i32) {
    %c0_i32 = arith.constant 0 : i32
    %c0_i32_0 = arith.constant 0 : i32
    %c0_i32_1 = arith.constant 0 : i32
    return %c0_i32, %c0_i32_0 : i32, i32
  }
  func.func @transform_15(%arg0: i32) -> (i32, i32) {
    %c0_i32 = arith.constant 0 : i32
    %c0_i32_0 = arith.constant 0 : i32
    %c0_i32_1 = arith.constant 0 : i32
    return %c0_i32, %c0_i32_0 : i32, i32
  }
  func.func @transform_16(%arg0: i32) -> (i32, i32) {
    %c0_i32 = arith.constant 0 : i32
    %c0_i32_0 = arith.constant 0 : i32
    %c0_i32_1 = arith.constant 0 : i32
    return %c0_i32, %c0_i32_0 : i32, i32
  }
  func.func @transform_17(%arg0: i32) -> (i32, i32) {
    %c0_i32 = arith.constant 0 : i32
    %c0_i32_0 = arith.constant 0 : i32
    %c0_i32_1 = arith.constant 0 : i32
    return %c0_i32, %c0_i32_0 : i32, i32
  }
  func.func @transform_18(%arg0: i32) -> (i32, i32) {
    %c0_i32 = arith.constant 0 : i32
    %c0_i32_0 = arith.constant 0 : i32
    %c0_i32_1 = arith.constant 0 : i32
    return %c0_i32, %c0_i32_0 : i32, i32
  }
  func.func @transform_19(%arg0: i32) -> (i32, i32) {
    %c0_i32 = arith.constant 0 : i32
    %c0_i32_0 = arith.constant 0 : i32
    %c0_i32_1 = arith.constant 0 : i32
    return %c0_i32, %c0_i32_0 : i32, i32
  }
  func.func @transform_20(%arg0: i32) -> (i32, i32) {
    %c0_i32 = arith.constant 0 : i32
    %c0_i32_0 = arith.constant 0 : i32
    %c0_i32_1 = arith.constant 0 : i32
    return %c0_i32, %c0_i32_0 : i32, i32
  }
  func.func @transform_21(%arg0: i32) -> (i32, i32) {
    %c0_i32 = arith.constant 0 : i32
    %c0_i32_0 = arith.constant 0 : i32
    %c0_i32_1 = arith.constant 0 : i32
    return %c0_i32, %c0_i32_0 : i32, i32
  }
  func.func @transform_22(%arg0: i32) -> (i32, i32) {
    %c0_i32 = arith.constant 0 : i32
    %c0_i32_0 = arith.constant 0 : i32
    %c0_i32_1 = arith.constant 0 : i32
    return %c0_i32, %c0_i32_0 : i32, i32
  }
  func.func @transform_23(%arg0: i32) -> (i32, i32, i32) {
    %c0_i32 = arith.constant 0 : i32
    %c0_i32_0 = arith.constant 0 : i32
    %c0_i32_1 = arith.constant 0 : i32
    return %arg0, %c0_i32, %c0_i32_0 : i32, i32, i32
  }
}

</mosaic_0001>

<bundles_post_ra>
// kernel: tpu_custom_call.1
= control target key start
LH: loop header
LB: loop body
LE: loop exit
PB: predicated region body
PF: predicated region fallthrough
CT: control target
= control target key end

     0   :  { %s13606_s0 = inlined_call_operand.hbm [shape: f32[2,64,128], index: 0, kind: input, shape index: {}]   ;;  %s13607_s1 = inlined_call_operand.vmem [shape: f32[1,128], index: 1, kind: input, shape index: {}]   ;;  %s13608_s2 = inlined_call_operand.vmem [shape: f32[1,128], index: 2, kind: input, shape index: {}]   ;;  %s13609_s3 = inlined_call_operand.hbm [shape: f32[128,128], index: 3, kind: input, shape index: {}]   ;;  %s13610_s4 = inlined_call_operand.vmem [shape: f32[1,128], index: 4, kind: input, shape index: {}]   ;;  %s13611_s5 = inlined_call_operand.hbm [shape: f32[128,128], index: 5, kind: input, shape index: {}]   ;;  %s13612_s6 = inlined_call_operand.vmem [shape: f32[1,128], index: 6, kind: input, shape index: {}]   ;;  %s13613_s7 = inlined_call_operand.hbm [shape: f32[128,128], index: 7, kind: input, shape index: {}]   ;;  %s13614_s8 = inlined_call_operand.vmem [shape: f32[1,128], index: 8, kind: input, shape index: {}]   ;;  %s13615_s9 = inlined_call_operand.hbm [shape: f32[9,64,64], index: 9, kind: input, shape index: {}]   ;;  %s13616_s10 = inlined_call_operand.hbm [shape: f32[9,128], index: 10, kind: input, shape index: {}]   ;;  %s13617_s11 = inlined_call_operand.hbm [shape: f32[25,64,64], index: 11, kind: input, shape index: {}]   ;;  %s13618_s12 = inlined_call_operand.vmem [shape: f32[25,128], index: 12, kind: input, shape index: {}]   ;;  %s13619_s13 = inlined_call_operand.hbm [shape: f32[128,128], index: 13, kind: input, shape index: {}]   ;;  %s13620_s14 = inlined_call_operand.vmem [shape: f32[1,128], index: 14, kind: input, shape index: {}]   ;;  %s13621_s15 = inlined_call_operand.hbm [shape: f32[128,128], index: 15, kind: input, shape index: {}]   ;;  %s13622_s16 = inlined_call_operand.vmem [shape: f32[1,128], index: 16, kind: input, shape index: {}]   ;;  %s13623_s17 = inlined_call_operand.vmem [shape: f32[1,128], index: 17, kind: input, shape index: {}]   ;;  %s13624_s18 = inlined_call_operand.vmem [shape: f32[1,128], index: 18, kind: input, shape index: {}]   ;;  %s13625_s19 = inlined_call_operand.hbm [shape: f32[128,128], index: 19, kind: input, shape index: {}]   ;;  %s13626_s20 = inlined_call_operand.vmem [shape: f32[1,128], index: 20, kind: input, shape index: {}]   ;;  %s13627_s21 = inlined_call_operand.hbm [shape: f32[128,128], index: 21, kind: input, shape index: {}]   ;;  %s13628_s22 = inlined_call_operand.vmem [shape: f32[1,128], index: 22, kind: input, shape index: {}]   ;;  %s13629_s23 = inlined_call_operand.hbm [shape: f32[2,64,128], index: 23, kind: output, shape index: {}]  }
   0x1   :  { %13642 = sst [smem:[#allocation28_spill]] %s13606_s0 }
   0x2   :  { %13643 = sst [smem:[#allocation29_spill]] %s13607_s1 }
   0x3   :  { %13644 = sst [smem:[#allocation30_spill]] %s13608_s2 }
   0x4   :  { %13645 = sst [smem:[#allocation31_spill]] %s13609_s3 }
   0x5   :  { %13646 = sst [smem:[#allocation32_spill]] %s13610_s4 }
   0x6   :  { %13647 = sst [smem:[#allocation33_spill]] %s13611_s5 }
   0x7   :  { %13648 = sst [smem:[#allocation34_spill]] %s13612_s6 }
   0x8   :  { %13649 = sst [smem:[#allocation35_spill]] %s13613_s7 }
   0x9   :  { %13650 = sst [smem:[#allocation36_spill]] %s13614_s8 }
   0xa   :  { %13651 = sst [smem:[#allocation37_spill]] %s13616_s10 }
   0xb   :  { %13652 = sst [smem:[#allocation38_spill]] %s13618_s12 }
   0xc   :  { %13653 = sst [smem:[#allocation39_spill]] %s13620_s14 }
   0xd   :  { %13654 = sst [smem:[#allocation40_spill]] %s13622_s16 }
   0xe   :  { %13655 = sst [smem:[#allocation41_spill]] %s13623_s17 }
   0xf   :  { %13656 = sst [smem:[#allocation42_spill]] %s13624_s18 }
  0x10   :  { %13657 = sst [smem:[#allocation43_spill]] %s13626_s20 }
  0x11   :  { %13658 = sst [smem:[#allocation44_spill]] %s13628_s22 }
  0x12   :  { %13659 = sst [smem:[#allocation45_spill]] %s13629_s23 }
  0x13   :  { %28 = vsyncpa [#allocation3], 0 }
  0x14   :  { %30 = vsyncpa [#allocation3 + $0x1], 0 }
  0x15   :  { %31 = vsyncpa [#allocation6], 0 }
  0x16   :  { %32 = vsyncpa [#allocation9], 0 }
  0x17   :  { %33 = vsyncpa [#allocation12], 0 }
  0x18   :  { %34 = vsyncpa [#allocation15], 0 }
  0x19   :  { %35 = vsyncpa [#allocation18], 0 }
  0x1a   :  { %36 = vsyncpa [#allocation4], 0 }
  0x1b   :  { %38 = vsyncpa [#allocation4 + $0x1], 0  ;;  %s11954_s4 = smov 0   ;;  %s11956_s30 = smov 0  }
  0x1c   :  { %s11958_s24 = smov 0   ;;  %s11960_s25 = smov 0  }
  0x1d LB: > { %s11815_s5 = smov [#allocation5]   ;;  %s11975_s26 = sadd.s32 4294967295, %s11813_s25   ;;  %s11813_s25 = sphi %s11960_s25, %s13706_s25   ;;  %s11809_s24 = sphi %s11958_s24, %s13705_s24   ;;  %s11805_s30 = sphi %s11956_s30, %s13704_s30   ;;  %s11801_s4 = sphi %s11954_s4, %s13703_s4  }
  0x1e   : > { %s581_s1 = sshll.u32 %s11815_s5, 4  ;;  %p8059_p0 = scmp.ge.s32.totalorder %s11813_s25, 1  ;;  %s11980_s1 = int_to_ptr.vmem [resolvable:$true] %s581_s1 }
  0x1f   : > { %p13637_p1 = scmp.eq.s32.totalorder %s11975_s26, 0  ;;  %p563_p2 = scmp.lt.s32.totalorder %s11813_s25, 3 }
  0x20   : > { %s11816_s6 = smov [#allocation8]   ;;  %s11817_s28 = smov [#allocation11]  }
  0x21   : > { %p11982_p3 = pnand %p8059_p0, %p563_p2  ;;  %s613_s27 = sshll.u32 %s11816_s6, 4  ;;  %s11995_s27 = int_to_ptr.vmem [resolvable:$true] %s613_s27 }
  0x22   : > { %s642_s29 = sshll.u32 %s11817_s28, 4  ;;  %s13662_s5 = sld [smem:[#allocation31_spill]]  ;;  %s11997_s29 = int_to_ptr.vmem [resolvable:$true] %s642_s29 }
  0x23   : > { %s13660_s2 = scalar_select %p11982_p3, 1, 0 }
  0x24   : > { %p11195_p5 = pneg %p11982_p3 }
  0x26   : > { %p11991_p6 = pnand %p11195_p5, %p13637_p1 }
  0x28   : > { %s11417_s23 = scalar_lea.hbm %s13662_s5, 2048  ;;  %p12007_p8 = pneg %p11991_p6 }
  0x29   : > { %p11418_p7 = scmp.ne.s32.totalorder %s13662_s5, %s11417_s23  ;;  %p11424_p11 = scmp.lt.u32.totalorder %s11417_s23, %s13662_s5 }
  0x2b   : > { %p11420_p9 = pnand %p12007_p8, %p11418_p7 }
  0x2d   : > { %p11421_p10 = pneg %p11420_p9 }
  0x2f   : > { %p11426_p12 = pnand %p11424_p11, %p11421_p10 }
  0x31   : > { %11429 = shalt.err (!%p11426_p12)
}
  0x32   : > { %s11430_s20 = scalar_lea.vmem %s11980_s1, 2048  ;;  %p11438_p5 = scmp.lt.s32.totalorder %s11980_s1, %s11980_s1 }
  0x33   : > { %p11431_p13 = scmp.ne.s32.totalorder %s11980_s1, %s11430_s20  ;;  %p11439_p4 = scmp.lt.s32.totalorder %s11430_s20, %s11430_s20 }
  0x35   : > { %p11433_p0 = pnand %p11431_p13, %p12007_p8  ;;  %p11440_p7 = por %p11439_p4, %p11438_p5 }
  0x37   : > { %p11434_p2 = pneg %p11433_p0 }
  0x39   : > { %p11441_p9 = pnand %p11440_p7, %p11434_p2 }
  0x3b   : > { %11444 = shalt.err (!%p11441_p9)
}
  0x3c   : > { %s13639_s22 = smov 128   ;;  %s13640_s18 = smov 8  }
  0x3d   : > { %11198 = dma.hbm_to_vmem [thread:$0]  (!%p11991_p6), %s13662_s5, 2048, %s11980_s1, [#allocation6], %s13639_s22, %s13639_s22, %s13640_s18  }
  0x3e   : > { %s13664_s17 = sld [smem:[#allocation35_spill]] }
  0x44   : > { %s11445_s20 = scalar_lea.hbm %s13664_s17, 2048 }
  0x45   : > { %p11446_p4 = scmp.ne.s32.totalorder %s13664_s17, %s11445_s20  ;;  %p11452_p12 = scmp.lt.u32.totalorder %s11445_s20, %s13664_s17 }
  0x47   : > { %p11448_p10 = pnand %p11446_p4, %p12007_p8 }
  0x49   : > { %p11449_p11 = pneg %p11448_p10 }
  0x4b   : > { %p11454_p13 = pnand %p11452_p12, %p11449_p11 }
  0x4d   : > { %11457 = shalt.err (!%p11454_p13)
}
  0x4e   : > { %s11458_s1 = scalar_lea.vmem %s11995_s27, 2048  ;;  %p11466_p7 = scmp.lt.s32.totalorder %s11995_s27, %s11995_s27 }
  0x4f   : > { %p11459_p0 = scmp.ne.s32.totalorder %s11995_s27, %s11458_s1  ;;  %p11467_p9 = scmp.lt.s32.totalorder %s11458_s1, %s11458_s1 }
  0x51   : > { %p11461_p2 = pnand %p11459_p0, %p12007_p8  ;;  %p11468_p4 = por %p11467_p9, %p11466_p7 }
  0x53   : > { %p11462_p5 = pneg %p11461_p2 }
  0x55   : > { %p11469_p10 = pnand %p11468_p4, %p11462_p5 }
  0x57   : > { %11472 = shalt.err (!%p11469_p10)
}
  0x58   : > { %11204 = dma.hbm_to_vmem [thread:$0]  (!%p11991_p6), %s13664_s17, 2048, %s11995_s27, [#allocation9], %s13639_s22, %s13639_s22, %s13640_s18  }
  0x59   : > { %s13665_s10 = sld [smem:[#allocation37_spill]] }
  0x5f   : > { %s11473_s23 = scalar_lea.hbm %s13665_s10, 256 }
  0x60   : > { %p11474_p11 = scmp.ne.s32.totalorder %s13665_s10, %s11473_s23  ;;  %p11480_p0 = scmp.lt.u32.totalorder %s11473_s23, %s13665_s10 }
  0x62   : > { %p11476_p12 = pnand %p11474_p11, %p12007_p8 }
  0x64   : > { %p11477_p13 = pneg %p11476_p12 }
  0x66   : > { %p11482_p2 = pnand %p11480_p0, %p11477_p13 }
  0x68   : > { %11485 = shalt.err (!%p11482_p2)
}
  0x69   : > { %s11486_s27 = scalar_lea.vmem %s11997_s29, 256  ;;  %p11494_p4 = scmp.lt.s32.totalorder %s11997_s29, %s11997_s29 }
  0x6a   : > { %p11487_p5 = scmp.ne.s32.totalorder %s11997_s29, %s11486_s27  ;;  %p11495_p10 = scmp.lt.s32.totalorder %s11486_s27, %s11486_s27 }
  0x6c   : > { %p11489_p7 = pnand %p11487_p5, %p12007_p8  ;;  %p11496_p11 = por %p11495_p10, %p11494_p4 }
  0x6e   : > { %p11490_p9 = pneg %p11489_p7 }
  0x70   : > { %p11497_p12 = pnand %p11496_p11, %p11490_p9 }
  0x72   : > { %11500 = shalt.err (!%p11497_p12)
}
  0x73   : > { %11210 = dma.hbm_to_vmem [thread:$0]  (!%p11991_p6), %s13665_s10, 256, %s11997_s29, [#allocation12], %s13639_s22, %s13639_s22, %s13640_s18  }
  0x74   : > { %s11820_s12 = smov [#allocation14]   ;;  %s11821_s16 = smov [#allocation17]  }
  0x75   : > { %s671_s14 = sshll.u32 %s11820_s12, 4  ;;  %s709_s23 = sshll.u32 %s11821_s16, 4  ;;  %s672_s14 = int_to_ptr.vmem [resolvable:$true] %s671_s14  ;;  %s710_s23 = int_to_ptr.vmem [resolvable:$true] %s709_s23 }
  0x76   : > { %s11501_s28 = scalar_lea.hbm %s13619_s13, 2048 }
  0x77   : > { %p11502_p13 = scmp.ne.s32.totalorder %s13619_s13, %s11501_s28  ;;  %p11508_p5 = scmp.lt.u32.totalorder %s11501_s28, %s13619_s13 }
  0x79   : > { %p11504_p0 = pnand %p11502_p13, %p12007_p8 }
  0x7b   : > { %p11505_p2 = pneg %p11504_p0 }
  0x7d   : > { %p11510_p7 = pnand %p11508_p5, %p11505_p2 }
  0x7f   : > { %11513 = shalt.err (!%p11510_p7)
}
  0x80   : > { %s11514_s29 = scalar_lea.vmem %s672_s14, 2048  ;;  %p11522_p11 = scmp.lt.s32.totalorder %s672_s14, %s672_s14 }
  0x81   : > { %p11515_p9 = scmp.ne.s32.totalorder %s672_s14, %s11514_s29  ;;  %p11523_p12 = scmp.lt.s32.totalorder %s11514_s29, %s11514_s29 }
  0x83   : > { %p11517_p4 = pnand %p11515_p9, %p12007_p8  ;;  %p11524_p1 = por %p11523_p12, %p11522_p11 }
  0x85   : > { %p11518_p10 = pneg %p11517_p4 }
  0x87   : > { %p11525_p3 = pnand %p11524_p1, %p11518_p10 }
  0x89   : > { %11528 = shalt.err (!%p11525_p3)
}
  0x8a   : > { %11216 = dma.hbm_to_vmem [thread:$0]  (!%p11991_p6), %s13619_s13, 2048, %s672_s14, [#allocation15], %s13639_s22, %s13639_s22, %s13640_s18  }
  0x8b   : > { %s11529_s3 = scalar_lea.hbm %s13625_s19, 2048 }
  0x8c   : > { %p11530_p1 = scmp.ne.s32.totalorder %s13625_s19, %s11529_s3  ;;  %p11536_p0 = scmp.lt.u32.totalorder %s11529_s3, %s13625_s19 }
  0x8e   : > { %p11532_p3 = pnand %p11530_p1, %p12007_p8 }
  0x90   : > { %p11533_p13 = pneg %p11532_p3 }
  0x92   : > { %p11538_p2 = pnand %p11536_p0, %p11533_p13 }
  0x94   : > { %11541 = shalt.err (!%p11538_p2)
}
  0x95   : > { %s11542_s1 = scalar_lea.vmem %s710_s23, 2048  ;;  %p11550_p4 = scmp.lt.s32.totalorder %s710_s23, %s710_s23 }
  0x96   : > { %p11543_p5 = scmp.ne.s32.totalorder %s710_s23, %s11542_s1  ;;  %p11551_p10 = scmp.lt.s32.totalorder %s11542_s1, %s11542_s1 }
  0x98   : > { %p11545_p7 = pnand %p11543_p5, %p12007_p8  ;;  %p11552_p11 = por %p11551_p10, %p11550_p4 }
  0x9a   : > { %p11546_p9 = pneg %p11545_p7 }
  0x9c   : > { %p11553_p12 = pnand %p11552_p11, %p11546_p9 }
  0x9e   : > { %11556 = shalt.err (!%p11553_p12)
}
  0x9f   : > { %11222 = dma.hbm_to_vmem [thread:$0]  (!%p11991_p6), %s13625_s19, 2048, %s710_s23, [#allocation18], %s13639_s22, %s13639_s22, %s13640_s18  }
  0xa0   : > { %s11822_s5 = smov [#allocation7]   ;;  %s11823_s12 = smov [#allocation10]  }
  0xa1   : > { %s597_s8 = sshll.u32 %s11822_s5, 4  ;;  %s629_s16 = sshll.u32 %s11823_s12, 4  ;;  %s598_s8 = int_to_ptr.vmem [resolvable:$true] %s597_s8  ;;  %s630_s16 = int_to_ptr.vmem [resolvable:$true] %s629_s16 }
  0xa2   : > { %s13666_s28 = sld [smem:[#allocation33_spill]] }
  0xa8   : > { %s11557_s20 = scalar_lea.hbm %s13666_s28, 2048 }
  0xa9   : > { %p11558_p1 = scmp.ne.s32.totalorder %s13666_s28, %s11557_s20  ;;  %p11564_p0 = scmp.lt.u32.totalorder %s11557_s20, %s13666_s28 }
  0xab   : > { %p11560_p3 = pnand %p11558_p1, %p12007_p8 }
  0xad   : > { %p11561_p13 = pneg %p11560_p3 }
  0xaf   : > { %p11566_p2 = pnand %p11564_p0, %p11561_p13 }
  0xb1   : > { %11569 = shalt.err (!%p11566_p2)
}
  0xb2   : > { %s11570_s23 = scalar_lea.vmem %s598_s8, 2048  ;;  %p11578_p4 = scmp.lt.s32.totalorder %s598_s8, %s598_s8 }
  0xb3   : > { %p11571_p5 = scmp.ne.s32.totalorder %s598_s8, %s11570_s23  ;;  %p11579_p10 = scmp.lt.s32.totalorder %s11570_s23, %s11570_s23 }
  0xb5   : > { %p11573_p7 = pnand %p11571_p5, %p12007_p8  ;;  %p11580_p11 = por %p11579_p10, %p11578_p4 }
  0xb7   : > { %p11574_p9 = pneg %p11573_p7 }
  0xb9   : > { %p11581_p12 = pnand %p11580_p11, %p11574_p9 }
  0xbb   : > { %11584 = shalt.err (!%p11581_p12)
}
  0xbc   : > { %11201 = dma.hbm_to_vmem [thread:$0]  (!%p11991_p6), %s13666_s28, 2048, %s598_s8, [#allocation6], %s13639_s22, %s13639_s22, %s13640_s18  }
  0xbd   : > { %s11585_s3 = scalar_lea.hbm %s13615_s9, 9216 }
  0xbe   : > { %p11586_p1 = scmp.ne.s32.totalorder %s13615_s9, %s11585_s3  ;;  %p11592_p0 = scmp.lt.u32.totalorder %s11585_s3, %s13615_s9 }
  0xc0   : > { %p11588_p3 = pnand %p11586_p1, %p12007_p8 }
  0xc2   : > { %p11589_p13 = pneg %p11588_p3 }
  0xc4   : > { %p11594_p2 = pnand %p11592_p0, %p11589_p13 }
  0xc6   : > { %11597 = shalt.err (!%p11594_p2)
}
  0xc7   : > { %s11598_s14 = scalar_lea.vmem %s630_s16, 9216  ;;  %p11606_p4 = scmp.lt.s32.totalorder %s630_s16, %s630_s16 }
  0xc8   : > { %p11599_p5 = scmp.ne.s32.totalorder %s630_s16, %s11598_s14  ;;  %p11607_p10 = scmp.lt.s32.totalorder %s11598_s14, %s11598_s14 }
  0xca   : > { %p11601_p7 = pnand %p11599_p5, %p12007_p8  ;;  %p11608_p11 = por %p11607_p10, %p11606_p4 }
  0xcc   : > { %p11602_p9 = pneg %p11601_p7 }
  0xce   : > { %p11609_p12 = pnand %p11608_p11, %p11602_p9 }
  0xd0   : > { %11612 = shalt.err (!%p11609_p12)
}
  0xd1   : > { %11207 = dma.hbm_to_vmem [thread:$0]  (!%p11991_p6), %s13615_s9, 9216, %s630_s16, [#allocation9], %s13639_s22, %s13639_s22, %s13640_s18  }
  0xd2   : > { %s11824_s10 = smov [#allocation13]   ;;  %s11825_s5 = smov [#allocation16]  }
  0xd3   : > { %s655_s29 = sshll.u32 %s11824_s10, 4  ;;  %s687_s12 = sshll.u32 %s11825_s5, 4  ;;  %s656_s29 = int_to_ptr.vmem [resolvable:$true] %s655_s29  ;;  %s688_s12 = int_to_ptr.vmem [resolvable:$true] %s687_s12 }
  0xd4   : > { %s11613_s20 = scalar_lea.hbm %s13617_s11, 25600 }
  0xd5   : > { %p11614_p1 = scmp.ne.s32.totalorder %s13617_s11, %s11613_s20  ;;  %p11620_p0 = scmp.lt.u32.totalorder %s11613_s20, %s13617_s11 }
  0xd7   : > { %p11616_p3 = pnand %p11614_p1, %p12007_p8 }
  0xd9   : > { %p11617_p13 = pneg %p11616_p3 }
  0xdb   : > { %p11622_p2 = pnand %p11620_p0, %p11617_p13 }
  0xdd   : > { %11625 = shalt.err (!%p11622_p2)
}
  0xde   : > { %s11626_s16 = scalar_lea.vmem %s656_s29, 25600  ;;  %p11634_p4 = scmp.lt.s32.totalorder %s656_s29, %s656_s29 }
  0xdf   : > { %p11627_p5 = scmp.ne.s32.totalorder %s656_s29, %s11626_s16  ;;  %p11635_p10 = scmp.lt.s32.totalorder %s11626_s16, %s11626_s16 }
  0xe1   : > { %p11629_p7 = pnand %p11627_p5, %p12007_p8  ;;  %p11636_p11 = por %p11635_p10, %p11634_p4 }
  0xe3   : > { %p11630_p9 = pneg %p11629_p7 }
  0xe5   : > { %p11637_p12 = pnand %p11636_p11, %p11630_p9 }
  0xe7   : > { %11640 = shalt.err (!%p11637_p12)
}
  0xe8   : > { %11213 = dma.hbm_to_vmem [thread:$0]  (!%p11991_p6), %s13617_s11, 25600, %s656_s29, [#allocation12], %s13639_s22, %s13639_s22, %s13640_s18  }
  0xe9   : > { %s11641_s0 = scalar_lea.hbm %s13621_s15, 2048 }
  0xea   : > { %p11642_p1 = scmp.ne.s32.totalorder %s13621_s15, %s11641_s0  ;;  %p11648_p0 = scmp.lt.u32.totalorder %s11641_s0, %s13621_s15 }
  0xec   : > { %p11644_p3 = pnand %p11642_p1, %p12007_p8 }
  0xee   : > { %p11645_p13 = pneg %p11644_p3 }
  0xf0   : > { %p11650_p2 = pnand %p11648_p0, %p11645_p13 }
  0xf2   : > { %11653 = shalt.err (!%p11650_p2)
}
  0xf3   : > { %s11654_s8 = scalar_lea.vmem %s688_s12, 2048  ;;  %p11662_p4 = scmp.lt.s32.totalorder %s688_s12, %s688_s12 }
  0xf4   : > { %p11655_p5 = scmp.ne.s32.totalorder %s688_s12, %s11654_s8  ;;  %p11663_p10 = scmp.lt.s32.totalorder %s11654_s8, %s11654_s8 }
  0xf6   : > { %p11657_p7 = pnand %p11655_p5, %p12007_p8  ;;  %p11664_p11 = por %p11663_p10, %p11662_p4 }
  0xf8   : > { %p11658_p9 = pneg %p11657_p7 }
  0xfa   : > { %p11665_p12 = pnand %p11664_p11, %p11658_p9 }
  0xfc   : > { %11668 = shalt.err (!%p11665_p12)
}
  0xfd   : > { %11219 = dma.hbm_to_vmem [thread:$0]  (!%p11991_p6), %s13621_s15, 2048, %s688_s12, [#allocation15], %s13639_s22, %s13639_s22, %s13640_s18  }
  0xfe   : > { %s11826_s23 = smov [#allocation19]   ;;  %s11669_s0 = scalar_lea.hbm %s13627_s21, 2048 }
  0xff   : > { %s725_s10 = sshll.u32 %s11826_s23, 4  ;;  %p11670_p1 = scmp.ne.s32.totalorder %s13627_s21, %s11669_s0  ;;  %s726_s10 = int_to_ptr.vmem [resolvable:$true] %s725_s10 }
 0x100   : > { %p11676_p0 = scmp.lt.u32.totalorder %s11669_s0, %s13627_s21 }
 0x101   : > { %p11672_p3 = pnand %p11670_p1, %p12007_p8 }
 0x103   : > { %p11673_p13 = pneg %p11672_p3 }
 0x105   : > { %p11678_p2 = pnand %p11676_p0, %p11673_p13 }
 0x107   : > { %11681 = shalt.err (!%p11678_p2)
}
 0x108   : > { %s11682_s12 = scalar_lea.vmem %s726_s10, 2048  ;;  %p11690_p4 = scmp.lt.s32.totalorder %s726_s10, %s726_s10 }
 0x109   : > { %p11683_p5 = scmp.ne.s32.totalorder %s726_s10, %s11682_s12  ;;  %p11691_p10 = scmp.lt.s32.totalorder %s11682_s12, %s11682_s12 }
 0x10b   : > { %p11685_p7 = pnand %p11683_p5, %p12007_p8  ;;  %p11692_p11 = por %p11691_p10, %p11690_p4 }
 0x10d   : > { %p11686_p9 = pneg %p11685_p7 }
 0x10f   : > { %p11693_p12 = pnand %p11692_p11, %p11686_p9 }
 0x111   : > { %11696 = shalt.err (!%p11693_p12)
}
 0x112   : > { %11225 = dma.hbm_to_vmem [thread:$0]  (!%p11991_p6), %s13627_s21, 2048, %s726_s10, [#allocation18], %s13639_s22, %s13639_s22, %s13640_s18  }
 0x113   : > { %s8058_s7 = sadd.s32 4294967294, %s11813_s25   ;;  %s12232_s6 = sadd.s32 1, %s11813_s25  }
 0x114   : > { %s48_s16 = ssub.s32 %s11813_s25, %s12232_s6  ;;  %s51_s23 = sadd.s32 1, %s11809_s24 }
 0x115   : > { %p49_p8 = scmp.eq.s32.totalorder %s48_s16, 0  ;;  %p58_p1 = scmp.ne.s32.totalorder %s11809_s24, %s11805_s30 }
 0x116   : > { %p59_p3 = scmp.eq.s32.totalorder %s11813_s25, 0  ;;  %p64_p13 = scmp.ne.s32.totalorder %s11805_s30, %s11801_s4 }
 0x117   : > { %s12243_s5 = scalar_select %p49_p8, %s11809_s24, %s51_s23  }
 0x118   : > { %p12245_p0 = por %p59_p3, %p58_p1  ;;  %p13668_p2 = scmp.eq.s32.totalorder %s11975_s26, 0 }
 0x119   : > { %p550_p5 = scmp.eq.s32.totalorder %s11975_s26, 1  ;;  %p556_p7 = scmp.eq.s32.totalorder %s8058_s7, 1 }
 0x11a   : > { %p12251_p6 = por %p13668_p2, %p64_p13  ;;  %p11244_p9 = scmp.lt.s32.totalorder %s11813_s25, 2 }
 0x11b   : > { %s742_s0 = sand.u32 1, %s11809_s24   ;;  %p12258_p4 = por %p550_p5, %p58_p1 }
 0x11c   : > { %p12262_p10 = por %p556_p7, %p64_p13  ;;  %s8071_s1 = sshll.u32 %s742_s0, 6 }
 0x11d   : > { %s13670_s20 = scalar_select %p12258_p4, 1, 0 }
 0x11e   : > { %s13671_s27 = scalar_select %p12262_p10, 1, 0 }
 0x11f   : > { %s8409_s14 = sshll.u32 %s11813_s25, 10  ;;  %s13672_s29 = sld [smem:[#allocation28_spill]] }
 0x120   : > { %s746_s7 = scalar_lea.vmem [#allocation2], %s8071_s1  ;;  %p12276_p11 = pnand %p11244_p9, %p12245_p0 }
 0x121   : > { %s753_s23 = sshll.u32 %s746_s7, 4  ;;  %s12280_s18 = scalar_lea.sflag [#allocation3], %s742_s0  ;;  %s12272_s23 = int_to_ptr.vmem [resolvable:$true] %s753_s23 }
 0x122   : > { %p11699_p8 = pneg %p12276_p11 }
 0x125   : > { %s12270_s16 = scalar_lea.hbm %s13672_s29, %s8409_s14  ;;  %s11702_s3 = scalar_lea.hbm %s13672_s29, 2048 }
 0x126   : > { %s11697_s12 = scalar_lea.hbm %s12270_s16, 1024  ;;  %p11703_p13 = scmp.lt.u32.totalorder %s12270_s16, %s13672_s29 }
 0x127   : > { %p11698_p12 = scmp.ne.s32.totalorder %s12270_s16, %s11697_s12  ;;  %p11704_p0 = scmp.lt.u32.totalorder %s11702_s3, %s11697_s12 }
 0x128   : > { %p11706_p5 = scmp.lt.u32.totalorder %s11697_s12, %s12270_s16 }
 0x129   : > { %p11700_p1 = pnand %p11699_p8, %p11698_p12  ;;  %p11705_p2 = por %p11704_p0, %p11703_p13 }
 0x12b   : > { %p11701_p3 = pneg %p11700_p1  ;;  %p11707_p7 = por %p11706_p5, %p11705_p2 }
 0x12d   : > { %p11708_p9 = pnand %p11707_p7, %p11701_p3 }
 0x12f   : > { %11711 = shalt.err (!%p11708_p9)
}
 0x130   : > { %s11712_s0 = scalar_lea.vmem %s12272_s23, 1024  ;;  %s11827_s1 = smov [#allocation2]  }
 0x131   : > { %p11713_p12 = scmp.ne.s32.totalorder %s12272_s23, %s11712_s0  ;;  %s11717_s14 = sshll.u32 %s11827_s1, 4  ;;  %s11718_s14 = int_to_ptr.vmem [resolvable:$false] %s11717_s14 }
 0x132   : > { %s11719_s8 = scalar_lea.vmem %s11718_s14, 2048  ;;  %p11720_p4 = scmp.lt.s32.totalorder %s12272_s23, %s11718_s14 }
 0x133   : > { %p11715_p1 = pnand %p11713_p12, %p11699_p8  ;;  %p11721_p13 = scmp.lt.s32.totalorder %s11719_s8, %s11712_s0 }
 0x135   : > { %p11716_p10 = pneg %p11715_p1  ;;  %p11722_p0 = por %p11721_p13, %p11720_p4 }
 0x137   : > { %p11723_p2 = pnand %p11722_p0, %p11716_p10 }
 0x139   : > { %11726 = shalt.err (!%p11723_p2)
}
 0x13a   : > { %s13674_s12 = smov 8   ;;  %s13675_s3 = smov 128  }
 0x13b   : > { %11229 = dma.hbm_to_vmem [thread:$0]  (!%p12276_p11), %s12270_s16, 1024, %s12272_s23, %s12280_s18, %s13675_s3, %s13675_s3, %s13674_s12  }
 0x13c   : > { %p13676_p8 = scmp.ne.s32.totalorder %s13660_s2, 0 }
 0x13d   : > { %s12314_s7 = sand.u32 (!%p13676_p8), 1, %s11805_s30  }
 0x13e   : > { %765 = sbr.rel (%p13676_p8) target bundleno = 2698 (0xa8a), region = 112  ;;  %s8075_s0 = sshll.u32 (!%p13676_p8), %s12314_s7, 6 }
 0x13f   : > { %s768_s1 = scalar_lea.sflag (!%p13676_p8), [#allocation3], %s12314_s7  ;;  %s12320_s22 = scalar_lea.vmem (!%p13676_p8), [#allocation2], %s8075_s0 }
 0x145   : > { %11772 = dma.done.wait (%p12251_p6), %s768_s1, 1024  }
 0x146   : > { %11774 = vsyncadd (%p12251_p6), %s768_s1, 4294966272  ;;  %p13677_p4 = scmp.eq.s32.totalorder %s11975_s26, 0 }
 0x148   : > { %11776 = dma.done.wait (%p13677_p4), [#allocation6], 4096   ;;  %p13678_p10 = pmov %p13677_p4 }
 0x149   : > { %p13679_p11 = pmov %p13677_p4 }
 0x14a   : > { %11778 = vsyncadd (%p13678_p10), [#allocation6], 4294963200 }
 0x14b   : > { %11780 = dma.done.wait (%p13679_p11), [#allocation9], 11264   ;;  %p13680_p3 = pmov %p13677_p4 }
 0x14d   : > { %11782 = vsyncadd (%p13680_p3), [#allocation9], 4294956032  ;;  %p13681_p5 = pmov %p13680_p3 }
 0x14e   : > { %p13682_p7 = pmov %p13680_p3 }
 0x14f   : > { %11784 = dma.done.wait (%p13681_p5), [#allocation12], 25856  }
 0x150   : > { %11786 = vsyncadd (%p13682_p7), [#allocation12], 4294941440  ;;  %p13683_p6 = pmov %p13680_p3 }
 0x151   : > { %p13684_p9 = pmov %p13680_p3 }
 0x152   : > { %11788 = dma.done.wait (%p13683_p6), [#allocation15], 4096  }
 0x153   : > { %11790 = vsyncadd (%p13684_p9), [#allocation15], 4294963200  ;;  %p13685_p12 = pmov %p13680_p3 }
 0x154   : > { %p13686_p1 = pmov %p13680_p3 }
 0x155   : > { %11792 = dma.done.wait (%p13685_p12), [#allocation18], 4096  }
 0x156   : > { %11794 = vsyncadd (%p13686_p1), [#allocation18], 4294963200  ;;  %v12347_v0 = vld [vmem:[%s12320_s22 + $0x18] sm:$0xff]  ;;  %v12350_v1 = vld [vmem:[%s12320_s22] sm:$0xff]  ;;  %s13687_s10 = sld [smem:[#allocation29_spill]]  ;;  %s13688_s14 = sld [smem:[#allocation30_spill]] }
 0x157   : > { %890 = vadd.xlane.f32.xlu1 %v12347_v0  ;;  %884 = vadd.xlane.f32.xlu0 %v12350_v1  ;;  %v900_v2 = vmul.f32 %v12350_v1, %v12350_v1  ;;  %v12357_v3 = vld [vmem:[%s12320_s22 + $0x8] sm:$0xff]  ;;  %v1017_v4 = vld [vmem:[#allocation5] sm:$0xff]  ;;  %v12363_v11 = vld [vmem:[%s12320_s22 + $0x10] sm:$0xff]  ;;  %v903_v13 = vmul.f32 %v12347_v0, %v12347_v0  ;;  %vm1409_vm0 = vcmask 523264   ;;  %s13689_s3 = sld [smem:[#allocation34_spill]]  ;;  %s13690_s18 = sld [smem:[#allocation36_spill]] }
 0x158   : > { %v1018_v5 = vld [vmem:[#allocation5 + $0x8] sm:$0xff]  ;;  %v1145_v6 = vld [vmem:[#allocation7] sm:$0xff]  ;;  %v901_v10 = vmul.f32 %v12357_v3, %v12357_v3  ;;  %v902_v12 = vmul.f32 %v12363_v11, %v12363_v11  ;;  %v1019_v16 = vld [vmem:[#allocation5 + $0x10] sm:$0xff]  ;;  %s13691_s23 = sld [smem:[#allocation38_spill]]  ;;  %s13692_s2 = sld [smem:[#allocation32_spill]] }
 0x159   : > { %v1146_v7 = vld [vmem:[#allocation7 + $0x8] sm:$0xff]  ;;  %v10383_v8 = vpack.c.bf16 %v1018_v5, %v1017_v4  ;;  %v12371_v14 = vld [vmem:[%s12320_s22 + $0x20] sm:$0xff]  ;;  %v1020_v17 = vld [vmem:[#allocation5 + $0x18] sm:$0xff]  ;;  %s13693_s16 = sld [smem:[#allocation39_spill]]  ;;  %s13694_s12 = sld [smem:[#allocation40_spill]] }
 0x15a   : > { %v10415_v9 = vpack.c.bf16 %v1146_v7, %v1145_v6  ;;  %v12374_v15 = vld [vmem:[%s12320_s22 + $0x28] sm:$0xff]  ;;  %v10387_v18 = vpack.c.bf16 %v1020_v17, %v1019_v16  ;;  %v1147_v19 = vld [vmem:[#allocation7 + $0x10] sm:$0xff]  ;;  %v1148_v20 = vld [vmem:[#allocation7 + $0x18] sm:$0xff]  ;;  %v904_v22 = vmul.f32 %v12371_v14, %v12371_v14  ;;  %s13695_s1 = sld [smem:[#allocation41_spill]]  ;;  %s13697_s8 = sld [smem:[#allocation43_spill]] }
 0x15b   : > { %886 = vadd.xlane.f32.xlu0 %v12357_v3  ;;  %908 = vadd.xlane.f32.xlu1 %v900_v2  ;;  %v10419_v21 = vpack.c.bf16 %v1148_v20, %v1147_v19  ;;  %v905_v23 = vmul.f32 %v12374_v15, %v12374_v15  ;;  %v1021_v24 = vld [vmem:[#allocation5 + $0x20] sm:$0xff]  ;;  %v1022_v25 = vld [vmem:[#allocation5 + $0x28] sm:$0xff]  ;;  %v12383_v30 = vld [vmem:[%s12320_s22 + $0x30] sm:$0xff]  ;;  %p13700_p0 = scmp.ne.s32.totalorder %s13670_s20, 0 }
 0x15c   : > { %10384 = vmatprep.subr.bf16.mxu0 %v10383_v8  ;;  %10416 = vmatprep.subr.bf16.mxu1 %v10415_v9  ;;  %v10391_v26 = vpack.c.bf16 %v1022_v25, %v1021_v24  ;;  %v1149_v27 = vld [vmem:[#allocation7 + $0x20] sm:$0xff]  ;;  %v1150_v28 = vld [vmem:[#allocation7 + $0x28] sm:$0xff]  ;;  %v12386_v31 = vld [vmem:[%s12320_s22 + $0x38] sm:$0xff]  ;;  %v906_v38 = vmul.f32 %v12383_v30, %v12383_v30 }
 0x15d   : > { %10386 = vmatpush3.bf16.msra.mxu0 %v10383_v8  ;;  %10418 = vmatpush3.bf16.msra.mxu1 %v10415_v9  ;;  %v10423_v29 = vpack.c.bf16 %v1150_v28, %v1149_v27  ;;  %v1023_v32 = vld [vmem:[#allocation5 + $0x30] sm:$0xff]  ;;  %v1024_v33 = vld [vmem:[#allocation5 + $0x38] sm:$0xff]  ;;  %v907_v39 = vmul.f32 %v12386_v31, %v12386_v31  ;;  %v1025_v40 = vld [vmem:[#allocation5 + $0x40] sm:$0xff] }
 0x15e   : > { %10388 = vmatprep.subr.bf16.mxu0 %v10387_v18  ;;  %10420 = vmatprep.subr.bf16.mxu1 %v10419_v21  ;;  %v10395_v34 = vpack.c.bf16 %v1024_v33, %v1023_v32  ;;  %v1151_v35 = vld [vmem:[#allocation7 + $0x30] sm:$0xff]  ;;  %v1152_v36 = vld [vmem:[#allocation7 + $0x38] sm:$0xff]  ;;  %v1026_v41 = vld [vmem:[#allocation5 + $0x48] sm:$0xff] }
 0x15f   : > { %888 = vadd.xlane.f32.xlu0 %v12363_v11  ;;  %910 = vadd.xlane.f32.xlu1 %v901_v10  ;;  %v10427_v37 = vpack.c.bf16 %v1152_v36, %v1151_v35  ;;  %v10399_v42 = vpack.c.bf16 %v1026_v41, %v1025_v40  ;;  %v1153_v43 = vld [vmem:[#allocation7 + $0x40] sm:$0xff]  ;;  %v1154_v44 = vld [vmem:[#allocation7 + $0x48] sm:$0xff]  ;;  %v1027_v46 = vld [vmem:[#allocation5 + $0x50] sm:$0xff] }
 0x160   : > { %v10431_v45 = vpack.c.bf16 %v1154_v44, %v1153_v43  ;;  %v1028_v47 = vld [vmem:[#allocation5 + $0x58] sm:$0xff]  ;;  %v1155_v49 = vld [vmem:[#allocation7 + $0x50] sm:$0xff]  ;;  %v1029_v52 = vld [vmem:[#allocation5 + $0x60] sm:$0xff] }
 0x161   : > { %10390 = vmatpush3.bf16.msra.mxu0 %v10387_v18  ;;  %10422 = vmatpush3.bf16.msra.mxu1 %v10419_v21  ;;  %v10403_v48 = vpack.c.bf16 %v1028_v47, %v1027_v46  ;;  %v1156_v50 = vld [vmem:[#allocation7 + $0x58] sm:$0xff]  ;;  %v1030_v53 = vld [vmem:[#allocation5 + $0x68] sm:$0xff]  ;;  %v1157_v55 = vld [vmem:[#allocation7 + $0x60] sm:$0xff] }
 0x162   : > { %10392 = vmatprep.subr.bf16.mxu0 %v10391_v26  ;;  %10424 = vmatprep.subr.bf16.mxu1 %v10423_v29  ;;  %v10435_v51 = vpack.c.bf16 %v1156_v50, %v1155_v49  ;;  %v10407_v54 = vpack.c.bf16 %v1030_v53, %v1029_v52  ;;  %v1158_v56 = vld [vmem:[#allocation7 + $0x68] sm:$0xff]  ;;  %v1031_v58 = vld [vmem:[#allocation5 + $0x70] sm:$0xff]  ;;  %v1032_v59 = vld [vmem:[#allocation5 + $0x78] sm:$0xff] }
 0x163   : > { %912 = vadd.xlane.f32.xlu0 %v902_v12  ;;  %914 = vadd.xlane.f32.xlu1 %v903_v13  ;;  %v10439_v57 = vpack.c.bf16 %v1158_v56, %v1157_v55  ;;  %v10411_v60 = vpack.c.bf16 %v1032_v59, %v1031_v58  ;;  %v1159_v61 = vld [vmem:[#allocation7 + $0x70] sm:$0xff]  ;;  %v1160_v62 = vld [vmem:[#allocation7 + $0x78] sm:$0xff]  ;;  %v1273_v2 = vld [vmem:[#allocation8] sm:$0xff] }
 0x164   : > { %v10443_v63 = vpack.c.bf16 %v1160_v62, %v1159_v61  ;;  %v1274_v4 = vld [vmem:[#allocation8 + $0x8] sm:$0xff] }
 0x165   : > { %10394 = vmatpush3.bf16.msra.mxu0 %v10391_v26  ;;  %10426 = vmatpush3.bf16.msra.mxu1 %v10423_v29  ;;  %v12394_v5 = vpack.c.bf16 %v1274_v4, %v1273_v2 }
 0x166   : > { %10396 = vmatprep.subr.bf16.mxu0 %v10395_v34  ;;  %10428 = vmatprep.subr.bf16.mxu1 %v10427_v37 }
 0x167   : > { %892 = vadd.xlane.f32.xlu0 %v12371_v14  ;;  %894 = vadd.xlane.f32.xlu1 %v12374_v15 }
 0x169   : > { %10398 = vmatpush3.bf16.msra.mxu0 %v10395_v34  ;;  %10430 = vmatpush3.bf16.msra.mxu1 %v10427_v37 }
 0x16a   : > { %10400 = vmatprep.subr.bf16.mxu0 %v10399_v42  ;;  %10432 = vmatprep.subr.bf16.mxu1 %v10431_v45 }
 0x16b   : > { %916 = vadd.xlane.f32.xlu0 %v904_v22  ;;  %918 = vadd.xlane.f32.xlu1 %v905_v23 }
 0x16d   : > { %10402 = vmatpush3.bf16.msra.mxu0 %v10399_v42  ;;  %10434 = vmatpush3.bf16.msra.mxu1 %v10431_v45 }
 0x16e   : > { %10404 = vmatprep.subr.bf16.mxu0 %v10403_v48  ;;  %10436 = vmatprep.subr.bf16.mxu1 %v10435_v51 }
 0x16f   : > { %896 = vadd.xlane.f32.xlu0 %v12383_v30  ;;  %898 = vadd.xlane.f32.xlu1 %v12386_v31 }
 0x171   : > { %10406 = vmatpush3.bf16.msra.mxu0 %v10403_v48  ;;  %10438 = vmatpush3.bf16.msra.mxu1 %v10435_v51  ;;  %v12417_v51 = vld [vmem:[%s13687_s10] ss:$0 sm:$0xff]  ;;  %s13696_s10 = sld [smem:[#allocation42_spill]] }
 0x172   : > { %10408 = vmatprep.subr.bf16.mxu0 %v10407_v54  ;;  %10440 = vmatprep.subr.bf16.mxu1 %v10439_v57 }
 0x173   : > { %920 = vadd.xlane.f32.xlu0 %v906_v38  ;;  %922 = vadd.xlane.f32.xlu1 %v907_v39 }
 0x175   : > { %10410 = vmatpush3.bf16.msra.mxu0 %v10407_v54  ;;  %10442 = vmatpush3.bf16.msra.mxu1 %v10439_v57 }
 0x176   : > { %10412 = vmatprep.subr.bf16.mxu0 %v10411_v60  ;;  %10444 = vmatprep.subr.bf16.mxu1 %v10443_v63 }
 0x179   : > { %10414 = vmatpush3.bf16.msra.mxu0 %v10411_v60  ;;  %10446 = vmatpush3.bf16.msra.mxu1 %v10443_v63 }
 0x17a   : > { %10448 = vmatprep.subr.bf16.mxu0 %v12394_v5 }
 0x1e4   : > { %v891_v6 = vpop.xlane.xlu1 %890  ;;  %v885_v7 = vpop.xlane.xlu0 %884 }
 0x1e5   : > { %v925_v8 = vmul.f32 0.0625, %v885_v7  ;;  %v12397_v18 = vmul.f32 0.0625, %v891_v6  ;;  %v1276_v7 = vld [vmem:[#allocation8 + $0x18] sm:$0xff] }
 0x1e7   : > { %v941_v12 = vmul.f32 %v925_v8, %v925_v8  ;;  %v944_v26 = vmul.f32 %v12397_v18, %v12397_v18  ;;  %v957_v44 = vsub.f32 %v12350_v1, %v925_v8  ;;  %v12422_v1 = vld [vmem:[%s13688_s14] ss:$0 sm:$0xff] }
 0x1e8   : > { %v887_v9 = vpop.xlane.xlu0 %886  ;;  %v909_v10 = vpop.xlane.xlu1 %908 }
 0x1e9   : > { %v926_v13 = vmul.f32 0.0625, %v887_v9  ;;  %v933_v16 = vmul.f32 0.0625, %v909_v10 }
 0x1eb   : > { %v949_v17 = vsub.f32 %v933_v16, %v941_v12  ;;  %v942_v21 = vmul.f32 %v926_v13, %v926_v13  ;;  %v958_v55 = vsub.f32 %v12357_v3, %v926_v13  ;;  %v1275_v3 = vld [vmem:[#allocation8 + $0x10] sm:$0xff]  ;;  %v960_v16 = vsub.f32 %v12347_v0, %v12397_v18 }
 0x1ec   : > { %v889_v19 = vpop.xlane.xlu0 %888  ;;  %v911_v20 = vpop.xlane.xlu1 %910 }
 0x1ed   : > { %v965_v22 = vadd.f32 1e-05, %v949_v17  ;;  %v12399_v23 = vmul.f32 0.0625, %v889_v19  ;;  %v934_v24 = vmul.f32 0.0625, %v911_v20 }
 0x1ef   : > { %11327 = vrsqrt.f32 %v965_v22  ;;  %v950_v25 = vsub.f32 %v934_v24, %v942_v21  ;;  %v943_v29 = vmul.f32 %v12399_v23, %v12399_v23  ;;  %v959_v8 = vsub.f32 %v12363_v11, %v12399_v23 }
 0x1f0   : > { %v913_v27 = vpop.xlane.xlu0 %912  ;;  %v915_v28 = vpop.xlane.xlu1 %914  ;;  %v10451_v22 = vpack.c.bf16 %v1276_v7, %v1275_v3  ;;  %v8090_v7 = vld [vmem:[%s13689_s3] ss:$0 sm:$0xff]  ;;  %s13698_s3 = sld [smem:[#allocation44_spill]] }
 0x1f1   : > { %v966_v32 = vadd.f32 1e-05, %v950_v25  ;;  %v935_v33 = vmul.f32 0.0625, %v913_v27  ;;  %v936_v34 = vmul.f32 0.0625, %v915_v28  ;;  %v1277_v27 = vld [vmem:[#allocation8 + $0x20] sm:$0xff]  ;;  %v1278_v28 = vld [vmem:[#allocation8 + $0x28] sm:$0xff] }
 0x1f3   : > { %11329 = vrsqrt.f32 %v966_v32  ;;  %v951_v35 = vsub.f32 %v935_v33, %v943_v29  ;;  %v952_v36 = vsub.f32 %v936_v34, %v944_v26  ;;  %v10455_v34 = vpack.c.bf16 %v1278_v28, %v1277_v27 }
 0x1f4   : > { %v893_v37 = vpop.xlane.xlu0 %892  ;;  %v895_v38 = vpop.xlane.xlu1 %894 }
 0x1f5   : > { %v967_v39 = vadd.f32 1e-05, %v951_v35  ;;  %v968_v40 = vadd.f32 1e-05, %v952_v36  ;;  %v12405_v41 = vmul.f32 0.0625, %v893_v37  ;;  %v12407_v42 = vmul.f32 0.0625, %v895_v38 }
 0x1f6   : > { %v1279_v36 = vld [vmem:[#allocation8 + $0x30] sm:$0xff]  ;;  %v1280_v37 = vld [vmem:[#allocation8 + $0x38] sm:$0xff] }
 0x1f7   : > { %11331 = vrsqrt.f32 %v967_v39  ;;  %v946_v43 = vmul.f32 %v12407_v42, %v12407_v42  ;;  %v945_v48 = vmul.f32 %v12405_v41, %v12405_v41  ;;  %v961_v38 = vsub.f32 %v12371_v14, %v12405_v41  ;;  %v1281_v14 = vld [vmem:[#allocation8 + $0x40] sm:$0xff]  ;;  %v1282_v41 = vld [vmem:[#allocation8 + $0x48] sm:$0xff] }
 0x1f8   : > { %11333 = vrsqrt.f32 %v968_v40  ;;  %v917_v45 = vpop.xlane.xlu0 %916  ;;  %v919_v46 = vpop.xlane.xlu1 %918  ;;  %v962_v39 = vsub.f32 %v12374_v15, %v12407_v42  ;;  %v10463_v42 = vpack.c.bf16 %v1282_v41, %v1281_v14  ;;  %v1404_v14 = vld [vmem:[#allocation10 + $0x18] sm:$0xff] }
 0x1f9   : > { %v11328_v47 = vpop.eup %11327  ;;  %v937_v49 = vmul.f32 0.0625, %v917_v45  ;;  %v938_v50 = vmul.f32 0.0625, %v919_v46 }
 0x1fa   : > { %v981_v52 = vmul.f32 %v11328_v47, %v957_v44 }
 0x1fb   : > { %v953_v53 = vsub.f32 %v937_v49, %v945_v48  ;;  %v954_v54 = vsub.f32 %v938_v50, %v946_v43  ;;  %v10459_v43 = vpack.c.bf16 %v1280_v37, %v1279_v36  ;;  %v1283_v49 = vld [vmem:[#allocation8 + $0x50] sm:$0xff]  ;;  %v1284_v50 = vld [vmem:[#allocation8 + $0x58] sm:$0xff] }
 0x1fc   : > { %v897_v56 = vpop.xlane.xlu0 %896  ;;  %v899_v57 = vpop.xlane.xlu1 %898  ;;  %v995_v58 = vmul.f32 %v12417_v51, %v981_v52 }
 0x1fd   : > { %v11330_v59 = vpop.eup %11329  ;;  %v969_v60 = vadd.f32 1e-05, %v953_v53  ;;  %v970_v61 = vadd.f32 1e-05, %v954_v54  ;;  %v12426_v62 = vmul.f32 0.0625, %v897_v56  ;;  %v12428_v63 = vmul.f32 0.0625, %v899_v57 }
 0x1fe   : > { %v12431_v2 = vadd.f32 %v12422_v1, %v995_v58  ;;  %v982_v4 = vmul.f32 %v11330_v59, %v958_v55  ;;  %v10467_v56 = vpack.c.bf16 %v1284_v50, %v1283_v49  ;;  %v1285_v59 = vld [vmem:[#allocation8 + $0x60] sm:$0xff]  ;;  %v1406_v50 = vld [vmem:[#allocation10 + $0x28] sm:$0xff] }
 0x1ff   : > { %11335 = vrsqrt.f32 %v969_v60  ;;  %v948_v6 = vmul.f32 %v12428_v63, %v12428_v63  ;;  %v947_v17 = vmul.f32 %v12426_v62, %v12426_v62  ;;  %v963_v52 = vsub.f32 %v12383_v30, %v12426_v62  ;;  %v1286_v60 = vld [vmem:[#allocation8 + $0x68] sm:$0xff] }
 0x200   : > { %11337 = vrsqrt.f32 %v970_v61  ;;  %v921_v9 = vpop.xlane.xlu0 %920  ;;  %9155 = vmatprep.mubr.f32.mxu0 %v12431_v2  ;;  %9199 = vmatprep.mubr.f32.mxu1 %v12431_v2  ;;  %v923_v10 = vpop.xlane.xlu1 %922  ;;  %v996_v12 = vmul.f32 %v12417_v51, %v982_v4  ;;  %v964_v54 = vsub.f32 %v12386_v31, %v12428_v63  ;;  %v10471_v4 = vpack.c.bf16 %v1286_v60, %v1285_v59  ;;  %v1287_v63 = vld [vmem:[#allocation8 + $0x70] sm:$0xff]  ;;  %v1408_v60 = vld [vmem:[#allocation10 + $0x38] sm:$0xff] }
 0x201   : > { %v11332_v13 = vpop.eup %11331  ;;  %v939_v19 = vmul.f32 0.0625, %v921_v9  ;;  %v940_v20 = vmul.f32 0.0625, %v923_v10  ;;  %v1726_v59 = vld [vmem:[#allocation10 + $0xb0] sm:$0xff] }
 0x202   : > { %v11334_v21 = vpop.eup %11333  ;;  %v12445_v11 = vadd.f32 %v12422_v1, %v996_v12  ;;  %v983_v23 = vmul.f32 %v11332_v13, %v959_v8 }
 0x203   : > { %v955_v24 = vsub.f32 %v939_v19, %v947_v17  ;;  %v956_v25 = vsub.f32 %v940_v20, %v948_v6  ;;  %v984_v26 = vmul.f32 %v11334_v21, %v960_v16  ;;  %v1288_v6 = vld [vmem:[#allocation8 + $0x78] sm:$0xff] }
 0x204   : > { %9156 = vmatmul.mubr.f32.vlgmr.msra.gmra.mrb[0].mxu0 %v12445_v11  ;;  %9200 = vmatmul.mubr.f32.vlgmr.msra.gmra.mrb[0].mxu1 %v12445_v11  ;;  %v997_v0 = vmul.f32 %v12417_v51, %v983_v23  ;;  %v10475_v3 = vpack.c.bf16 %v1288_v6, %v1287_v63  ;;  %v1561_v63 = vld [vmem:[#allocation10 + $0x40] sm:$0xff]  ;;  %v1562_v6 = vld [vmem:[#allocation10 + $0x48] sm:$0xff] }
 0x205   : > { %v971_v18 = vadd.f32 1e-05, %v955_v24  ;;  %v972_v29 = vadd.f32 1e-05, %v956_v25  ;;  %10450 = vmatpush3.bf16.msra.mxu0 %v12394_v5  ;;  %v998_v32 = vmul.f32 %v12417_v51, %v984_v26 }
 0x206   : > { %10452 = vmatprep.subr.bf16.mxu0 %v10451_v22  ;;  %v12453_v33 = vadd.f32 %v12422_v1, %v997_v0 }
 0x207   : > { %11339 = vrsqrt.f32 %v971_v18  ;;  %v12456_v35 = vadd.f32 %v12422_v1, %v998_v32 }
 0x208   : > { %11341 = vrsqrt.f32 %v972_v29  ;;  %9158 = vmatprep.mubr.f32.mxu0 %v12453_v33  ;;  %9202 = vmatprep.mubr.f32.mxu1 %v12453_v33 }
 0x209   : > { %v11336_v5 = vpop.eup %11335  ;;  %10454 = vmatpush3.bf16.msra.mxu0 %v10451_v22  ;;  %9203 = vmatmul.mubr.f32.gmra.mrb[2].mxu1 %v12456_v35 }
 0x20a   : > { %v11338_v40 = vpop.eup %11337  ;;  %9159 = vmatmul.mubr.f32.gmra.mrb[2].mxu0 %v12456_v35  ;;  %10456 = vmatprep.subr.bf16.mxu0 %v10455_v34  ;;  %v985_v44 = vmul.f32 %v11336_v5, %v961_v38  ;;  %v1402_v5 = vld [vmem:[#allocation10 + $0x8] sm:$0xff] }
 0x20b   : > { %v986_v45 = vmul.f32 %v11338_v40, %v962_v39  ;;  %v1721_v39 = vld [vmem:[#allocation10 + $0x88] sm:$0xff]  ;;  %v12534_v40 = vld [vmem:[%s13690_s18] ss:$0 sm:$0xff] }
 0x20c   : > { %v999_v46 = vmul.f32 %v12417_v51, %v985_v44  ;;  %v1722_v44 = vld [vmem:[#allocation10 + $0x90] sm:$0xff] }
 0x20d   : > { %10458 = vmatpush3.bf16.msra.mxu0 %v10455_v34  ;;  %v1000_v47 = vmul.f32 %v12417_v51, %v986_v45 }
 0x20e   : > { %10460 = vmatprep.subr.bf16.mxu0 %v10459_v43  ;;  %v1013_v15 = vadd.f32 %v12422_v1, %v999_v46 }
 0x20f   : > { %v1014_v48 = vadd.f32 %v12422_v1, %v1000_v47 }
 0x210   : > { %9161 = vmatprep.mubr.f32.mxu0 %v1013_v15  ;;  %9205 = vmatprep.mubr.f32.mxu1 %v1013_v15 }
 0x211   : > { %v11340_v53 = vpop.eup %11339  ;;  %10462 = vmatpush3.bf16.msra.mxu0 %v10459_v43  ;;  %9206 = vmatmul.mubr.f32.gmra.mrb[4].mxu1 %v1014_v48  ;;  %v1403_v43 = vld [vmem:[#allocation10 + $0x10] sm:$0xff] }
 0x212   : > { %v11342_v55 = vpop.eup %11341  ;;  %9162 = vmatmul.mubr.f32.gmra.mrb[4].mxu0 %v1014_v48  ;;  %10464 = vmatprep.subr.bf16.mxu0 %v10463_v42  ;;  %v987_v57 = vmul.f32 %v11340_v53, %v963_v52  ;;  %v1724_v52 = vld [vmem:[#allocation10 + $0xa0] sm:$0xff]  ;;  %v11829_v53 = vmov 1  }
 0x213   : > { %v988_v58 = vmul.f32 %v11342_v55, %v964_v54  ;;  %v1725_v54 = vld [vmem:[#allocation10 + $0xa8] sm:$0xff] }
 0x214   : > { %v1001_v61 = vmul.f32 %v12417_v51, %v987_v57 }
 0x215   : > { %10466 = vmatpush3.bf16.msra.mxu0 %v10463_v42  ;;  %v1002_v30 = vmul.f32 %v12417_v51, %v988_v58  ;;  %v1401_v51 = vld [vmem:[#allocation10] sm:$0xff]  ;;  %v1407_v58 = vld [vmem:[#allocation10 + $0x30] sm:$0xff] }
 0x216   : > { %10468 = vmatprep.subr.bf16.mxu0 %v10467_v56  ;;  %v1015_v62 = vadd.f32 %v12422_v1, %v1001_v61  ;;  %v1405_v42 = vld [vmem:[#allocation10 + $0x20] sm:$0xff] }
 0x217   : > { %v1016_v31 = vadd.f32 %v12422_v1, %v1002_v30  ;;  %v1720_v1 = vld [vmem:[#allocation10 + $0x80] sm:$0xff]  ;;  %v1727_v30 = vld [vmem:[#allocation10 + $0xb8] sm:$0xff] }
 0x218   : > { %9164 = vmatprep.mubr.f32.mxu0 %v1015_v62  ;;  %9208 = vmatprep.mubr.f32.mxu1 %v1015_v62 }
 0x219   : > { %10470 = vmatpush3.bf16.msra.mxu0 %v10467_v56  ;;  %9209 = vmatmul.mubr.f32.gmra.mrb[6].mxu1 %v1016_v31 }
 0x21a   : > { %9165 = vmatmul.mubr.f32.gmra.mrb[6].mxu0 %v1016_v31  ;;  %10472 = vmatprep.subr.bf16.mxu0 %v10471_v4 }
 0x21b   : > { %9243 = vmatprep.mubr.f32.mxu0 %v12431_v2  ;;  %9271 = vmatprep.mubr.msk.f32.mxu1 %vm1409_vm0, %v1401_v51  ;;  %v11828_v2 = vmov 0   ;;  %v2039_v51 = vld [vmem:[#allocation10 + $0x108] sm:$0xff] }
 0x21c   : > { %11305 = vset.pattern.permute.xlu1 %v11828_v2  ;;  %11308 = vset.pattern.permute.xlu0 %v11828_v2 }
 0x21d   : > { %10474 = vmatpush3.bf16.msra.mxu0 %v10471_v4  ;;  %v11830_v4 = vmov 2  }
 0x21e   : > { %10476 = vmatprep.subr.bf16.mxu0 %v10475_v3 }
 0x221   : > { %10478 = vmatpush3.bf16.msra.mxu0 %v10475_v3  ;;  %v2038_v3 = vld [vmem:[#allocation10 + $0x100] sm:$0xff] }
 0x224   : > { %9244 = vmatmul.mubr.f32.vlgmr.msra.gmra.mrb[8].mxu0 %v12445_v11 }
 0x225   : > { %9246 = vmatprep.mubr.f32.mxu0 %v12453_v33 }
 0x228   : > { %9247 = vmatmul.mubr.f32.gmra.mrb[10].mxu0 %v12456_v35 }
 0x229   : > { %9249 = vmatprep.mubr.f32.mxu0 %v1013_v15  ;;  %v1723_v15 = vld [vmem:[#allocation10 + $0x98] sm:$0xff] }
 0x22c   : > { %9250 = vmatmul.mubr.f32.gmra.mrb[12].mxu0 %v1014_v48 }
 0x22d   : > { %9252 = vmatprep.mubr.f32.mxu0 %v1015_v62 }
 0x230   : > { %9253 = vmatmul.mubr.f32.gmra.mrb[14].mxu0 %v1016_v31 }
 0x231   : > { %9327 = vmatprep.mubr.msk.f32.mxu0 %vm1409_vm0, %v1720_v1  ;;  %v1563_v1 = vld [vmem:[#allocation10 + $0x50] sm:$0xff] }
 0x2d7   : > { %v12489_v8 = vpop.f32.mrb[0].mxu0  ;;  %v9201_v9 = vpop.f32.mrb[0].mxu1 }
 0x2d8   : > { %v1240_v10 = vadd.f32 %v9201_v9, %v8090_v7  ;;  %v12491_v12 = vpop.f32.mrb[1].mxu0  ;;  %v1234_v13 = vpop.f32.mrb[1].mxu1  ;;  %v1564_v9 = vld [vmem:[#allocation10 + $0x58] sm:$0xff] }
 0x2d9   : > { %v1235_v16 = vadd.f32 %v8090_v7, %v1234_v13  ;;  %v2041_v13 = vld [vmem:[#allocation10 + $0x118] sm:$0xff] }
 0x2db   : > { %v12493_v17 = vpack.c.bf16 %v1240_v10, %v1235_v16  ;;  %v2040_v10 = vld [vmem:[#allocation10 + $0x110] sm:$0xff]  ;;  %v1565_v16 = vld [vmem:[#allocation10 + $0x60] sm:$0xff] }
 0x2dc   : > { %v9204_v19 = vpop.f32.mrb[2].mxu1 }
 0x2dd   : > { %v12495_v20 = vpop.f32.mrb[2].mxu0  ;;  %v1250_v21 = vadd.f32 %v9204_v19, %v8090_v7  ;;  %v1244_v11 = vpop.f32.mrb[3].mxu1  ;;  %10480 = vmatprep.subr.bf16.mxu1 %v12493_v17  ;;  %10512 = vmatprep.subr.bf16.mxu0 %v12493_v17 }
 0x2de   : > { %v12499_v22 = vpop.f32.mrb[3].mxu0  ;;  %v1245_v23 = vadd.f32 %v8090_v7, %v1244_v11  ;;  %10482 = vmatpush3.bf16.msra.mxu1 %v12493_v17  ;;  %10514 = vmatpush3.bf16.msra.mxu0 %v12493_v17  ;;  %v2042_v11 = vld [vmem:[#allocation10 + $0x120] sm:$0xff] }
 0x2e0   : > { %v12503_v24 = vpack.c.bf16 %v1250_v21, %v1245_v23  ;;  %v1566_v21 = vld [vmem:[#allocation10 + $0x68] sm:$0xff] }
 0x2e1   : > { %v2043_v23 = vld [vmem:[#allocation10 + $0x128] sm:$0xff] }
 0x2e2   : > { %10484 = vmatprep.subr.bf16.mxu1 %v12503_v24  ;;  %10516 = vmatprep.subr.bf16.mxu0 %v12503_v24 }
 0x2e3   : > { %10486 = vmatpush3.bf16.msra.mxu1 %v12503_v24  ;;  %10518 = vmatpush3.bf16.msra.mxu0 %v12503_v24 }
 0x2e4   : > { %v9207_v25 = vpop.f32.mrb[4].mxu1 }
 0x2e5   : > { %v12509_v26 = vpop.f32.mrb[4].mxu0  ;;  %v1260_v27 = vadd.f32 %v9207_v25, %v8090_v7  ;;  %v1254_v28 = vpop.f32.mrb[5].mxu1  ;;  %v1567_v25 = vld [vmem:[#allocation10 + $0x70] sm:$0xff] }
 0x2e6   : > { %v12511_v0 = vpop.f32.mrb[5].mxu0  ;;  %v1255_v18 = vadd.f32 %v8090_v7, %v1254_v28  ;;  %v1568_v28 = vld [vmem:[#allocation10 + $0x78] sm:$0xff] }
 0x2e8   : > { %v12513_v29 = vpack.c.bf16 %v1260_v27, %v1255_v18  ;;  %v2044_v18 = vld [vmem:[#allocation10 + $0x130] sm:$0xff] }
 0x2ea   : > { %10488 = vmatprep.subr.bf16.mxu1 %v12513_v29  ;;  %10520 = vmatprep.subr.bf16.mxu0 %v12513_v29 }
 0x2eb   : > { %10490 = vmatpush3.bf16.msra.mxu1 %v12513_v29  ;;  %10522 = vmatpush3.bf16.msra.mxu0 %v12513_v29 }
 0x2ec   : > { %v9210_v32 = vpop.f32.mrb[6].mxu1 }
 0x2ed   : > { %v12519_v33 = vpop.f32.mrb[6].mxu0  ;;  %v1270_v34 = vadd.f32 %v9210_v32, %v8090_v7  ;;  %v1264_v35 = vpop.f32.mrb[7].mxu1  ;;  %v2045_v32 = vld [vmem:[#allocation10 + $0x138] sm:$0xff] }
 0x2ee   : > { %v12521_v36 = vpop.f32.mrb[7].mxu0  ;;  %v1265_v37 = vadd.f32 %v8090_v7, %v1264_v35  ;;  %v1880_v35 = vld [vmem:[#allocation10 + $0xc8] sm:$0xff] }
 0x2f0   : > { %v12523_v38 = vpack.c.bf16 %v1270_v34, %v1265_v37  ;;  %v1879_v34 = vld [vmem:[#allocation10 + $0xc0] sm:$0xff] }
 0x2f1   : > { %v2356_v37 = vld [vmem:[#allocation10 + $0x180] sm:$0xff] }
 0x2f2   : > { %10492 = vmatprep.subr.bf16.mxu1 %v12523_v38  ;;  %10524 = vmatprep.subr.bf16.mxu0 %v12523_v38 }
 0x2f3   : > { %10494 = vmatpush3.bf16.msra.mxu1 %v12523_v38  ;;  %10526 = vmatpush3.bf16.msra.mxu0 %v12523_v38 }
 0x2f4   : > { %10496 = vmatprep.subr.bf16.mxu1 %v12493_v17  ;;  %10544 = vmatprep.subr.bf16.mxu0 %v12493_v17 }
 0x2f6   : > { %9272 = vmatmul.mubr.msk.f32.vlgmr.msra.gmra.mrb[8].mxu1 %vm1409_vm0, %v1402_v5  ;;  %9328 = vmatmul.mubr.msk.f32.vlgmr.msra.gmra.mrb[16].mxu0 %vm1409_vm0, %v1721_v39  ;;  %v2357_v5 = vld [vmem:[#allocation10 + $0x188] sm:$0xff]  ;;  %v1881_v39 = vld [vmem:[#allocation10 + $0xd0] sm:$0xff] }
 0x2f7   : > { %v9245_v45 = vpop.f32.mrb[8].mxu0  ;;  %10498 = vmatpush3.bf16.msra.mxu1 %v12493_v17  ;;  %10546 = vmatpush3.bf16.msra.mxu0 %v12493_v17 }
 0x2f8   : > { %v1368_v41 = vadd.f32 %v9245_v45, %v12534_v40  ;;  %v1362_v46 = vpop.f32.mrb[9].mxu0  ;;  %10500 = vmatprep.subr.bf16.mxu1 %v12503_v24  ;;  %10548 = vmatprep.subr.bf16.mxu0 %v12503_v24  ;;  %v2359_v45 = vld [vmem:[#allocation10 + $0x198] sm:$0xff] }
 0x2f9   : > { %v12544_v47 = vadd.f32 %v12534_v40, %v1362_v46  ;;  %9274 = vmatprep.mubr.msk.f32.mxu1 %vm1409_vm0, %v1403_v43  ;;  %9330 = vmatprep.mubr.msk.f32.mxu0 %vm1409_vm0, %v1722_v44  ;;  %v2358_v43 = vld [vmem:[#allocation10 + $0x190] sm:$0xff]  ;;  %v1882_v44 = vld [vmem:[#allocation10 + $0xd8] sm:$0xff]  ;;  %v2360_v46 = vld [vmem:[#allocation10 + $0x1a0] sm:$0xff] }
 0x2fa   : > { %2911 = vperm.xlu1 %11305, %v1368_v41   ;;  %9275 = vmatmul.mubr.msk.f32.gmra.mrb[10].mxu1 %vm1409_vm0, %v1404_v14 }
 0x2fb   : > { %v9248_v48 = vpop.f32.mrb[10].mxu0  ;;  %2906 = vperm.xlu0 %11308, %v12544_v47   ;;  %10502 = vmatpush3.bf16.msra.mxu1 %v12503_v24 }
 0x2fc   : > { %v12551_v49 = vpop.f32.mrb[11].mxu0  ;;  %9331 = vmatmul.mubr.msk.f32.gmra.mrb[18].mxu0 %vm1409_vm0, %v1723_v15  ;;  %10504 = vmatprep.subr.bf16.mxu1 %v12513_v29  ;;  %v12562_v56 = vadd.f32 %v9248_v48, %v12534_v40  ;;  %v1886_v15 = vld [vmem:[#allocation10 + $0xf8] sm:$0xff]  ;;  %v2361_v48 = vld [vmem:[#allocation10 + $0x1a8] sm:$0xff] }
 0x2fd   : > { %10550 = vmatpush3.bf16.msra.mxu0 %v12503_v24  ;;  %9277 = vmatprep.mubr.msk.f32.mxu1 %vm1409_vm0, %v1405_v42  ;;  %v1373_v14 = vadd.f32 %v12534_v40, %v12551_v49  ;;  %v2197_v42 = vld [vmem:[#allocation10 + $0x140] sm:$0xff]  ;;  %v2362_v49 = vld [vmem:[#allocation10 + $0x1b0] sm:$0xff] }
 0x2fe   : > { %10552 = vmatprep.subr.bf16.mxu0 %v12513_v29  ;;  %11306 = vset.pattern.permute.xlu1 %v11829_v53 }
 0x2ff   : > { %9278 = vmatmul.mubr.msk.f32.gmra.mrb[12].mxu1 %vm1409_vm0, %v1406_v50  ;;  %9333 = vmatprep.mubr.msk.f32.mxu0 %vm1409_vm0, %v1724_v52  ;;  %v9251_v55 = vpop.f32.mrb[12].mxu0  ;;  %v2198_v50 = vld [vmem:[#allocation10 + $0x148] sm:$0xff]  ;;  %v2199_v52 = vld [vmem:[#allocation10 + $0x150] sm:$0xff] }
 0x300   : > { %7011 = vperm.xlu1 %11306, %v1368_v41   ;;  %11312 = vset.pattern.permute.xlu0 %v11829_v53  ;;  %v1382_v57 = vpop.f32.mrb[13].mxu0  ;;  %v12576_v31 = vadd.f32 %v9251_v55, %v12534_v40  ;;  %v2674_v55 = vld [vmem:[#allocation10 + $0x200] sm:$0xff] }
 0x301   : > { %10506 = vmatpush3.bf16.msra.mxu1 %v12513_v29  ;;  %9334 = vmatmul.mubr.msk.f32.gmra.mrb[20].mxu0 %vm1409_vm0, %v1725_v54  ;;  %v12592_v7 = vadd.f32 %v12534_v40, %v1382_v57  ;;  %v2363_v54 = vld [vmem:[#allocation10 + $0x1b8] sm:$0xff]  ;;  %v2201_v57 = vld [vmem:[#allocation10 + $0x160] sm:$0xff] }
 0x302   : > { %10554 = vmatpush3.bf16.msra.mxu0 %v12513_v29  ;;  %7019 = vperm.xlu0 %11312, %v12562_v56  }
 0x303   : > { %10508 = vmatprep.subr.bf16.mxu1 %v12523_v38  ;;  %10556 = vmatprep.subr.bf16.mxu0 %v12523_v38  ;;  %v9254_v61 = vpop.f32.mrb[14].mxu0 }
 0x304   : > { %9280 = vmatprep.mubr.msk.f32.mxu1 %vm1409_vm0, %v1407_v58  ;;  %9336 = vmatprep.mubr.msk.f32.mxu0 %vm1409_vm0, %v1726_v59  ;;  %v1392_v62 = vpop.f32.mrb[15].mxu0  ;;  %v12620_v27 = vadd.f32 %v9254_v61, %v12534_v40  ;;  %v2675_v58 = vld [vmem:[#allocation10 + $0x208] sm:$0xff]  ;;  %v2676_v59 = vld [vmem:[#allocation10 + $0x210] sm:$0xff]  ;;  %v2677_v61 = vld [vmem:[#allocation10 + $0x218] sm:$0xff] }
 0x305   : > { %9281 = vmatmul.mubr.msk.f32.gmra.mrb[14].mxu1 %vm1409_vm0, %v1408_v60  ;;  %11307 = vset.pattern.permute.xlu1 %v11830_v4  ;;  %v12605_v19 = vadd.f32 %v12534_v40, %v1392_v62  ;;  %v1885_v40 = vld [vmem:[#allocation10 + $0xf0] sm:$0xff]  ;;  %v2515_v62 = vld [vmem:[#allocation10 + $0x1c0] sm:$0xff] }
 0x306   : > { %10510 = vmatpush3.bf16.msra.mxu1 %v12523_v38  ;;  %9337 = vmatmul.mubr.msk.f32.gmra.mrb[22].mxu0 %vm1409_vm0, %v1727_v30  ;;  %v2203_v60 = vld [vmem:[#allocation10 + $0x170] sm:$0xff]  ;;  %v2678_v30 = vld [vmem:[#allocation10 + $0x220] sm:$0xff] }
 0x307   : > { %10558 = vmatpush3.bf16.msra.mxu0 %v12523_v38  ;;  %7083 = vperm.xlu1 %11307, %v1368_v41   ;;  %v1883_v41 = vld [vmem:[#allocation10 + $0xe0] sm:$0xff] }
 0x308   : > { %7027 = vperm.xlu0 %11312, %v12576_v31   ;;  %10528 = vmatprep.subr.bf16.mxu1 %v12493_v17 }
 0x309   : > { %10576 = vmatprep.subr.bf16.mxu0 %v12493_v17  ;;  %9299 = vmatprep.mubr.msk.f32.mxu1 %vm1409_vm0, %v1561_v63  ;;  %v2679_v63 = vld [vmem:[#allocation10 + $0x228] sm:$0xff] }
 0x30a   : > { %9300 = vmatmul.mubr.msk.f32.vlgmr.msra.gmra.mrb[16].mxu1 %vm1409_vm0, %v1562_v6  ;;  %9383 = vmatprep.mubr.msk.f32.mxu0 %vm1409_vm0, %v2038_v3  ;;  %v2680_v6 = vld [vmem:[#allocation10 + $0x230] sm:$0xff] }
 0x30b   : > { %10530 = vmatpush3.bf16.msra.mxu1 %v12493_v17  ;;  %9384 = vmatmul.mubr.msk.f32.vlgmr.msra.gmra.mrb[24].mxu0 %vm1409_vm0, %v2039_v51  ;;  %v2517_v3 = vld [vmem:[#allocation10 + $0x1d0] sm:$0xff]  ;;  %v2518_v51 = vld [vmem:[#allocation10 + $0x1d8] sm:$0xff] }
 0x30c   : > { %10578 = vmatpush3.bf16.msra.mxu0 %v12493_v17  ;;  %11309 = vset.pattern.permute.xlu1 %v11829_v53 }
 0x30d   : > { %11319 = vset.pattern.permute.xlu0 %v11828_v2  ;;  %10532 = vmatprep.subr.bf16.mxu1 %v12503_v24 }
 0x30e   : > { %10580 = vmatprep.subr.bf16.mxu0 %v12503_v24  ;;  %7007 = vperm.xlu1 %11309, %v12544_v47  }
 0x30f   : > { %2926 = vperm.xlu0 %11319, %v12592_v7   ;;  %9302 = vmatprep.mubr.msk.f32.mxu1 %vm1409_vm0, %v1563_v1  ;;  %v2520_v1 = vld [vmem:[#allocation10 + $0x1e8] sm:$0xff] }
 0x310   : > { %9303 = vmatmul.mubr.msk.f32.gmra.mrb[18].mxu1 %vm1409_vm0, %v1564_v9  ;;  %9386 = vmatprep.mubr.msk.f32.mxu0 %vm1409_vm0, %v2040_v10  ;;  %v2521_v9 = vld [vmem:[#allocation10 + $0x1f0] sm:$0xff]  ;;  %v2522_v10 = vld [vmem:[#allocation10 + $0x1f8] sm:$0xff] }
 0x311   : > { %10534 = vmatpush3.bf16.msra.mxu1 %v12503_v24  ;;  %9387 = vmatmul.mubr.msk.f32.gmra.mrb[26].mxu0 %vm1409_vm0, %v2041_v13  ;;  %v3119_v13 = vld [vmem:[#allocation13 + $0x40] sm:$0xff] }
 0x312   : > { %10582 = vmatpush3.bf16.msra.mxu0 %v12503_v24  ;;  %10536 = vmatprep.subr.bf16.mxu1 %v12513_v29 }
 0x313   : > { %10584 = vmatprep.subr.bf16.mxu0 %v12513_v29  ;;  %11310 = vset.pattern.permute.xlu1 %v11830_v4 }
 0x314   : > { %2936 = vperm.xlu0 %11319, %v12605_v19   ;;  %9305 = vmatprep.mubr.msk.f32.mxu1 %vm1409_vm0, %v1565_v16 }
 0x315   : > { %7079 = vperm.xlu1 %11310, %v12544_v47   ;;  %9306 = vmatmul.mubr.msk.f32.gmra.mrb[20].mxu1 %vm1409_vm0, %v1566_v21  ;;  %v1884_v47 = vld [vmem:[#allocation10 + $0xe8] sm:$0xff] }
 0x316   : > { %9389 = vmatprep.mubr.msk.f32.mxu0 %vm1409_vm0, %v2042_v11  ;;  %10538 = vmatpush3.bf16.msra.mxu1 %v12513_v29 }
 0x317   : > { %9390 = vmatmul.mubr.msk.f32.gmra.mrb[28].mxu0 %vm1409_vm0, %v2043_v23  ;;  %10540 = vmatprep.subr.bf16.mxu1 %v12523_v38 }
 0x318   : > { %10586 = vmatpush3.bf16.msra.mxu0 %v12513_v29  ;;  %11323 = vset.pattern.permute.xlu0 %v11829_v53 }
 0x319   : > { %10588 = vmatprep.subr.bf16.mxu0 %v12523_v38  ;;  %9308 = vmatprep.mubr.msk.f32.mxu1 %vm1409_vm0, %v1567_v25 }
 0x31a   : > { %11311 = vset.pattern.permute.xlu1 %v11828_v2  ;;  %7035 = vperm.xlu0 %11323, %v12620_v27  }
 0x31b   : > { %9309 = vmatmul.mubr.msk.f32.gmra.mrb[22].mxu1 %vm1409_vm0, %v1568_v28  ;;  %9392 = vmatprep.mubr.msk.f32.mxu0 %vm1409_vm0, %v2044_v18 }
 0x31c   : > { %2921 = vperm.xlu1 %11311, %v12562_v56   ;;  %10542 = vmatpush3.bf16.msra.mxu1 %v12523_v38 }
 0x31d   : > { %9393 = vmatmul.mubr.msk.f32.gmra.mrb[30].mxu0 %vm1409_vm0, %v2045_v32  ;;  %10560 = vmatprep.subr.bf16.mxu1 %v12493_v17 }
 0x31e   : > { %10590 = vmatpush3.bf16.msra.mxu0 %v12523_v38  ;;  %9355 = vmatprep.mubr.msk.f32.mxu1 %vm1409_vm0, %v1879_v34 }
 0x31f   : > { %10608 = vmatprep.subr.bf16.mxu0 %v12493_v17  ;;  %9356 = vmatmul.mubr.msk.f32.vlgmr.msra.gmra.mrb[24].mxu1 %vm1409_vm0, %v1880_v35 }
 0x320   : > { %9439 = vmatprep.mubr.msk.f32.mxu0 %vm1409_vm0, %v2356_v37  ;;  %11313 = vset.pattern.permute.xlu1 %v11830_v4 }
 0x321   : > { %10562 = vmatpush3.bf16.msra.mxu1 %v12493_v17  ;;  %9440 = vmatmul.mubr.msk.f32.vlgmr.msra.gmra.mrb[32].mxu0 %vm1409_vm0, %v2357_v5  ;;  %v8100_v5 = vld [vmem:[#allocation11] ss:$0 sm:$0xff] }
 0x322   : > { %10610 = vmatpush3.bf16.msra.mxu0 %v12493_v17  ;;  %7091 = vperm.xlu1 %11313, %v12562_v56   ;;  %v2200_v56 = vld [vmem:[#allocation10 + $0x158] sm:$0xff] }
 0x323   : > { %10564 = vmatprep.subr.bf16.mxu1 %v12503_v24  ;;  %10612 = vmatprep.subr.bf16.mxu0 %v12503_v24 }
 0x324   : > { %9358 = vmatprep.mubr.msk.f32.mxu1 %vm1409_vm0, %v1881_v39  ;;  %9442 = vmatprep.mubr.msk.f32.mxu0 %vm1409_vm0, %v2358_v43  ;;  %v8109_v39 = vld [vmem:[#allocation11 + $0x1] ss:$0 sm:$0xff]  ;;  %v8118_v43 = vld [vmem:[#allocation11 + $0x2] ss:$0 sm:$0xff] }
 0x325   : > { %9359 = vmatmul.mubr.msk.f32.gmra.mrb[26].mxu1 %vm1409_vm0, %v1882_v44  ;;  %9443 = vmatmul.mubr.msk.f32.gmra.mrb[34].mxu0 %vm1409_vm0, %v2359_v45 }
 0x326   : > { %10566 = vmatpush3.bf16.msra.mxu1 %v12503_v24  ;;  %10614 = vmatpush3.bf16.msra.mxu0 %v12503_v24 }
 0x327   : > { %11314 = vset.pattern.permute.xlu1 %v11828_v2  ;;  %10568 = vmatprep.subr.bf16.mxu1 %v12513_v29 }
 0x328   : > { %10616 = vmatprep.subr.bf16.mxu0 %v12513_v29  ;;  %2916 = vperm.xlu1 %11314, %v1373_v14  }
 0x329   : > { %9361 = vmatprep.mubr.msk.f32.mxu1 %vm1409_vm0, %v1883_v41  ;;  %9445 = vmatprep.mubr.msk.f32.mxu0 %vm1409_vm0, %v2360_v46 }
 0x32a   : > { %9362 = vmatmul.mubr.msk.f32.gmra.mrb[28].mxu1 %vm1409_vm0, %v1884_v47  ;;  %10618 = vmatpush3.bf16.msra.mxu0 %v12513_v29 }
 0x32b   : > { %10570 = vmatpush3.bf16.msra.mxu1 %v12513_v29  ;;  %10620 = vmatprep.subr.bf16.mxu0 %v12523_v38 }
 0x32c   : > { %10572 = vmatprep.subr.bf16.mxu1 %v12523_v38  ;;  %11315 = vset.pattern.permute.xlu1 %v11829_v53 }
 0x32d   : > { %9364 = vmatprep.mubr.msk.f32.mxu1 %vm1409_vm0, %v1885_v40  ;;  %7015 = vperm.xlu1 %11315, %v1373_v14  }
 0x32e   : > { %9365 = vmatmul.mubr.msk.f32.gmra.mrb[30].mxu1 %vm1409_vm0, %v1886_v15  ;;  %10622 = vmatpush3.bf16.msra.mxu0 %v12523_v38 }
 0x32f   : > { %10574 = vmatpush3.bf16.msra.mxu1 %v12523_v38  ;;  %9411 = vmatprep.mubr.msk.f32.mxu1 %vm1409_vm0, %v2197_v42 }
 0x330   : > { %10592 = vmatprep.subr.bf16.mxu1 %v12493_v17  ;;  %9446 = vmatmul.mubr.msk.f32.gmra.mrb[36].mxu0 %vm1409_vm0, %v2361_v48 }
 0x331   : > { %11316 = vset.pattern.permute.xlu1 %v11830_v4  ;;  %9448 = vmatprep.mubr.msk.f32.mxu0 %vm1409_vm0, %v2362_v49 }
 0x332   : > { %9412 = vmatmul.mubr.msk.f32.vlgmr.msra.gmra.mrb[32].mxu1 %vm1409_vm0, %v2198_v50  ;;  %7087 = vperm.xlu1 %11316, %v1373_v14  }
 0x333   : > { %10594 = vmatpush3.bf16.msra.mxu1 %v12493_v17  ;;  %9414 = vmatprep.mubr.msk.f32.mxu1 %vm1409_vm0, %v2199_v52  ;;  %v2202_v17 = vld [vmem:[#allocation10 + $0x168] sm:$0xff] }
 0x334   : > { %10596 = vmatprep.subr.bf16.mxu1 %v12503_v24  ;;  %9449 = vmatmul.mubr.msk.f32.gmra.mrb[38].mxu0 %vm1409_vm0, %v2363_v54 }
 0x335   : > { %9495 = vmatprep.mubr.msk.f32.mxu0 %vm1409_vm0, %v2674_v55  ;;  %11326 = vset.pattern.permute.xlu0 %v11830_v4 }
 0x336   : > { %9415 = vmatmul.mubr.msk.f32.gmra.mrb[34].mxu1 %vm1409_vm0, %v2200_v56  ;;  %11317 = vset.pattern.permute.xlu1 %v11828_v2 }
 0x337   : > { %10598 = vmatpush3.bf16.msra.mxu1 %v12503_v24  ;;  %2931 = vperm.xlu1 %11317, %v12576_v31   ;;  %v2204_v24 = vld [vmem:[#allocation10 + $0x178] sm:$0xff] }
 0x338   : > { %10600 = vmatprep.subr.bf16.mxu1 %v12513_v29  ;;  %9417 = vmatprep.mubr.msk.f32.mxu1 %vm1409_vm0, %v2201_v57 }
 0x339   : > { %9496 = vmatmul.mubr.msk.f32.vlgmr.msra.gmra.mrb[40].mxu0 %vm1409_vm0, %v2675_v58 }
 0x33a   : > { %9418 = vmatmul.mubr.msk.f32.gmra.mrb[36].mxu1 %vm1409_vm0, %v2202_v17  ;;  %9498 = vmatprep.mubr.msk.f32.mxu0 %vm1409_vm0, %v2676_v59 }
 0x33b   : > { %10602 = vmatpush3.bf16.msra.mxu1 %v12513_v29  ;;  %11318 = vset.pattern.permute.xlu1 %v11830_v4  ;;  %v2516_v29 = vld [vmem:[#allocation10 + $0x1c8] sm:$0xff] }
 0x33c   : > { %10604 = vmatprep.subr.bf16.mxu1 %v12523_v38  ;;  %7099 = vperm.xlu1 %11318, %v12576_v31   ;;  %v2681_v31 = vld [vmem:[#allocation10 + $0x238] sm:$0xff] }
 0x33d   : > { %9420 = vmatprep.mubr.msk.f32.mxu1 %vm1409_vm0, %v2203_v60  ;;  %9499 = vmatmul.mubr.msk.f32.gmra.mrb[42].mxu0 %vm1409_vm0, %v2677_v61 }
 0x33e   : > { %9421 = vmatmul.mubr.msk.f32.gmra.mrb[38].mxu1 %vm1409_vm0, %v2204_v24  ;;  %9501 = vmatprep.mubr.msk.f32.mxu0 %vm1409_vm0, %v2678_v30 }
 0x33f   : > { %10606 = vmatpush3.bf16.msra.mxu1 %v12523_v38  ;;  %9467 = vmatprep.mubr.msk.f32.mxu1 %vm1409_vm0, %v2515_v62  ;;  %v2519_v38 = vld [vmem:[#allocation10 + $0x1e0] sm:$0xff] }
 0x340   : > { %11320 = vset.pattern.permute.xlu1 %v11829_v53 }
 0x341   : > { %7023 = vperm.xlu1 %11320, %v12592_v7   ;;  %9502 = vmatmul.mubr.msk.f32.gmra.mrb[44].mxu0 %vm1409_vm0, %v2679_v63 }
 0x342   : > { %9468 = vmatmul.mubr.msk.f32.vlgmr.msra.gmra.mrb[40].mxu1 %vm1409_vm0, %v2516_v29  ;;  %9504 = vmatprep.mubr.msk.f32.mxu0 %vm1409_vm0, %v2680_v6 }
 0x343   : > { %9470 = vmatprep.mubr.msk.f32.mxu1 %vm1409_vm0, %v2517_v3 }
 0x345   : > { %11321 = vset.pattern.permute.xlu1 %v11830_v4  ;;  %9505 = vmatmul.mubr.msk.f32.gmra.mrb[46].mxu0 %vm1409_vm0, %v2681_v31 }
 0x346   : > { %9471 = vmatmul.mubr.msk.f32.gmra.mrb[42].mxu1 %vm1409_vm0, %v2518_v51  ;;  %7095 = vperm.xlu1 %11321, %v12592_v7   ;;  %v2960_v7 = vld [vmem:[#allocation13] sm:$0xff] }
 0x347   : > { %9473 = vmatprep.mubr.msk.f32.mxu1 %vm1409_vm0, %v2519_v38  ;;  %9551 = vmatprep.mubr.msk.f32.mxu0 %vm1409_vm0, %v3119_v13 }
 0x34a   : > { %9474 = vmatmul.mubr.msk.f32.gmra.mrb[44].mxu1 %vm1409_vm0, %v2520_v1  ;;  %11322 = vset.pattern.permute.xlu1 %v11828_v2 }
 0x34b   : > { %2941 = vperm.xlu1 %11322, %v12620_v27   ;;  %9476 = vmatprep.mubr.msk.f32.mxu1 %vm1409_vm0, %v2521_v9 }
 0x34e   : > { %9477 = vmatmul.mubr.msk.f32.gmra.mrb[46].mxu1 %vm1409_vm0, %v2522_v10 }
 0x34f   : > { %11324 = vset.pattern.permute.xlu1 %v11829_v53  ;;  %9523 = vmatprep.mubr.msk.f32.mxu1 %vm1409_vm0, %v2960_v7 }
 0x350   : > { %7031 = vperm.xlu1 %11324, %v12605_v19  }
 0x354   : > { %11325 = vset.pattern.permute.xlu1 %v11830_v4 }
 0x355   : > { %7103 = vperm.xlu1 %11325, %v12605_v19  }
 0x359   : > { %7107 = vperm.xlu1 %11325, %v12620_v27  }
 0x3c9   : > { %v9273_v2 = vpop.f32.mrb[8].mxu1  ;;  %v9329_v16 = vpop.f32.mrb[16].mxu0 }
 0x3ca   : > { %v1500_v21 = vpop.f32.mrb[9].mxu1  ;;  %v1818_v11 = vpop.f32.mrb[17].mxu0  ;;  %v1545_v45 = vmul.f32 %v9273_v2, %v8100_v5  ;;  %v1863_v46 = vmul.f32 %v9329_v16, %v8118_v43 }
 0x3cb   : > { %v1544_v40 = vmul.f32 %v8100_v5, %v1500_v21  ;;  %v1862_v42 = vmul.f32 %v8118_v43, %v1818_v11 }
 0x3cd   : > { %v9276_v23 = vpop.f32.mrb[10].mxu1 }
 0x3ce   : > { %v1510_v53 = vpop.f32.mrb[11].mxu1  ;;  %v1547_v56 = vmul.f32 %v9276_v23, %v8100_v5 }
 0x3cf   : > { %v9332_v25 = vpop.f32.mrb[18].mxu0  ;;  %v1546_v60 = vmul.f32 %v8100_v5, %v1510_v53 }
 0x3d0   : > { %v1828_v28 = vpop.f32.mrb[19].mxu0  ;;  %v1865_v17 = vmul.f32 %v9332_v25, %v8118_v43 }
 0x3d1   : > { %v1864_v24 = vmul.f32 %v8118_v43, %v1828_v28 }
 0x3d2   : > { %v9279_v18 = vpop.f32.mrb[12].mxu1 }
 0x3d3   : > { %v1520_v4 = vpop.f32.mrb[13].mxu1  ;;  %v1549_v3 = vmul.f32 %v9279_v18, %v8100_v5 }
 0x3d4   : > { %v9335_v32 = vpop.f32.mrb[20].mxu0  ;;  %v1548_v9 = vmul.f32 %v8100_v5, %v1520_v4 }
 0x3d5   : > { %v1838_v19 = vpop.f32.mrb[21].mxu0  ;;  %v1867_v1 = vmul.f32 %v9335_v32, %v8118_v43 }
 0x3d6   : > { %v1866_v7 = vmul.f32 %v8118_v43, %v1838_v19 }
 0x3d8   : > { %v9282_v34 = vpop.f32.mrb[14].mxu1 }
 0x3d9   : > { %v1530_v27 = vpop.f32.mrb[15].mxu1  ;;  %v9338_v35 = vpop.f32.mrb[22].mxu0  ;;  %v1551_v25 = vmul.f32 %v9282_v34, %v8100_v5 }
 0x3da   : > { %v1848_v37 = vpop.f32.mrb[23].mxu0 }
 0x3dd   : > { %v9301_v44 = vpop.f32.mrb[16].mxu1 }
 0x3de   : > { %v1704_v14 = vmul.f32 %v9301_v44, %v8109_v39  ;;  %v1659_v41 = vpop.f32.mrb[17].mxu1  ;;  %v9385_v47 = vpop.f32.mrb[24].mxu0 }
 0x3df   : > { %v1703_v15 = vmul.f32 %v8109_v39, %v1659_v41  ;;  %v2136_v48 = vpop.f32.mrb[25].mxu0  ;;  %v1868_v41 = vmul.f32 %v8118_v43, %v1848_v37 }
 0x3e0   : > { %v1712_v49 = vadd.f32 %v1704_v14, %v1545_v45  ;;  %v1869_v45 = vmul.f32 %v9338_v35, %v8118_v43  ;;  %v1550_v14 = vmul.f32 %v8100_v5, %v1530_v27 }
 0x3e1   : > { %v1711_v50 = vadd.f32 %v1703_v15, %v1544_v40  ;;  %v8136_v40 = vld [vmem:[#allocation11 + $0x4] ss:$0 sm:$0xff] }
 0x3e2   : > { %v1871_v52 = vadd.f32 %v1863_v46, %v1712_v49  ;;  %v8127_v46 = vld [vmem:[#allocation11 + $0x3] ss:$0 sm:$0xff]  ;;  %v2180_v34 = vmul.f32 %v8136_v40, %v2136_v48 }
 0x3e3   : > { %v1870_v54 = vadd.f32 %v1862_v42, %v1711_v50  ;;  %v9304_v55 = vpop.f32.mrb[18].mxu1 }
 0x3e4   : > { %v1706_v57 = vmul.f32 %v9304_v55, %v8109_v39  ;;  %v1669_v58 = vpop.f32.mrb[19].mxu1  ;;  %v9388_v59 = vpop.f32.mrb[26].mxu0 }
 0x3e5   : > { %v1705_v61 = vmul.f32 %v8109_v39, %v1669_v58  ;;  %v2146_v30 = vpop.f32.mrb[27].mxu0 }
 0x3e6   : > { %v1714_v62 = vadd.f32 %v1706_v57, %v1547_v56  ;;  %v2181_v56 = vmul.f32 %v9385_v47, %v8136_v40 }
 0x3e7   : > { %v1713_v63 = vadd.f32 %v1705_v61, %v1546_v60 }
 0x3e8   : > { %v1873_v29 = vadd.f32 %v1865_v17, %v1714_v62  ;;  %v9307_v6 = vpop.f32.mrb[20].mxu1  ;;  %v2183_v62 = vmul.f32 %v9388_v59, %v8136_v40 }
 0x3e9   : > { %v1872_v31 = vadd.f32 %v1864_v24, %v1713_v63  ;;  %v1708_v51 = vmul.f32 %v9307_v6, %v8109_v39  ;;  %v1679_v38 = vpop.f32.mrb[21].mxu1 }
 0x3ea   : > { %v1707_v10 = vmul.f32 %v8109_v39, %v1679_v38  ;;  %v9391_v13 = vpop.f32.mrb[28].mxu0 }
 0x3eb   : > { %v1716_v2 = vadd.f32 %v1708_v51, %v1549_v3  ;;  %v2156_v16 = vpop.f32.mrb[29].mxu0  ;;  %v2182_v3 = vmul.f32 %v8136_v40, %v2146_v30 }
 0x3ec   : > { %v1715_v21 = vadd.f32 %v1707_v10, %v1548_v9 }
 0x3ed   : > { %v1875_v11 = vadd.f32 %v1867_v1, %v1716_v2 }
 0x3ee   : > { %v1874_v23 = vadd.f32 %v1866_v7, %v1715_v21  ;;  %v9310_v53 = vpop.f32.mrb[22].mxu1 }
 0x3ef   : > { %v1710_v28 = vmul.f32 %v9310_v53, %v8109_v39  ;;  %v1689_v44 = vpop.f32.mrb[23].mxu1 }
 0x3f0   : > { %v1709_v18 = vmul.f32 %v8109_v39, %v1689_v44  ;;  %v9394_v32 = vpop.f32.mrb[30].mxu0 }
 0x3f1   : > { %v1718_v4 = vadd.f32 %v1710_v28, %v1551_v25  ;;  %v2166_v15 = vpop.f32.mrb[31].mxu0  ;;  %v2187_v59 = vmul.f32 %v9394_v32, %v8136_v40 }
 0x3f2   : > { %v1717_v19 = vadd.f32 %v1709_v18, %v1550_v14  ;;  %v9357_v42 = vpop.f32.mrb[24].mxu1  ;;  %v2186_v30 = vmul.f32 %v8136_v40, %v2166_v15 }
 0x3f3   : > { %v1877_v49 = vadd.f32 %v1869_v45, %v1718_v4  ;;  %v2022_v50 = vmul.f32 %v9357_v42, %v8127_v46  ;;  %v1977_v55 = vpop.f32.mrb[25].mxu1 }
 0x3f4   : > { %v1876_v57 = vadd.f32 %v1868_v41, %v1717_v19  ;;  %v2021_v58 = vmul.f32 %v8127_v46, %v1977_v55  ;;  %v9441_v17 = vpop.f32.mrb[32].mxu0 }
 0x3f5   : > { %v2030_v60 = vadd.f32 %v2022_v50, %v1871_v52  ;;  %v2454_v35 = vpop.f32.mrb[33].mxu0  ;;  %v2185_v52 = vmul.f32 %v9391_v13, %v8136_v40 }
 0x3f6   : > { %v2029_v27 = vadd.f32 %v2021_v58, %v1870_v54  ;;  %v2184_v54 = vmul.f32 %v8136_v40, %v2156_v16 }
 0x3f7   : > { %v2189_v5 = vadd.f32 %v2181_v56, %v2030_v60 }
 0x3f8   : > { %v2188_v37 = vadd.f32 %v2180_v34, %v2029_v27  ;;  %v9360_v39 = vpop.f32.mrb[26].mxu1  ;;  %v9444_v43 = vpop.f32.mrb[34].mxu0 }
 0x3f9   : > { %v2024_v61 = vmul.f32 %v9360_v39, %v8127_v46  ;;  %v1987_v24 = vpop.f32.mrb[27].mxu1  ;;  %v2464_v63 = vpop.f32.mrb[35].mxu0 }
 0x3fa   : > { %v2023_v6 = vmul.f32 %v8127_v46, %v1987_v24 }
 0x3fb   : > { %v2032_v51 = vadd.f32 %v2024_v61, %v1873_v29  ;;  %v8145_v29 = vld [vmem:[#allocation11 + $0x5] ss:$0 sm:$0xff] }
 0x3fc   : > { %v2031_v38 = vadd.f32 %v2023_v6, %v1872_v31  ;;  %v8154_v31 = vld [vmem:[#allocation11 + $0x6] ss:$0 sm:$0xff] }
 0x3fd   : > { %v2191_v47 = vadd.f32 %v2183_v62, %v2032_v51  ;;  %v9363_v1 = vpop.f32.mrb[28].mxu1  ;;  %v2498_v56 = vmul.f32 %v8154_v31, %v2454_v35  ;;  %v2501_v39 = vmul.f32 %v9444_v43, %v8154_v31 }
 0x3fe   : > { %v2190_v9 = vadd.f32 %v2182_v3, %v2031_v38  ;;  %v2026_v48 = vmul.f32 %v9363_v1, %v8127_v46  ;;  %v1997_v10 = vpop.f32.mrb[29].mxu1 }
 0x3ff   : > { %v2025_v7 = vmul.f32 %v8127_v46, %v1997_v10 }
 0x400   : > { %v2034_v2 = vadd.f32 %v2026_v48, %v1875_v11  ;;  %v2499_v11 = vmul.f32 %v9441_v17, %v8154_v31 }
 0x401   : > { %v2033_v21 = vadd.f32 %v2025_v7, %v1874_v23  ;;  %v9366_v53 = vpop.f32.mrb[30].mxu1 }
 0x402   : > { %v2193_v25 = vadd.f32 %v2185_v52, %v2034_v2  ;;  %v2028_v28 = vmul.f32 %v9366_v53, %v8127_v46  ;;  %v2007_v44 = vpop.f32.mrb[31].mxu1 }
 0x403   : > { %v2192_v45 = vadd.f32 %v2184_v54, %v2033_v21  ;;  %v2027_v14 = vmul.f32 %v8127_v46, %v2007_v44  ;;  %v9447_v18 = vpop.f32.mrb[36].mxu0  ;;  %v8163_v44 = vld [vmem:[#allocation11 + $0x7] ss:$0 sm:$0xff] }
 0x404   : > { %v2036_v41 = vadd.f32 %v2028_v28, %v1877_v49  ;;  %v2474_v4 = vpop.f32.mrb[37].mxu0  ;;  %v2503_v1 = vmul.f32 %v9447_v18, %v8154_v31 }
 0x405   : > { %v2035_v19 = vadd.f32 %v2027_v14, %v1876_v57  ;;  %v9413_v42 = vpop.f32.mrb[32].mxu1  ;;  %v2500_v57 = vmul.f32 %v8154_v31, %v2464_v63 }
 0x406   : > { %v2195_v13 = vadd.f32 %v2187_v59, %v2036_v41  ;;  %v2340_v50 = vmul.f32 %v9413_v42, %v8145_v29  ;;  %v2295_v16 = vpop.f32.mrb[33].mxu1  ;;  %v8172_v59 = vld [vmem:[#allocation11 + $0x8] ss:$0 sm:$0xff] }
 0x407   : > { %v2194_v23 = vadd.f32 %v2186_v30, %v2035_v19  ;;  %v2339_v55 = vmul.f32 %v8145_v29, %v2295_v16  ;;  %v9450_v58 = vpop.f32.mrb[38].mxu0 }
 0x408   : > { %v2348_v34 = vadd.f32 %v2340_v50, %v2189_v5  ;;  %v2484_v32 = vpop.f32.mrb[39].mxu0 }
 0x409   : > { %v2347_v60 = vadd.f32 %v2339_v55, %v2188_v37  ;;  %v9416_v46 = vpop.f32.mrb[34].mxu1  ;;  %v2502_v37 = vmul.f32 %v8154_v31, %v2474_v4  ;;  %v2504_v28 = vmul.f32 %v8154_v31, %v2484_v32 }
 0x40a   : > { %v2507_v40 = vadd.f32 %v2499_v11, %v2348_v34  ;;  %v2342_v15 = vmul.f32 %v9416_v46, %v8145_v29  ;;  %v2305_v27 = vpop.f32.mrb[35].mxu1 }
 0x40b   : > { %v2506_v49 = vadd.f32 %v2498_v56, %v2347_v60  ;;  %v2341_v61 = vmul.f32 %v8145_v29, %v2305_v27 }
 0x40c   : > { %v2350_v24 = vadd.f32 %v2342_v15, %v2191_v47  ;;  %v9497_v62 = vpop.f32.mrb[40].mxu0  ;;  %v2505_v47 = vmul.f32 %v9450_v58, %v8154_v31 }
 0x40d   : > { %v2349_v6 = vadd.f32 %v2341_v61, %v2190_v9  ;;  %v9419_v3 = vpop.f32.mrb[36].mxu1  ;;  %v2772_v17 = vpop.f32.mrb[41].mxu0 }
 0x40e   : > { %v2509_v51 = vadd.f32 %v2501_v39, %v2350_v24  ;;  %v2344_v38 = vmul.f32 %v9419_v3, %v8145_v29  ;;  %v2315_v35 = vpop.f32.mrb[37].mxu1  ;;  %v2816_v11 = vmul.f32 %v8172_v59, %v2772_v17 }
 0x40f   : > { %v2508_v5 = vadd.f32 %v2500_v57, %v2349_v6  ;;  %v2343_v48 = vmul.f32 %v8145_v29, %v2315_v35 }
 0x410   : > { %v2352_v10 = vadd.f32 %v2344_v38, %v2193_v25  ;;  %v9500_v52 = vpop.f32.mrb[42].mxu0 }
 0x411   : > { %v2351_v7 = vadd.f32 %v2343_v48, %v2192_v45  ;;  %v9422_v54 = vpop.f32.mrb[38].mxu1  ;;  %v2782_v43 = vpop.f32.mrb[43].mxu0  ;;  %v2817_v45 = vmul.f32 %v9497_v62, %v8172_v59  ;;  %v2819_v60 = vmul.f32 %v9500_v52, %v8172_v59 }
 0x412   : > { %v2511_v2 = vadd.f32 %v2503_v1, %v2352_v10  ;;  %v2346_v21 = vmul.f32 %v9422_v54, %v8145_v29  ;;  %v2325_v63 = vpop.f32.mrb[39].mxu1  ;;  %v2818_v15 = vmul.f32 %v8172_v59, %v2782_v43 }
 0x413   : > { %v2510_v53 = vadd.f32 %v2502_v37, %v2351_v7  ;;  %v2345_v9 = vmul.f32 %v8145_v29, %v2325_v63 }
 0x414   : > { %v2354_v14 = vadd.f32 %v2346_v21, %v2195_v13  ;;  %v9503_v30 = vpop.f32.mrb[44].mxu0 }
 0x415   : > { %v2353_v18 = vadd.f32 %v2345_v9, %v2194_v23  ;;  %v9469_v41 = vpop.f32.mrb[40].mxu1  ;;  %v2792_v19 = vpop.f32.mrb[45].mxu0  ;;  %v2821_v3 = vmul.f32 %v9503_v30, %v8172_v59 }
 0x416   : > { %v2513_v4 = vadd.f32 %v2505_v47, %v2354_v14  ;;  %v2658_v25 = vmul.f32 %v9469_v41, %v8163_v44  ;;  %v2613_v42 = vpop.f32.mrb[41].mxu1  ;;  %v2820_v1 = vmul.f32 %v8172_v59, %v2792_v19 }
 0x417   : > { %v2512_v50 = vadd.f32 %v2504_v28, %v2353_v18  ;;  %v2657_v16 = vmul.f32 %v8163_v44, %v2613_v42 }
 0x418   : > { %v2666_v55 = vadd.f32 %v2658_v25, %v2507_v40  ;;  %v9506_v56 = vpop.f32.mrb[46].mxu0 }
 0x419   : > { %v2665_v58 = vadd.f32 %v2657_v16, %v2506_v49  ;;  %v9472_v34 = vpop.f32.mrb[42].mxu1  ;;  %v2802_v29 = vpop.f32.mrb[47].mxu0  ;;  %v2823_v41 = vmul.f32 %v9506_v56, %v8172_v59 }
 0x41a   : > { %v12723_v31 = vadd.f32 %v2817_v45, %v2666_v55  ;;  %v2660_v32 = vmul.f32 %v9472_v34, %v8163_v44  ;;  %v2623_v13 = vpop.f32.mrb[43].mxu1  ;;  %v2822_v45 = vmul.f32 %v8172_v59, %v2802_v29 }
 0x41b   : > { %v12725_v23 = vadd.f32 %v2816_v11, %v2665_v58  ;;  %v2659_v46 = vmul.f32 %v8163_v44, %v2623_v13 }
 0x41c   : > { %v2841_v27 = vmul.f32 0.044715, %v12723_v31  ;;  %v2668_v39 = vadd.f32 %v2660_v32, %v2509_v51 }
 0x41d   : > { %v2840_v61 = vmul.f32 0.044715, %v12725_v23  ;;  %v2667_v57 = vadd.f32 %v2659_v46, %v2508_v5  ;;  %v9475_v40 = vpop.f32.mrb[44].mxu1 }
 0x41e   : > { %v2849_v49 = vmul.f32 %v2841_v27, %v12723_v31  ;;  %v12730_v24 = vadd.f32 %v2819_v60, %v2668_v39  ;;  %v2662_v62 = vmul.f32 %v9475_v40, %v8163_v44  ;;  %v2633_v6 = vpop.f32.mrb[45].mxu1 }
 0x41f   : > { %v2848_v17 = vmul.f32 %v2840_v61, %v12725_v23  ;;  %v12733_v38 = vadd.f32 %v2818_v15, %v2667_v57  ;;  %v2661_v35 = vmul.f32 %v8163_v44, %v2633_v6 }
 0x420   : > { %v2857_v48 = vmul.f32 %v2849_v49, %v12723_v31  ;;  %v2843_v51 = vmul.f32 0.044715, %v12730_v24  ;;  %v2670_v37 = vadd.f32 %v2662_v62, %v2511_v2 }
 0x421   : > { %v2856_v5 = vmul.f32 %v2848_v17, %v12725_v23  ;;  %v2842_v10 = vmul.f32 0.044715, %v12733_v38  ;;  %v2669_v52 = vadd.f32 %v2661_v35, %v2510_v53  ;;  %v9478_v7 = vpop.f32.mrb[46].mxu1  ;;  %v2833_v17 = vmul.f32 0.5, %v12723_v31 }
 0x422   : > { %v2865_v54 = vadd.f32 %v2857_v48, %v12723_v31  ;;  %v2851_v43 = vmul.f32 %v2843_v51, %v12730_v24  ;;  %v12741_v21 = vadd.f32 %v2821_v3, %v2670_v37  ;;  %v2664_v63 = vmul.f32 %v9478_v7, %v8163_v44  ;;  %v2643_v47 = vpop.f32.mrb[47].mxu1 }
 0x423   : > { %v2864_v9 = vadd.f32 %v2856_v5, %v12725_v23  ;;  %v2850_v28 = vmul.f32 %v2842_v10, %v12733_v38  ;;  %v12745_v14 = vadd.f32 %v2820_v1, %v2669_v52  ;;  %v2663_v2 = vmul.f32 %v8163_v44, %v2643_v47 }
 0x424   : > { %v2873_v30 = vmul.f32 0.7978846, %v2865_v54  ;;  %v2859_v18 = vmul.f32 %v2851_v43, %v12730_v24  ;;  %v2845_v53 = vmul.f32 0.044715, %v12741_v21  ;;  %v2672_v55 = vadd.f32 %v2664_v63, %v2513_v4 }
 0x425   : > { %v2872_v19 = vmul.f32 0.7978846, %v2864_v9  ;;  %v2858_v25 = vmul.f32 %v2850_v28, %v12733_v38  ;;  %v2844_v42 = vmul.f32 0.044715, %v12745_v14  ;;  %v2671_v34 = vadd.f32 %v2663_v2, %v2512_v50 }
 0x426   : > { %11343 = vtanh.f32 %v2873_v30  ;;  %v2867_v16 = vadd.f32 %v2859_v18, %v12730_v24  ;;  %v2853_v11 = vmul.f32 %v2845_v53, %v12741_v21  ;;  %v2831_v13 = vadd.f32 %v2823_v41, %v2672_v55 }
 0x427   : > { %11345 = vtanh.f32 %v2872_v19  ;;  %v2866_v44 = vadd.f32 %v2858_v25, %v12733_v38  ;;  %v2852_v58 = vmul.f32 %v2844_v42, %v12745_v14  ;;  %v2830_v59 = vadd.f32 %v2822_v45, %v2671_v34 }
 0x428   : > { %v2875_v32 = vmul.f32 0.7978846, %v2867_v16  ;;  %v2861_v56 = vmul.f32 %v2853_v11, %v12741_v21  ;;  %v2847_v15 = vmul.f32 0.044715, %v2831_v13  ;;  %v2832_v48 = vmul.f32 0.5, %v12725_v23 }
 0x429   : > { %v2874_v60 = vmul.f32 0.7978846, %v2866_v44  ;;  %v2860_v46 = vmul.f32 %v2852_v58, %v12745_v14  ;;  %v2846_v27 = vmul.f32 0.044715, %v2830_v59  ;;  %v2835_v43 = vmul.f32 0.5, %v12730_v24 }
 0x42a   : > { %11347 = vtanh.f32 %v2875_v32  ;;  %v2869_v29 = vadd.f32 %v2861_v56, %v12741_v21  ;;  %v2855_v61 = vmul.f32 %v2847_v15, %v2831_v13  ;;  %v2834_v23 = vmul.f32 0.5, %v12733_v38  ;;  %v2961_v32 = vld [vmem:[#allocation13 + $0x8] sm:$0xff]  ;;  %v3123_v15 = vld [vmem:[#allocation13 + $0x60] sm:$0xff] }
 0x42b   : > { %11349 = vtanh.f32 %v2874_v60  ;;  %v2868_v4 = vadd.f32 %v2860_v46, %v12745_v14  ;;  %v2854_v50 = vmul.f32 %v2846_v27, %v2830_v59  ;;  %v2837_v24 = vmul.f32 0.5, %v12741_v21  ;;  %v3120_v56 = vld [vmem:[#allocation13 + $0x48] sm:$0xff]  ;;  %v3121_v60 = vld [vmem:[#allocation13 + $0x50] sm:$0xff]  ;;  %v2963_v46 = vld [vmem:[#allocation13 + $0x18] sm:$0xff] }
 0x42c   : > { %v2877_v39 = vmul.f32 0.7978846, %v2869_v29  ;;  %v2863_v40 = vmul.f32 %v2855_v61, %v2831_v13  ;;  %v2836_v53 = vmul.f32 0.5, %v12745_v14  ;;  %v2839_v14 = vmul.f32 0.5, %v2831_v13  ;;  %v2964_v29 = vld [vmem:[#allocation13 + $0x20] sm:$0xff]  ;;  %v3124_v27 = vld [vmem:[#allocation13 + $0x68] sm:$0xff] }
 0x42d   : > { %v2876_v57 = vmul.f32 0.7978846, %v2868_v4  ;;  %v2862_v49 = vmul.f32 %v2854_v50, %v2830_v59  ;;  %v2838_v11 = vmul.f32 0.5, %v2830_v59  ;;  %v2965_v4 = vld [vmem:[#allocation13 + $0x28] sm:$0xff]  ;;  %v3125_v61 = vld [vmem:[#allocation13 + $0x70] sm:$0xff]  ;;  %v3126_v50 = vld [vmem:[#allocation13 + $0x78] sm:$0xff] }
 0x42e   : > { %11351 = vtanh.f32 %v2877_v39  ;;  %v2871_v6 = vadd.f32 %v2863_v40, %v2831_v13  ;;  %v2962_v13 = vld [vmem:[#allocation13 + $0x10] sm:$0xff]  ;;  %v3278_v40 = vld [vmem:[#allocation13 + $0x80] sm:$0xff] }
 0x42f   : > { %11353 = vtanh.f32 %v2876_v57  ;;  %v2870_v1 = vadd.f32 %v2862_v49, %v2830_v59  ;;  %v3122_v59 = vld [vmem:[#allocation13 + $0x58] sm:$0xff]  ;;  %v2966_v39 = vld [vmem:[#allocation13 + $0x30] sm:$0xff]  ;;  %v3437_v49 = vld [vmem:[#allocation13 + $0xc0] sm:$0xff] }
 0x430   : > { %v11344_v62 = vpop.eup %11343  ;;  %v2879_v37 = vmul.f32 0.7978846, %v2871_v6  ;;  %v2967_v57 = vld [vmem:[#allocation13 + $0x38] sm:$0xff]  ;;  %v3438_v6 = vld [vmem:[#allocation13 + $0xc8] sm:$0xff] }
 0x431   : > { %v11346_v3 = vpop.eup %11345  ;;  %v2889_v35 = vadd.f32 1.0, %v11344_v62  ;;  %v2878_v10 = vmul.f32 0.7978846, %v2870_v1  ;;  %v3279_v62 = vld [vmem:[#allocation13 + $0x88] sm:$0xff]  ;;  %v3440_v1 = vld [vmem:[#allocation13 + $0xd8] sm:$0xff] }
 0x432   : > { %v2888_v51 = vadd.f32 1.0, %v11346_v3  ;;  %11355 = vtanh.f32 %v2879_v37  ;;  %v3280_v3 = vld [vmem:[#allocation13 + $0x90] sm:$0xff]  ;;  %v3283_v37 = vld [vmem:[#allocation13 + $0xa8] sm:$0xff] }
 0x433   : > { %v12761_v5 = vmul.f32 %v2889_v35, %v2833_v17  ;;  %11357 = vtanh.f32 %v2878_v10  ;;  %v3439_v17 = vld [vmem:[#allocation13 + $0xd0] sm:$0xff]  ;;  %v3281_v35 = vld [vmem:[#allocation13 + $0x98] sm:$0xff]  ;;  %v3442_v10 = vld [vmem:[#allocation13 + $0xe8] sm:$0xff] }
 0x434   : > { %v11348_v52 = vpop.eup %11347  ;;  %v12763_v7 = vmul.f32 %v2888_v51, %v2832_v48  ;;  %v3282_v48 = vld [vmem:[#allocation13 + $0xa0] sm:$0xff] }
 0x435   : > { %v11350_v54 = vpop.eup %11349  ;;  %v2891_v63 = vadd.f32 1.0, %v11348_v52  ;;  %v3441_v51 = vld [vmem:[#allocation13 + $0xe0] sm:$0xff]  ;;  %v3284_v52 = vld [vmem:[#allocation13 + $0xb0] sm:$0xff] }
 0x436   : > { %v12768_v31 = vpack.c.bf16 %v12761_v5, %v12763_v7  ;;  %v2890_v47 = vadd.f32 1.0, %v11350_v54  ;;  %v3443_v54 = vld [vmem:[#allocation13 + $0xf0] sm:$0xff] }
 0x437   : > { %v12771_v9 = vmul.f32 %v2891_v63, %v2835_v43  ;;  %v3285_v43 = vld [vmem:[#allocation13 + $0xb8] sm:$0xff] }
 0x438   : > { %v11352_v28 = vpop.eup %11351  ;;  %v12773_v2 = vmul.f32 %v2890_v47, %v2834_v23  ;;  %10624 = vmatprep.subr.bf16.mxu1 %v12768_v31  ;;  %10640 = vmatprep.subr.bf16.mxu0 %v12768_v31  ;;  %v3444_v63 = vld [vmem:[#allocation13 + $0xf8] sm:$0xff]  ;;  %v3596_v23 = vld [vmem:[#allocation13 + $0x100] sm:$0xff] }
 0x439   : > { %v11354_v30 = vpop.eup %11353  ;;  %v2893_v18 = vadd.f32 1.0, %v11352_v28  ;;  %10626 = vmatpush3.bf16.msra.mxu1 %v12768_v31  ;;  %10642 = vmatpush3.bf16.msra.mxu0 %v12768_v31  ;;  %v3755_v47 = vld [vmem:[#allocation13 + $0x140] sm:$0xff]  ;;  %v3597_v28 = vld [vmem:[#allocation13 + $0x108] sm:$0xff] }
 0x43a   : > { %v12782_v38 = vpack.c.bf16 %v12771_v9, %v12773_v2  ;;  %v2892_v41 = vadd.f32 1.0, %v11354_v30  ;;  %v3756_v30 = vld [vmem:[#allocation13 + $0x148] sm:$0xff] }
 0x43b   : > { %v12785_v19 = vmul.f32 %v2893_v18, %v2837_v24  ;;  %v3598_v24 = vld [vmem:[#allocation13 + $0x110] sm:$0xff] }
 0x43c   : > { %v12787_v25 = vmul.f32 %v2892_v41, %v2836_v53  ;;  %10628 = vmatprep.subr.bf16.mxu1 %v12782_v38  ;;  %10644 = vmatprep.subr.bf16.mxu0 %v12782_v38  ;;  %v11356_v21 = vpop.eup %11355  ;;  %v3757_v18 = vld [vmem:[#allocation13 + $0x150] sm:$0xff]  ;;  %v3599_v53 = vld [vmem:[#allocation13 + $0x118] sm:$0xff] }
 0x43d   : > { %10630 = vmatpush3.bf16.msra.mxu1 %v12782_v38  ;;  %10646 = vmatpush3.bf16.msra.mxu0 %v12782_v38  ;;  %v11358_v45 = vpop.eup %11357  ;;  %v2895_v16 = vadd.f32 1.0, %v11356_v21  ;;  %v3758_v41 = vld [vmem:[#allocation13 + $0x158] sm:$0xff]  ;;  %v3600_v21 = vld [vmem:[#allocation13 + $0x120] sm:$0xff] }
 0x43e   : > { %v12795_v42 = vpack.c.bf16 %v12785_v19, %v12787_v25  ;;  %v2894_v55 = vadd.f32 1.0, %v11358_v45  ;;  %v3759_v45 = vld [vmem:[#allocation13 + $0x160] sm:$0xff] }
 0x43f   : > { %v12799_v44 = vmul.f32 %v2895_v16, %v2839_v14  ;;  %v3601_v14 = vld [vmem:[#allocation13 + $0x128] sm:$0xff] }
 0x440   : > { %10632 = vmatprep.subr.bf16.mxu1 %v12795_v42  ;;  %10648 = vmatprep.subr.bf16.mxu0 %v12795_v42  ;;  %v12803_v58 = vmul.f32 %v2894_v55, %v2838_v11  ;;  %v3760_v16 = vld [vmem:[#allocation13 + $0x168] sm:$0xff]  ;;  %v3602_v11 = vld [vmem:[#allocation13 + $0x130] sm:$0xff] }
 0x441   : > { %10634 = vmatpush3.bf16.msra.mxu1 %v12795_v42  ;;  %10650 = vmatpush3.bf16.msra.mxu0 %v12795_v42  ;;  %v3761_v55 = vld [vmem:[#allocation13 + $0x170] sm:$0xff] }
 0x442   : > { %v12807_v34 = vpack.c.bf16 %v12799_v44, %v12803_v58 }
 0x444   : > { %10636 = vmatprep.subr.bf16.mxu1 %v12807_v34  ;;  %10652 = vmatprep.subr.bf16.mxu0 %v12807_v34 }
 0x445   : > { %10638 = vmatpush3.bf16.msra.mxu1 %v12807_v34  ;;  %10654 = vmatpush3.bf16.msra.mxu0 %v12807_v34 }
 0x446   : > { %10656 = vmatprep.subr.bf16.mxu1 %v12768_v31  ;;  %10672 = vmatprep.subr.bf16.mxu0 %v12768_v31 }
 0x448   : > { %9524 = vmatmul.mubr.msk.f32.vlgmr.msra.gmra.mrb[48].mxu1 %vm1409_vm0, %v2961_v32  ;;  %9552 = vmatmul.mubr.msk.f32.vlgmr.msra.gmra.mrb[48].mxu0 %vm1409_vm0, %v3120_v56  ;;  %v3603_v32 = vld [vmem:[#allocation13 + $0x138] sm:$0xff] }
 0x449   : > { %10658 = vmatpush3.bf16.msra.mxu1 %v12768_v31  ;;  %10674 = vmatpush3.bf16.msra.mxu0 %v12768_v31  ;;  %v3762_v56 = vld [vmem:[#allocation13 + $0x178] sm:$0xff] }
 0x44a   : > { %10660 = vmatprep.subr.bf16.mxu1 %v12782_v38  ;;  %10676 = vmatprep.subr.bf16.mxu0 %v12782_v38 }
 0x44b   : > { %9526 = vmatprep.mubr.msk.f32.mxu1 %vm1409_vm0, %v2962_v13  ;;  %9554 = vmatprep.mubr.msk.f32.mxu0 %vm1409_vm0, %v3121_v60  ;;  %v3914_v13 = vld [vmem:[#allocation13 + $0x180] sm:$0xff] }
 0x44c   : > { %9527 = vmatmul.mubr.msk.f32.gmra.mrb[50].mxu1 %vm1409_vm0, %v2963_v46  ;;  %9555 = vmatmul.mubr.msk.f32.gmra.mrb[50].mxu0 %vm1409_vm0, %v3122_v59  ;;  %v4073_v60 = vld [vmem:[#allocation13 + $0x1c0] sm:$0xff]  ;;  %v3915_v46 = vld [vmem:[#allocation13 + $0x188] sm:$0xff] }
 0x44d   : > { %10662 = vmatpush3.bf16.msra.mxu1 %v12782_v38  ;;  %10678 = vmatpush3.bf16.msra.mxu0 %v12782_v38  ;;  %v4074_v59 = vld [vmem:[#allocation13 + $0x1c8] sm:$0xff] }
 0x44e   : > { %10664 = vmatprep.subr.bf16.mxu1 %v12795_v42  ;;  %10680 = vmatprep.subr.bf16.mxu0 %v12795_v42 }
 0x44f   : > { %9529 = vmatprep.mubr.msk.f32.mxu1 %vm1409_vm0, %v2964_v29  ;;  %9557 = vmatprep.mubr.msk.f32.mxu0 %vm1409_vm0, %v3123_v15  ;;  %v3916_v29 = vld [vmem:[#allocation13 + $0x190] sm:$0xff] }
 0x450   : > { %9530 = vmatmul.mubr.msk.f32.gmra.mrb[52].mxu1 %vm1409_vm0, %v2965_v4  ;;  %9558 = vmatmul.mubr.msk.f32.gmra.mrb[52].mxu0 %vm1409_vm0, %v3124_v27  ;;  %v4075_v15 = vld [vmem:[#allocation13 + $0x1d0] sm:$0xff]  ;;  %v3917_v4 = vld [vmem:[#allocation13 + $0x198] sm:$0xff] }
 0x451   : > { %10666 = vmatpush3.bf16.msra.mxu1 %v12795_v42  ;;  %10682 = vmatpush3.bf16.msra.mxu0 %v12795_v42  ;;  %v4076_v27 = vld [vmem:[#allocation13 + $0x1d8] sm:$0xff] }
 0x452   : > { %10668 = vmatprep.subr.bf16.mxu1 %v12807_v34  ;;  %10684 = vmatprep.subr.bf16.mxu0 %v12807_v34 }
 0x453   : > { %9532 = vmatprep.mubr.msk.f32.mxu1 %vm1409_vm0, %v2966_v39  ;;  %9560 = vmatprep.mubr.msk.f32.mxu0 %vm1409_vm0, %v3125_v61  ;;  %v3918_v39 = vld [vmem:[#allocation13 + $0x1a0] sm:$0xff] }
 0x454   : > { %9533 = vmatmul.mubr.msk.f32.gmra.mrb[54].mxu1 %vm1409_vm0, %v2967_v57  ;;  %9561 = vmatmul.mubr.msk.f32.gmra.mrb[54].mxu0 %vm1409_vm0, %v3126_v50  ;;  %v4077_v61 = vld [vmem:[#allocation13 + $0x1e0] sm:$0xff]  ;;  %v3919_v57 = vld [vmem:[#allocation13 + $0x1a8] sm:$0xff] }
 0x455   : > { %10670 = vmatpush3.bf16.msra.mxu1 %v12807_v34  ;;  %10686 = vmatpush3.bf16.msra.mxu0 %v12807_v34  ;;  %v4078_v50 = vld [vmem:[#allocation13 + $0x1e8] sm:$0xff] }
 0x456   : > { %10688 = vmatprep.subr.bf16.mxu1 %v12768_v31  ;;  %10704 = vmatprep.subr.bf16.mxu0 %v12768_v31 }
 0x457   : > { %9579 = vmatprep.mubr.msk.f32.mxu1 %vm1409_vm0, %v3278_v40  ;;  %9607 = vmatprep.mubr.msk.f32.mxu0 %vm1409_vm0, %v3437_v49  ;;  %v3920_v40 = vld [vmem:[#allocation13 + $0x1b0] sm:$0xff] }
 0x458   : > { %9580 = vmatmul.mubr.msk.f32.vlgmr.msra.gmra.mrb[56].mxu1 %vm1409_vm0, %v3279_v62  ;;  %9608 = vmatmul.mubr.msk.f32.vlgmr.msra.gmra.mrb[56].mxu0 %vm1409_vm0, %v3438_v6  ;;  %v4079_v49 = vld [vmem:[#allocation13 + $0x1f0] sm:$0xff]  ;;  %v3921_v62 = vld [vmem:[#allocation13 + $0x1b8] sm:$0xff] }
 0x459   : > { %10690 = vmatpush3.bf16.msra.mxu1 %v12768_v31  ;;  %10706 = vmatpush3.bf16.msra.mxu0 %v12768_v31  ;;  %v4080_v6 = vld [vmem:[#allocation13 + $0x1f8] sm:$0xff] }
 0x45a   : > { %10692 = vmatprep.subr.bf16.mxu1 %v12782_v38  ;;  %10708 = vmatprep.subr.bf16.mxu0 %v12782_v38 }
 0x45b   : > { %9582 = vmatprep.mubr.msk.f32.mxu1 %vm1409_vm0, %v3280_v3  ;;  %9610 = vmatprep.mubr.msk.f32.mxu0 %vm1409_vm0, %v3439_v17  ;;  %v4232_v3 = vld [vmem:[#allocation13 + $0x200] sm:$0xff] }
 0x45c   : > { %9583 = vmatmul.mubr.msk.f32.gmra.mrb[58].mxu1 %vm1409_vm0, %v3281_v35  ;;  %9611 = vmatmul.mubr.msk.f32.gmra.mrb[58].mxu0 %vm1409_vm0, %v3440_v1  ;;  %v4391_v17 = vld [vmem:[#allocation13 + $0x240] sm:$0xff]  ;;  %v4233_v35 = vld [vmem:[#allocation13 + $0x208] sm:$0xff] }
 0x45d   : > { %10694 = vmatpush3.bf16.msra.mxu1 %v12782_v38  ;;  %10710 = vmatpush3.bf16.msra.mxu0 %v12782_v38  ;;  %v4392_v1 = vld [vmem:[#allocation13 + $0x248] sm:$0xff] }
 0x45e   : > { %10696 = vmatprep.subr.bf16.mxu1 %v12795_v42  ;;  %10712 = vmatprep.subr.bf16.mxu0 %v12795_v42 }
 0x45f   : > { %9585 = vmatprep.mubr.msk.f32.mxu1 %vm1409_vm0, %v3282_v48  ;;  %9613 = vmatprep.mubr.msk.f32.mxu0 %vm1409_vm0, %v3441_v51  ;;  %v4234_v48 = vld [vmem:[#allocation13 + $0x210] sm:$0xff] }
 0x460   : > { %9586 = vmatmul.mubr.msk.f32.gmra.mrb[60].mxu1 %vm1409_vm0, %v3283_v37  ;;  %9614 = vmatmul.mubr.msk.f32.gmra.mrb[60].mxu0 %vm1409_vm0, %v3442_v10  ;;  %v4393_v51 = vld [vmem:[#allocation13 + $0x250] sm:$0xff]  ;;  %v4235_v37 = vld [vmem:[#allocation13 + $0x218] sm:$0xff] }
 0x461   : > { %10698 = vmatpush3.bf16.msra.mxu1 %v12795_v42  ;;  %10714 = vmatpush3.bf16.msra.mxu0 %v12795_v42  ;;  %v4394_v10 = vld [vmem:[#allocation13 + $0x258] sm:$0xff] }
 0x462   : > { %10700 = vmatprep.subr.bf16.mxu1 %v12807_v34  ;;  %10716 = vmatprep.subr.bf16.mxu0 %v12807_v34 }
 0x463   : > { %9588 = vmatprep.mubr.msk.f32.mxu1 %vm1409_vm0, %v3284_v52  ;;  %9616 = vmatprep.mubr.msk.f32.mxu0 %vm1409_vm0, %v3443_v54  ;;  %v4236_v52 = vld [vmem:[#allocation13 + $0x220] sm:$0xff] }
 0x464   : > { %9589 = vmatmul.mubr.msk.f32.gmra.mrb[62].mxu1 %vm1409_vm0, %v3285_v43  ;;  %9617 = vmatmul.mubr.msk.f32.gmra.mrb[62].mxu0 %vm1409_vm0, %v3444_v63  ;;  %v4395_v54 = vld [vmem:[#allocation13 + $0x260] sm:$0xff]  ;;  %v4237_v43 = vld [vmem:[#allocation13 + $0x228] sm:$0xff] }
 0x465   : > { %10702 = vmatpush3.bf16.msra.mxu1 %v12807_v34  ;;  %10718 = vmatpush3.bf16.msra.mxu0 %v12807_v34  ;;  %v4396_v63 = vld [vmem:[#allocation13 + $0x268] sm:$0xff] }
 0x466   : > { %10720 = vmatprep.subr.bf16.mxu1 %v12768_v31  ;;  %10736 = vmatprep.subr.bf16.mxu0 %v12768_v31 }
 0x467   : > { %9635 = vmatprep.mubr.msk.f32.mxu1 %vm1409_vm0, %v3596_v23  ;;  %9663 = vmatprep.mubr.msk.f32.mxu0 %vm1409_vm0, %v3755_v47  ;;  %v4238_v23 = vld [vmem:[#allocation13 + $0x230] sm:$0xff] }
 0x468   : > { %9636 = vmatmul.mubr.msk.f32.vlgmr.msra.gmra.mrb[64].mxu1 %vm1409_vm0, %v3597_v28  ;;  %9664 = vmatmul.mubr.msk.f32.vlgmr.msra.gmra.mrb[64].mxu0 %vm1409_vm0, %v3756_v30  ;;  %v4397_v47 = vld [vmem:[#allocation13 + $0x270] sm:$0xff]  ;;  %v4239_v28 = vld [vmem:[#allocation13 + $0x238] sm:$0xff] }
 0x469   : > { %10722 = vmatpush3.bf16.msra.mxu1 %v12768_v31  ;;  %10738 = vmatpush3.bf16.msra.mxu0 %v12768_v31  ;;  %v4398_v30 = vld [vmem:[#allocation13 + $0x278] sm:$0xff] }
 0x46a   : > { %10724 = vmatprep.subr.bf16.mxu1 %v12782_v38  ;;  %10740 = vmatprep.subr.bf16.mxu0 %v12782_v38 }
 0x46b   : > { %9638 = vmatprep.mubr.msk.f32.mxu1 %vm1409_vm0, %v3598_v24  ;;  %9666 = vmatprep.mubr.msk.f32.mxu0 %vm1409_vm0, %v3757_v18  ;;  %v4550_v24 = vld [vmem:[#allocation13 + $0x280] sm:$0xff] }
 0x46c   : > { %9639 = vmatmul.mubr.msk.f32.gmra.mrb[66].mxu1 %vm1409_vm0, %v3599_v53  ;;  %9667 = vmatmul.mubr.msk.f32.gmra.mrb[66].mxu0 %vm1409_vm0, %v3758_v41  ;;  %v4709_v18 = vld [vmem:[#allocation13 + $0x2c0] sm:$0xff]  ;;  %v4551_v53 = vld [vmem:[#allocation13 + $0x288] sm:$0xff] }
 0x46d   : > { %10726 = vmatpush3.bf16.msra.mxu1 %v12782_v38  ;;  %10742 = vmatpush3.bf16.msra.mxu0 %v12782_v38  ;;  %v4710_v41 = vld [vmem:[#allocation13 + $0x2c8] sm:$0xff] }
 0x46e   : > { %10728 = vmatprep.subr.bf16.mxu1 %v12795_v42  ;;  %10744 = vmatprep.subr.bf16.mxu0 %v12795_v42 }
 0x46f   : > { %9641 = vmatprep.mubr.msk.f32.mxu1 %vm1409_vm0, %v3600_v21  ;;  %9669 = vmatprep.mubr.msk.f32.mxu0 %vm1409_vm0, %v3759_v45  ;;  %v4552_v21 = vld [vmem:[#allocation13 + $0x290] sm:$0xff] }
 0x470   : > { %9642 = vmatmul.mubr.msk.f32.gmra.mrb[68].mxu1 %vm1409_vm0, %v3601_v14  ;;  %9670 = vmatmul.mubr.msk.f32.gmra.mrb[68].mxu0 %vm1409_vm0, %v3760_v16  ;;  %v4711_v45 = vld [vmem:[#allocation13 + $0x2d0] sm:$0xff]  ;;  %v4553_v14 = vld [vmem:[#allocation13 + $0x298] sm:$0xff] }
 0x471   : > { %10730 = vmatpush3.bf16.msra.mxu1 %v12795_v42  ;;  %10746 = vmatpush3.bf16.msra.mxu0 %v12795_v42  ;;  %v4712_v16 = vld [vmem:[#allocation13 + $0x2d8] sm:$0xff] }
 0x472   : > { %10732 = vmatprep.subr.bf16.mxu1 %v12807_v34  ;;  %10748 = vmatprep.subr.bf16.mxu0 %v12807_v34 }
 0x473   : > { %9644 = vmatprep.mubr.msk.f32.mxu1 %vm1409_vm0, %v3602_v11  ;;  %9672 = vmatprep.mubr.msk.f32.mxu0 %vm1409_vm0, %v3761_v55  ;;  %v4554_v11 = vld [vmem:[#allocation13 + $0x2a0] sm:$0xff] }
 0x474   : > { %9645 = vmatmul.mubr.msk.f32.gmra.mrb[70].mxu1 %vm1409_vm0, %v3603_v32  ;;  %9673 = vmatmul.mubr.msk.f32.gmra.mrb[70].mxu0 %vm1409_vm0, %v3762_v56  ;;  %v4713_v55 = vld [vmem:[#allocation13 + $0x2e0] sm:$0xff]  ;;  %v4555_v32 = vld [vmem:[#allocation13 + $0x2a8] sm:$0xff] }
 0x475   : > { %10734 = vmatpush3.bf16.msra.mxu1 %v12807_v34  ;;  %10750 = vmatpush3.bf16.msra.mxu0 %v12807_v34  ;;  %v4714_v56 = vld [vmem:[#allocation13 + $0x2e8] sm:$0xff] }
 0x476   : > { %10752 = vmatprep.subr.bf16.mxu1 %v12768_v31  ;;  %10768 = vmatprep.subr.bf16.mxu0 %v12768_v31 }
 0x477   : > { %9691 = vmatprep.mubr.msk.f32.mxu1 %vm1409_vm0, %v3914_v13  ;;  %9719 = vmatprep.mubr.msk.f32.mxu0 %vm1409_vm0, %v4073_v60  ;;  %v4556_v13 = vld [vmem:[#allocation13 + $0x2b0] sm:$0xff] }
 0x478   : > { %9692 = vmatmul.mubr.msk.f32.vlgmr.msra.gmra.mrb[72].mxu1 %vm1409_vm0, %v3915_v46  ;;  %9720 = vmatmul.mubr.msk.f32.vlgmr.msra.gmra.mrb[72].mxu0 %vm1409_vm0, %v4074_v59  ;;  %v4715_v60 = vld [vmem:[#allocation13 + $0x2f0] sm:$0xff]  ;;  %v4557_v46 = vld [vmem:[#allocation13 + $0x2b8] sm:$0xff] }
 0x479   : > { %10754 = vmatpush3.bf16.msra.mxu1 %v12768_v31  ;;  %10770 = vmatpush3.bf16.msra.mxu0 %v12768_v31  ;;  %v4716_v59 = vld [vmem:[#allocation13 + $0x2f8] sm:$0xff] }
 0x47a   : > { %10756 = vmatprep.subr.bf16.mxu1 %v12782_v38  ;;  %10772 = vmatprep.subr.bf16.mxu0 %v12782_v38 }
 0x47b   : > { %9694 = vmatprep.mubr.msk.f32.mxu1 %vm1409_vm0, %v3916_v29  ;;  %9722 = vmatprep.mubr.msk.f32.mxu0 %vm1409_vm0, %v4075_v15  ;;  %v4868_v29 = vld [vmem:[#allocation13 + $0x300] sm:$0xff] }
 0x47c   : > { %9695 = vmatmul.mubr.msk.f32.gmra.mrb[74].mxu1 %vm1409_vm0, %v3917_v4  ;;  %9723 = vmatmul.mubr.msk.f32.gmra.mrb[74].mxu0 %vm1409_vm0, %v4076_v27  ;;  %v5027_v15 = vld [vmem:[#allocation13 + $0x340] sm:$0xff]  ;;  %v4869_v4 = vld [vmem:[#allocation13 + $0x308] sm:$0xff] }
 0x47d   : > { %10758 = vmatpush3.bf16.msra.mxu1 %v12782_v38  ;;  %10774 = vmatpush3.bf16.msra.mxu0 %v12782_v38  ;;  %v5028_v27 = vld [vmem:[#allocation13 + $0x348] sm:$0xff] }
 0x47e   : > { %10760 = vmatprep.subr.bf16.mxu1 %v12795_v42  ;;  %10776 = vmatprep.subr.bf16.mxu0 %v12795_v42 }
 0x47f   : > { %9697 = vmatprep.mubr.msk.f32.mxu1 %vm1409_vm0, %v3918_v39  ;;  %9725 = vmatprep.mubr.msk.f32.mxu0 %vm1409_vm0, %v4077_v61  ;;  %v4870_v39 = vld [vmem:[#allocation13 + $0x310] sm:$0xff] }
 0x480   : > { %9698 = vmatmul.mubr.msk.f32.gmra.mrb[76].mxu1 %vm1409_vm0, %v3919_v57  ;;  %9726 = vmatmul.mubr.msk.f32.gmra.mrb[76].mxu0 %vm1409_vm0, %v4078_v50  ;;  %v5029_v61 = vld [vmem:[#allocation13 + $0x350] sm:$0xff]  ;;  %v4871_v57 = vld [vmem:[#allocation13 + $0x318] sm:$0xff] }
 0x481   : > { %10762 = vmatpush3.bf16.msra.mxu1 %v12795_v42  ;;  %10778 = vmatpush3.bf16.msra.mxu0 %v12795_v42  ;;  %v5030_v50 = vld [vmem:[#allocation13 + $0x358] sm:$0xff] }
 0x482   : > { %10764 = vmatprep.subr.bf16.mxu1 %v12807_v34  ;;  %10780 = vmatprep.subr.bf16.mxu0 %v12807_v34 }
 0x483   : > { %9700 = vmatprep.mubr.msk.f32.mxu1 %vm1409_vm0, %v3920_v40  ;;  %9728 = vmatprep.mubr.msk.f32.mxu0 %vm1409_vm0, %v4079_v49  ;;  %v4872_v40 = vld [vmem:[#allocation13 + $0x320] sm:$0xff] }
 0x484   : > { %9701 = vmatmul.mubr.msk.f32.gmra.mrb[78].mxu1 %vm1409_vm0, %v3921_v62  ;;  %9729 = vmatmul.mubr.msk.f32.gmra.mrb[78].mxu0 %vm1409_vm0, %v4080_v6  ;;  %v5031_v49 = vld [vmem:[#allocation13 + $0x360] sm:$0xff]  ;;  %v4873_v62 = vld [vmem:[#allocation13 + $0x328] sm:$0xff] }
 0x485   : > { %10766 = vmatpush3.bf16.msra.mxu1 %v12807_v34  ;;  %10782 = vmatpush3.bf16.msra.mxu0 %v12807_v34  ;;  %v5032_v6 = vld [vmem:[#allocation13 + $0x368] sm:$0xff] }
 0x486   : > { %10784 = vmatprep.subr.bf16.mxu1 %v12768_v31  ;;  %10800 = vmatprep.subr.bf16.mxu0 %v12768_v31 }
 0x487   : > { %9747 = vmatprep.mubr.msk.f32.mxu1 %vm1409_vm0, %v4232_v3  ;;  %9775 = vmatprep.mubr.msk.f32.mxu0 %vm1409_vm0, %v4391_v17  ;;  %v4874_v3 = vld [vmem:[#allocation13 + $0x330] sm:$0xff] }
 0x488   : > { %9748 = vmatmul.mubr.msk.f32.vlgmr.msra.gmra.mrb[80].mxu1 %vm1409_vm0, %v4233_v35  ;;  %9776 = vmatmul.mubr.msk.f32.vlgmr.msra.gmra.mrb[80].mxu0 %vm1409_vm0, %v4392_v1  ;;  %v5033_v17 = vld [vmem:[#allocation13 + $0x370] sm:$0xff]  ;;  %v4875_v35 = vld [vmem:[#allocation13 + $0x338] sm:$0xff] }
 0x489   : > { %10786 = vmatpush3.bf16.msra.mxu1 %v12768_v31  ;;  %10802 = vmatpush3.bf16.msra.mxu0 %v12768_v31  ;;  %v5034_v1 = vld [vmem:[#allocation13 + $0x378] sm:$0xff] }
 0x48a   : > { %10788 = vmatprep.subr.bf16.mxu1 %v12782_v38  ;;  %10804 = vmatprep.subr.bf16.mxu0 %v12782_v38 }
 0x48b   : > { %9750 = vmatprep.mubr.msk.f32.mxu1 %vm1409_vm0, %v4234_v48  ;;  %9778 = vmatprep.mubr.msk.f32.mxu0 %vm1409_vm0, %v4393_v51  ;;  %v5186_v48 = vld [vmem:[#allocation13 + $0x380] sm:$0xff] }
 0x48c   : > { %9751 = vmatmul.mubr.msk.f32.gmra.mrb[82].mxu1 %vm1409_vm0, %v4235_v37  ;;  %9779 = vmatmul.mubr.msk.f32.gmra.mrb[82].mxu0 %vm1409_vm0, %v4394_v10  ;;  %v5345_v51 = vld [vmem:[#allocation13 + $0x3c0] sm:$0xff]  ;;  %v5187_v37 = vld [vmem:[#allocation13 + $0x388] sm:$0xff] }
 0x48d   : > { %10790 = vmatpush3.bf16.msra.mxu1 %v12782_v38  ;;  %10806 = vmatpush3.bf16.msra.mxu0 %v12782_v38  ;;  %v5346_v10 = vld [vmem:[#allocation13 + $0x3c8] sm:$0xff] }
 0x48e   : > { %10792 = vmatprep.subr.bf16.mxu1 %v12795_v42  ;;  %10808 = vmatprep.subr.bf16.mxu0 %v12795_v42 }
 0x48f   : > { %9753 = vmatprep.mubr.msk.f32.mxu1 %vm1409_vm0, %v4236_v52  ;;  %9781 = vmatprep.mubr.msk.f32.mxu0 %vm1409_vm0, %v4395_v54  ;;  %v5188_v52 = vld [vmem:[#allocation13 + $0x390] sm:$0xff] }
 0x490   : > { %9754 = vmatmul.mubr.msk.f32.gmra.mrb[84].mxu1 %vm1409_vm0, %v4237_v43  ;;  %9782 = vmatmul.mubr.msk.f32.gmra.mrb[84].mxu0 %vm1409_vm0, %v4396_v63  ;;  %v5347_v54 = vld [vmem:[#allocation13 + $0x3d0] sm:$0xff]  ;;  %v5189_v43 = vld [vmem:[#allocation13 + $0x398] sm:$0xff] }
 0x491   : > { %10794 = vmatpush3.bf16.msra.mxu1 %v12795_v42  ;;  %10810 = vmatpush3.bf16.msra.mxu0 %v12795_v42  ;;  %v5348_v63 = vld [vmem:[#allocation13 + $0x3d8] sm:$0xff] }
 0x492   : > { %10796 = vmatprep.subr.bf16.mxu1 %v12807_v34  ;;  %10812 = vmatprep.subr.bf16.mxu0 %v12807_v34 }
 0x493   : > { %9756 = vmatprep.mubr.msk.f32.mxu1 %vm1409_vm0, %v4238_v23  ;;  %9784 = vmatprep.mubr.msk.f32.mxu0 %vm1409_vm0, %v4397_v47  ;;  %v5190_v23 = vld [vmem:[#allocation13 + $0x3a0] sm:$0xff] }
 0x494   : > { %9757 = vmatmul.mubr.msk.f32.gmra.mrb[86].mxu1 %vm1409_vm0, %v4239_v28  ;;  %9785 = vmatmul.mubr.msk.f32.gmra.mrb[86].mxu0 %vm1409_vm0, %v4398_v30  ;;  %v5349_v47 = vld [vmem:[#allocation13 + $0x3e0] sm:$0xff]  ;;  %v5191_v28 = vld [vmem:[#allocation13 + $0x3a8] sm:$0xff] }
 0x495   : > { %10798 = vmatpush3.bf16.msra.mxu1 %v12807_v34  ;;  %10814 = vmatpush3.bf16.msra.mxu0 %v12807_v34  ;;  %v5350_v30 = vld [vmem:[#allocation13 + $0x3e8] sm:$0xff] }
 0x496   : > { %10816 = vmatprep.subr.bf16.mxu1 %v12768_v31  ;;  %10832 = vmatprep.subr.bf16.mxu0 %v12768_v31 }
 0x497   : > { %9803 = vmatprep.mubr.msk.f32.mxu1 %vm1409_vm0, %v4550_v24  ;;  %9831 = vmatprep.mubr.msk.f32.mxu0 %vm1409_vm0, %v4709_v18  ;;  %v5192_v24 = vld [vmem:[#allocation13 + $0x3b0] sm:$0xff] }
 0x498   : > { %9804 = vmatmul.mubr.msk.f32.vlgmr.msra.gmra.mrb[88].mxu1 %vm1409_vm0, %v4551_v53  ;;  %9832 = vmatmul.mubr.msk.f32.vlgmr.msra.gmra.mrb[88].mxu0 %vm1409_vm0, %v4710_v41  ;;  %v5351_v18 = vld [vmem:[#allocation13 + $0x3f0] sm:$0xff]  ;;  %v5193_v53 = vld [vmem:[#allocation13 + $0x3b8] sm:$0xff] }
 0x499   : > { %10818 = vmatpush3.bf16.msra.mxu1 %v12768_v31  ;;  %10834 = vmatpush3.bf16.msra.mxu0 %v12768_v31  ;;  %v5352_v41 = vld [vmem:[#allocation13 + $0x3f8] sm:$0xff] }
 0x49a   : > { %10820 = vmatprep.subr.bf16.mxu1 %v12782_v38  ;;  %10836 = vmatprep.subr.bf16.mxu0 %v12782_v38 }
 0x49b   : > { %9806 = vmatprep.mubr.msk.f32.mxu1 %vm1409_vm0, %v4552_v21  ;;  %9834 = vmatprep.mubr.msk.f32.mxu0 %vm1409_vm0, %v4711_v45  ;;  %v5504_v21 = vld [vmem:[#allocation13 + $0x400] sm:$0xff] }
 0x49c   : > { %9807 = vmatmul.mubr.msk.f32.gmra.mrb[90].mxu1 %vm1409_vm0, %v4553_v14  ;;  %9835 = vmatmul.mubr.msk.f32.gmra.mrb[90].mxu0 %vm1409_vm0, %v4712_v16  ;;  %v5663_v45 = vld [vmem:[#allocation13 + $0x440] sm:$0xff]  ;;  %v5505_v14 = vld [vmem:[#allocation13 + $0x408] sm:$0xff] }
 0x49d   : > { %10822 = vmatpush3.bf16.msra.mxu1 %v12782_v38  ;;  %10838 = vmatpush3.bf16.msra.mxu0 %v12782_v38  ;;  %v5664_v16 = vld [vmem:[#allocation13 + $0x448] sm:$0xff] }
 0x49e   : > { %10824 = vmatprep.subr.bf16.mxu1 %v12795_v42  ;;  %10840 = vmatprep.subr.bf16.mxu0 %v12795_v42 }
 0x49f   : > { %9809 = vmatprep.mubr.msk.f32.mxu1 %vm1409_vm0, %v4554_v11  ;;  %9837 = vmatprep.mubr.msk.f32.mxu0 %vm1409_vm0, %v4713_v55  ;;  %v5506_v11 = vld [vmem:[#allocation13 + $0x410] sm:$0xff] }
 0x4a0   : > { %9810 = vmatmul.mubr.msk.f32.gmra.mrb[92].mxu1 %vm1409_vm0, %v4555_v32  ;;  %9838 = vmatmul.mubr.msk.f32.gmra.mrb[92].mxu0 %vm1409_vm0, %v4714_v56  ;;  %v5665_v55 = vld [vmem:[#allocation13 + $0x450] sm:$0xff]  ;;  %v5507_v32 = vld [vmem:[#allocation13 + $0x418] sm:$0xff] }
 0x4a1   : > { %10826 = vmatpush3.bf16.msra.mxu1 %v12795_v42  ;;  %10842 = vmatpush3.bf16.msra.mxu0 %v12795_v42  ;;  %v5666_v56 = vld [vmem:[#allocation13 + $0x458] sm:$0xff] }
 0x4a2   : > { %10828 = vmatprep.subr.bf16.mxu1 %v12807_v34  ;;  %10844 = vmatprep.subr.bf16.mxu0 %v12807_v34 }
 0x4a3   : > { %9812 = vmatprep.mubr.msk.f32.mxu1 %vm1409_vm0, %v4556_v13  ;;  %9840 = vmatprep.mubr.msk.f32.mxu0 %vm1409_vm0, %v4715_v60  ;;  %v5508_v13 = vld [vmem:[#allocation13 + $0x420] sm:$0xff] }
 0x4a4   : > { %9813 = vmatmul.mubr.msk.f32.gmra.mrb[94].mxu1 %vm1409_vm0, %v4557_v46  ;;  %9841 = vmatmul.mubr.msk.f32.gmra.mrb[94].mxu0 %vm1409_vm0, %v4716_v59  ;;  %v5667_v60 = vld [vmem:[#allocation13 + $0x460] sm:$0xff]  ;;  %v5509_v46 = vld [vmem:[#allocation13 + $0x428] sm:$0xff] }
 0x4a5   : > { %10830 = vmatpush3.bf16.msra.mxu1 %v12807_v34  ;;  %10846 = vmatpush3.bf16.msra.mxu0 %v12807_v34  ;;  %v5668_v59 = vld [vmem:[#allocation13 + $0x468] sm:$0xff] }
 0x4a6   : > { %10848 = vmatprep.subr.bf16.mxu1 %v12768_v31  ;;  %10864 = vmatprep.subr.bf16.mxu0 %v12768_v31 }
 0x4a7   : > { %9859 = vmatprep.mubr.msk.f32.mxu1 %vm1409_vm0, %v4868_v29  ;;  %9887 = vmatprep.mubr.msk.f32.mxu0 %vm1409_vm0, %v5027_v15  ;;  %v5510_v29 = vld [vmem:[#allocation13 + $0x430] sm:$0xff] }
 0x4a8   : > { %9860 = vmatmul.mubr.msk.f32.vlgmr.msra.gmra.mrb[96].mxu1 %vm1409_vm0, %v4869_v4  ;;  %9888 = vmatmul.mubr.msk.f32.vlgmr.msra.gmra.mrb[96].mxu0 %vm1409_vm0, %v5028_v27  ;;  %v5669_v15 = vld [vmem:[#allocation13 + $0x470] sm:$0xff]  ;;  %v5511_v4 = vld [vmem:[#allocation13 + $0x438] sm:$0xff] }
 0x4a9   : > { %10850 = vmatpush3.bf16.msra.mxu1 %v12768_v31  ;;  %10866 = vmatpush3.bf16.msra.mxu0 %v12768_v31  ;;  %v5670_v27 = vld [vmem:[#allocation13 + $0x478] sm:$0xff] }
 0x4aa   : > { %10852 = vmatprep.subr.bf16.mxu1 %v12782_v38  ;;  %10868 = vmatprep.subr.bf16.mxu0 %v12782_v38 }
 0x4ab   : > { %9862 = vmatprep.mubr.msk.f32.mxu1 %vm1409_vm0, %v4870_v39  ;;  %9890 = vmatprep.mubr.msk.f32.mxu0 %vm1409_vm0, %v5029_v61  ;;  %v5822_v39 = vld [vmem:[#allocation13 + $0x480] sm:$0xff] }
 0x4ac   : > { %9863 = vmatmul.mubr.msk.f32.gmra.mrb[98].mxu1 %vm1409_vm0, %v4871_v57  ;;  %9891 = vmatmul.mubr.msk.f32.gmra.mrb[98].mxu0 %vm1409_vm0, %v5030_v50  ;;  %v5981_v61 = vld [vmem:[#allocation13 + $0x4c0] sm:$0xff]  ;;  %v5823_v57 = vld [vmem:[#allocation13 + $0x488] sm:$0xff] }
 0x4ad   : > { %10854 = vmatpush3.bf16.msra.mxu1 %v12782_v38  ;;  %10870 = vmatpush3.bf16.msra.mxu0 %v12782_v38  ;;  %v5982_v50 = vld [vmem:[#allocation13 + $0x4c8] sm:$0xff] }
 0x4ae   : > { %10856 = vmatprep.subr.bf16.mxu1 %v12795_v42  ;;  %10872 = vmatprep.subr.bf16.mxu0 %v12795_v42 }
 0x4af   : > { %9865 = vmatprep.mubr.msk.f32.mxu1 %vm1409_vm0, %v4872_v40  ;;  %9893 = vmatprep.mubr.msk.f32.mxu0 %vm1409_vm0, %v5031_v49  ;;  %v5824_v40 = vld [vmem:[#allocation13 + $0x490] sm:$0xff] }
 0x4b0   : > { %9866 = vmatmul.mubr.msk.f32.gmra.mrb[100].mxu1 %vm1409_vm0, %v4873_v62  ;;  %9894 = vmatmul.mubr.msk.f32.gmra.mrb[100].mxu0 %vm1409_vm0, %v5032_v6  ;;  %v5983_v49 = vld [vmem:[#allocation13 + $0x4d0] sm:$0xff]  ;;  %v5825_v62 = vld [vmem:[#allocation13 + $0x498] sm:$0xff] }
 0x4b1   : > { %10858 = vmatpush3.bf16.msra.mxu1 %v12795_v42  ;;  %10874 = vmatpush3.bf16.msra.mxu0 %v12795_v42  ;;  %v5984_v6 = vld [vmem:[#allocation13 + $0x4d8] sm:$0xff] }
 0x4b2   : > { %10860 = vmatprep.subr.bf16.mxu1 %v12807_v34  ;;  %10876 = vmatprep.subr.bf16.mxu0 %v12807_v34 }
 0x4b3   : > { %9868 = vmatprep.mubr.msk.f32.mxu1 %vm1409_vm0, %v4874_v3  ;;  %9896 = vmatprep.mubr.msk.f32.mxu0 %vm1409_vm0, %v5033_v17  ;;  %v5826_v3 = vld [vmem:[#allocation13 + $0x4a0] sm:$0xff] }
 0x4b4   : > { %9869 = vmatmul.mubr.msk.f32.gmra.mrb[102].mxu1 %vm1409_vm0, %v4875_v35  ;;  %9897 = vmatmul.mubr.msk.f32.gmra.mrb[102].mxu0 %vm1409_vm0, %v5034_v1  ;;  %v5985_v17 = vld [vmem:[#allocation13 + $0x4e0] sm:$0xff]  ;;  %v5827_v35 = vld [vmem:[#allocation13 + $0x4a8] sm:$0xff] }
 0x4b5   : > { %10862 = vmatpush3.bf16.msra.mxu1 %v12807_v34  ;;  %10878 = vmatpush3.bf16.msra.mxu0 %v12807_v34  ;;  %v5986_v1 = vld [vmem:[#allocation13 + $0x4e8] sm:$0xff] }
 0x4b6   : > { %10880 = vmatprep.subr.bf16.mxu1 %v12768_v31  ;;  %10896 = vmatprep.subr.bf16.mxu0 %v12768_v31 }
 0x4b7   : > { %9915 = vmatprep.mubr.msk.f32.mxu1 %vm1409_vm0, %v5186_v48  ;;  %9943 = vmatprep.mubr.msk.f32.mxu0 %vm1409_vm0, %v5345_v51  ;;  %v5828_v48 = vld [vmem:[#allocation13 + $0x4b0] sm:$0xff] }
 0x4b8   : > { %9916 = vmatmul.mubr.msk.f32.vlgmr.msra.gmra.mrb[104].mxu1 %vm1409_vm0, %v5187_v37  ;;  %9944 = vmatmul.mubr.msk.f32.vlgmr.msra.gmra.mrb[104].mxu0 %vm1409_vm0, %v5346_v10  ;;  %v5987_v51 = vld [vmem:[#allocation13 + $0x4f0] sm:$0xff]  ;;  %v5829_v37 = vld [vmem:[#allocation13 + $0x4b8] sm:$0xff] }
 0x4b9   : > { %10882 = vmatpush3.bf16.msra.mxu1 %v12768_v31  ;;  %10898 = vmatpush3.bf16.msra.mxu0 %v12768_v31  ;;  %v5988_v10 = vld [vmem:[#allocation13 + $0x4f8] sm:$0xff] }
 0x4ba   : > { %10884 = vmatprep.subr.bf16.mxu1 %v12782_v38  ;;  %10900 = vmatprep.subr.bf16.mxu0 %v12782_v38 }
 0x4bb   : > { %9918 = vmatprep.mubr.msk.f32.mxu1 %vm1409_vm0, %v5188_v52  ;;  %9946 = vmatprep.mubr.msk.f32.mxu0 %vm1409_vm0, %v5347_v54  ;;  %v6140_v52 = vld [vmem:[#allocation13 + $0x500] sm:$0xff] }
 0x4bc   : > { %9919 = vmatmul.mubr.msk.f32.gmra.mrb[106].mxu1 %vm1409_vm0, %v5189_v43  ;;  %9947 = vmatmul.mubr.msk.f32.gmra.mrb[106].mxu0 %vm1409_vm0, %v5348_v63  ;;  %v6299_v54 = vld [vmem:[#allocation13 + $0x540] sm:$0xff]  ;;  %v6141_v43 = vld [vmem:[#allocation13 + $0x508] sm:$0xff] }
 0x4bd   : > { %10886 = vmatpush3.bf16.msra.mxu1 %v12782_v38  ;;  %10902 = vmatpush3.bf16.msra.mxu0 %v12782_v38  ;;  %v6300_v63 = vld [vmem:[#allocation13 + $0x548] sm:$0xff] }
 0x4be   : > { %10888 = vmatprep.subr.bf16.mxu1 %v12795_v42  ;;  %10904 = vmatprep.subr.bf16.mxu0 %v12795_v42 }
 0x4bf   : > { %9921 = vmatprep.mubr.msk.f32.mxu1 %vm1409_vm0, %v5190_v23  ;;  %9949 = vmatprep.mubr.msk.f32.mxu0 %vm1409_vm0, %v5349_v47  ;;  %v6142_v23 = vld [vmem:[#allocation13 + $0x510] sm:$0xff] }
 0x4c0   : > { %9922 = vmatmul.mubr.msk.f32.gmra.mrb[108].mxu1 %vm1409_vm0, %v5191_v28  ;;  %9950 = vmatmul.mubr.msk.f32.gmra.mrb[108].mxu0 %vm1409_vm0, %v5350_v30  ;;  %v6301_v47 = vld [vmem:[#allocation13 + $0x550] sm:$0xff]  ;;  %v6143_v28 = vld [vmem:[#allocation13 + $0x518] sm:$0xff] }
 0x4c1   : > { %10890 = vmatpush3.bf16.msra.mxu1 %v12795_v42  ;;  %10906 = vmatpush3.bf16.msra.mxu0 %v12795_v42  ;;  %v6302_v30 = vld [vmem:[#allocation13 + $0x558] sm:$0xff] }
 0x4c2   : > { %10892 = vmatprep.subr.bf16.mxu1 %v12807_v34  ;;  %10908 = vmatprep.subr.bf16.mxu0 %v12807_v34 }
 0x4c3   : > { %9924 = vmatprep.mubr.msk.f32.mxu1 %vm1409_vm0, %v5192_v24  ;;  %9952 = vmatprep.mubr.msk.f32.mxu0 %vm1409_vm0, %v5351_v18  ;;  %v6144_v24 = vld [vmem:[#allocation13 + $0x520] sm:$0xff] }
 0x4c4   : > { %9925 = vmatmul.mubr.msk.f32.gmra.mrb[110].mxu1 %vm1409_vm0, %v5193_v53  ;;  %9953 = vmatmul.mubr.msk.f32.gmra.mrb[110].mxu0 %vm1409_vm0, %v5352_v41  ;;  %v6303_v18 = vld [vmem:[#allocation13 + $0x560] sm:$0xff]  ;;  %v6145_v53 = vld [vmem:[#allocation13 + $0x528] sm:$0xff] }
 0x4c5   : > { %10894 = vmatpush3.bf16.msra.mxu1 %v12807_v34  ;;  %10910 = vmatpush3.bf16.msra.mxu0 %v12807_v34  ;;  %v6304_v41 = vld [vmem:[#allocation13 + $0x568] sm:$0xff] }
 0x4c6   : > { %10912 = vmatprep.subr.bf16.mxu1 %v12768_v31  ;;  %10928 = vmatprep.subr.bf16.mxu0 %v12768_v31 }
 0x4c7   : > { %9971 = vmatprep.mubr.msk.f32.mxu1 %vm1409_vm0, %v5504_v21  ;;  %9999 = vmatprep.mubr.msk.f32.mxu0 %vm1409_vm0, %v5663_v45  ;;  %v6146_v21 = vld [vmem:[#allocation13 + $0x530] sm:$0xff] }
 0x4c8   : > { %9972 = vmatmul.mubr.msk.f32.vlgmr.msra.gmra.mrb[112].mxu1 %vm1409_vm0, %v5505_v14  ;;  %10000 = vmatmul.mubr.msk.f32.vlgmr.msra.gmra.mrb[112].mxu0 %vm1409_vm0, %v5664_v16  ;;  %v6305_v45 = vld [vmem:[#allocation13 + $0x570] sm:$0xff]  ;;  %v6147_v14 = vld [vmem:[#allocation13 + $0x538] sm:$0xff] }
 0x4c9   : > { %10914 = vmatpush3.bf16.msra.mxu1 %v12768_v31  ;;  %10930 = vmatpush3.bf16.msra.mxu0 %v12768_v31  ;;  %v6306_v16 = vld [vmem:[#allocation13 + $0x578] sm:$0xff] }
 0x4ca   : > { %10916 = vmatprep.subr.bf16.mxu1 %v12782_v38  ;;  %10932 = vmatprep.subr.bf16.mxu0 %v12782_v38 }
 0x4cb   : > { %9974 = vmatprep.mubr.msk.f32.mxu1 %vm1409_vm0, %v5506_v11  ;;  %10002 = vmatprep.mubr.msk.f32.mxu0 %vm1409_vm0, %v5665_v55  ;;  %v6458_v11 = vld [vmem:[#allocation13 + $0x580] sm:$0xff] }
 0x4cc   : > { %9975 = vmatmul.mubr.msk.f32.gmra.mrb[114].mxu1 %vm1409_vm0, %v5507_v32  ;;  %10003 = vmatmul.mubr.msk.f32.gmra.mrb[114].mxu0 %vm1409_vm0, %v5666_v56  ;;  %v6617_v55 = vld [vmem:[#allocation13 + $0x5c0] sm:$0xff]  ;;  %v6459_v32 = vld [vmem:[#allocation13 + $0x588] sm:$0xff] }
 0x4cd   : > { %10918 = vmatpush3.bf16.msra.mxu1 %v12782_v38  ;;  %10934 = vmatpush3.bf16.msra.mxu0 %v12782_v38  ;;  %v6618_v56 = vld [vmem:[#allocation13 + $0x5c8] sm:$0xff] }
 0x4ce   : > { %10920 = vmatprep.subr.bf16.mxu1 %v12795_v42  ;;  %10936 = vmatprep.subr.bf16.mxu0 %v12795_v42 }
 0x4cf   : > { %9977 = vmatprep.mubr.msk.f32.mxu1 %vm1409_vm0, %v5508_v13  ;;  %10005 = vmatprep.mubr.msk.f32.mxu0 %vm1409_vm0, %v5667_v60  ;;  %v6460_v13 = vld [vmem:[#allocation13 + $0x590] sm:$0xff] }
 0x4d0   : > { %9978 = vmatmul.mubr.msk.f32.gmra.mrb[116].mxu1 %vm1409_vm0, %v5509_v46  ;;  %10006 = vmatmul.mubr.msk.f32.gmra.mrb[116].mxu0 %vm1409_vm0, %v5668_v59  ;;  %v6619_v60 = vld [vmem:[#allocation13 + $0x5d0] sm:$0xff]  ;;  %v6461_v46 = vld [vmem:[#allocation13 + $0x598] sm:$0xff] }
 0x4d1   : > { %10922 = vmatpush3.bf16.msra.mxu1 %v12795_v42  ;;  %10938 = vmatpush3.bf16.msra.mxu0 %v12795_v42  ;;  %v6620_v59 = vld [vmem:[#allocation13 + $0x5d8] sm:$0xff] }
 0x4d2   : > { %10924 = vmatprep.subr.bf16.mxu1 %v12807_v34  ;;  %10940 = vmatprep.subr.bf16.mxu0 %v12807_v34 }
 0x4d3   : > { %9980 = vmatprep.mubr.msk.f32.mxu1 %vm1409_vm0, %v5510_v29  ;;  %10008 = vmatprep.mubr.msk.f32.mxu0 %vm1409_vm0, %v5669_v15  ;;  %v6462_v29 = vld [vmem:[#allocation13 + $0x5a0] sm:$0xff] }
 0x4d4   : > { %9981 = vmatmul.mubr.msk.f32.gmra.mrb[118].mxu1 %vm1409_vm0, %v5511_v4  ;;  %10009 = vmatmul.mubr.msk.f32.gmra.mrb[118].mxu0 %vm1409_vm0, %v5670_v27  ;;  %v6621_v15 = vld [vmem:[#allocation13 + $0x5e0] sm:$0xff]  ;;  %v6463_v4 = vld [vmem:[#allocation13 + $0x5a8] sm:$0xff]  ;;  %v6464_v27 = vld [vmem:[#allocation13 + $0x5b0] sm:$0xff] }
 0x4d5   : > { %10926 = vmatpush3.bf16.msra.mxu1 %v12807_v34  ;;  %10942 = vmatpush3.bf16.msra.mxu0 %v12807_v34 }
 0x4d6   : > { %10944 = vmatprep.subr.bf16.mxu1 %v12768_v31  ;;  %10960 = vmatprep.subr.bf16.mxu0 %v12768_v31 }
 0x4d7   : > { %10027 = vmatprep.mubr.msk.f32.mxu1 %vm1409_vm0, %v5822_v39  ;;  %10055 = vmatprep.mubr.msk.f32.mxu0 %vm1409_vm0, %v5981_v61  ;;  %v6623_v39 = vld [vmem:[#allocation13 + $0x5f0] sm:$0xff]  ;;  %v6465_v61 = vld [vmem:[#allocation13 + $0x5b8] sm:$0xff] }
 0x4d8   : > { %10028 = vmatmul.mubr.msk.f32.vlgmr.msra.gmra.mrb[120].mxu1 %vm1409_vm0, %v5823_v57  ;;  %10056 = vmatmul.mubr.msk.f32.vlgmr.msra.gmra.mrb[120].mxu0 %vm1409_vm0, %v5982_v50  ;;  %v6776_v57 = vld [vmem:[#allocation13 + $0x600] sm:$0xff]  ;;  %v6777_v50 = vld [vmem:[#allocation13 + $0x608] sm:$0xff] }
 0x4d9   : > { %10946 = vmatpush3.bf16.msra.mxu1 %v12768_v31  ;;  %10962 = vmatpush3.bf16.msra.mxu0 %v12768_v31 }
 0x4da   : > { %10948 = vmatprep.subr.bf16.mxu1 %v12782_v38  ;;  %10964 = vmatprep.subr.bf16.mxu0 %v12782_v38 }
 0x4db   : > { %10030 = vmatprep.mubr.msk.f32.mxu1 %vm1409_vm0, %v5824_v40  ;;  %10058 = vmatprep.mubr.msk.f32.mxu0 %vm1409_vm0, %v5983_v49  ;;  %v6778_v40 = vld [vmem:[#allocation13 + $0x610] sm:$0xff]  ;;  %v6780_v49 = vld [vmem:[#allocation13 + $0x620] sm:$0xff] }
 0x4dc   : > { %10031 = vmatmul.mubr.msk.f32.gmra.mrb[122].mxu1 %vm1409_vm0, %v5825_v62  ;;  %10059 = vmatmul.mubr.msk.f32.gmra.mrb[122].mxu0 %vm1409_vm0, %v5984_v6  ;;  %v6781_v62 = vld [vmem:[#allocation13 + $0x628] sm:$0xff]  ;;  %v6782_v6 = vld [vmem:[#allocation13 + $0x630] sm:$0xff] }
 0x4dd   : > { %10950 = vmatpush3.bf16.msra.mxu1 %v12782_v38  ;;  %10966 = vmatpush3.bf16.msra.mxu0 %v12782_v38 }
 0x4de   : > { %10952 = vmatprep.subr.bf16.mxu1 %v12795_v42  ;;  %10968 = vmatprep.subr.bf16.mxu0 %v12795_v42 }
 0x4df   : > { %10033 = vmatprep.mubr.msk.f32.mxu1 %vm1409_vm0, %v5826_v3  ;;  %10061 = vmatprep.mubr.msk.f32.mxu0 %vm1409_vm0, %v5985_v17  ;;  %v8181_v3 = vld [vmem:[%s13691_s23] ss:$0 sm:$0xff]  ;;  %v8190_v17 = vld [vmem:[%s13691_s23 + $0x1] ss:$0 sm:$0xff] }
 0x4e0   : > { %10034 = vmatmul.mubr.msk.f32.gmra.mrb[124].mxu1 %vm1409_vm0, %v5827_v35  ;;  %10062 = vmatmul.mubr.msk.f32.gmra.mrb[124].mxu0 %vm1409_vm0, %v5986_v1 }
 0x4e1   : > { %10954 = vmatpush3.bf16.msra.mxu1 %v12795_v42  ;;  %10970 = vmatpush3.bf16.msra.mxu0 %v12795_v42 }
 0x4e2   : > { %10956 = vmatprep.subr.bf16.mxu1 %v12807_v34  ;;  %10972 = vmatprep.subr.bf16.mxu0 %v12807_v34 }
 0x4e3   : > { %10036 = vmatprep.mubr.msk.f32.mxu1 %vm1409_vm0, %v5828_v48  ;;  %10064 = vmatprep.mubr.msk.f32.mxu0 %vm1409_vm0, %v5987_v51 }
 0x4e4   : > { %10037 = vmatmul.mubr.msk.f32.gmra.mrb[126].mxu1 %vm1409_vm0, %v5829_v37  ;;  %10065 = vmatmul.mubr.msk.f32.gmra.mrb[126].mxu0 %vm1409_vm0, %v5988_v10 }
 0x4e5   : > { %10958 = vmatpush3.bf16.msra.mxu1 %v12807_v34  ;;  %10974 = vmatpush3.bf16.msra.mxu0 %v12807_v34 }
 0x4e6   : > { %10976 = vmatprep.subr.bf16.mxu1 %v12768_v31  ;;  %10992 = vmatprep.subr.bf16.mxu0 %v12768_v31 }
 0x4e7   : > { %10083 = vmatprep.mubr.msk.f32.mxu1 %vm1409_vm0, %v6140_v52  ;;  %10111 = vmatprep.mubr.msk.f32.mxu0 %vm1409_vm0, %v6299_v54 }
 0x4e8   : > { %10084 = vmatmul.mubr.msk.f32.vlgmr.msra.gmra.mrb[128].mxu1 %vm1409_vm0, %v6141_v43  ;;  %10112 = vmatmul.mubr.msk.f32.vlgmr.msra.gmra.mrb[128].mxu0 %vm1409_vm0, %v6300_v63 }
 0x4e9   : > { %10978 = vmatpush3.bf16.msra.mxu1 %v12768_v31  ;;  %10994 = vmatpush3.bf16.msra.mxu0 %v12768_v31 }
 0x4ea   : > { %10980 = vmatprep.subr.bf16.mxu1 %v12782_v38  ;;  %10996 = vmatprep.subr.bf16.mxu0 %v12782_v38 }
 0x4eb   : > { %10086 = vmatprep.mubr.msk.f32.mxu1 %vm1409_vm0, %v6142_v23  ;;  %10114 = vmatprep.mubr.msk.f32.mxu0 %vm1409_vm0, %v6301_v47 }
 0x4ec   : > { %10087 = vmatmul.mubr.msk.f32.gmra.mrb[130].mxu1 %vm1409_vm0, %v6143_v28  ;;  %10115 = vmatmul.mubr.msk.f32.gmra.mrb[130].mxu0 %vm1409_vm0, %v6302_v30 }
 0x4ed   : > { %10982 = vmatpush3.bf16.msra.mxu1 %v12782_v38  ;;  %10998 = vmatpush3.bf16.msra.mxu0 %v12782_v38 }
 0x4ee   : > { %10984 = vmatprep.subr.bf16.mxu1 %v12795_v42  ;;  %11000 = vmatprep.subr.bf16.mxu0 %v12795_v42 }
 0x4ef   : > { %10089 = vmatprep.mubr.msk.f32.mxu1 %vm1409_vm0, %v6144_v24  ;;  %10117 = vmatprep.mubr.msk.f32.mxu0 %vm1409_vm0, %v6303_v18 }
 0x4f0   : > { %10090 = vmatmul.mubr.msk.f32.gmra.mrb[132].mxu1 %vm1409_vm0, %v6145_v53  ;;  %10118 = vmatmul.mubr.msk.f32.gmra.mrb[132].mxu0 %vm1409_vm0, %v6304_v41 }
 0x4f1   : > { %10986 = vmatpush3.bf16.msra.mxu1 %v12795_v42  ;;  %11002 = vmatpush3.bf16.msra.mxu0 %v12795_v42 }
 0x4f2   : > { %10988 = vmatprep.subr.bf16.mxu1 %v12807_v34  ;;  %11004 = vmatprep.subr.bf16.mxu0 %v12807_v34 }
 0x4f3   : > { %10092 = vmatprep.mubr.msk.f32.mxu1 %vm1409_vm0, %v6146_v21  ;;  %10120 = vmatprep.mubr.msk.f32.mxu0 %vm1409_vm0, %v6305_v45 }
 0x4f4   : > { %10093 = vmatmul.mubr.msk.f32.gmra.mrb[134].mxu1 %vm1409_vm0, %v6147_v14  ;;  %10121 = vmatmul.mubr.msk.f32.gmra.mrb[134].mxu0 %vm1409_vm0, %v6306_v16 }
 0x4f5   : > { %10990 = vmatpush3.bf16.msra.mxu1 %v12807_v34  ;;  %11006 = vmatpush3.bf16.msra.mxu0 %v12807_v34 }
 0x4f6   : > { %11008 = vmatprep.subr.bf16.mxu1 %v12768_v31  ;;  %10139 = vmatprep.mubr.msk.f32.mxu1 %vm1409_vm0, %v6458_v11 }
 0x4f7   : > { %10167 = vmatprep.mubr.msk.f32.mxu0 %vm1409_vm0, %v6617_v55 }
 0x4f8   : > { %10140 = vmatmul.mubr.msk.f32.vlgmr.msra.gmra.mrb[136].mxu1 %vm1409_vm0, %v6459_v32  ;;  %10168 = vmatmul.mubr.msk.f32.vlgmr.msra.gmra.mrb[136].mxu0 %vm1409_vm0, %v6618_v56 }
 0x4f9   : > { %11010 = vmatpush3.bf16.msra.mxu1 %v12768_v31  ;;  %10142 = vmatprep.mubr.msk.f32.mxu1 %vm1409_vm0, %v6460_v13  ;;  %v6622_v31 = vld [vmem:[#allocation13 + $0x5e8] sm:$0xff] }
 0x4fa   : > { %11012 = vmatprep.subr.bf16.mxu1 %v12782_v38  ;;  %10170 = vmatprep.mubr.msk.f32.mxu0 %vm1409_vm0, %v6619_v60 }
 0x4fc   : > { %10143 = vmatmul.mubr.msk.f32.gmra.mrb[138].mxu1 %vm1409_vm0, %v6461_v46  ;;  %10171 = vmatmul.mubr.msk.f32.gmra.mrb[138].mxu0 %vm1409_vm0, %v6620_v59 }
 0x4fd   : > { %11014 = vmatpush3.bf16.msra.mxu1 %v12782_v38  ;;  %10145 = vmatprep.mubr.msk.f32.mxu1 %vm1409_vm0, %v6462_v29  ;;  %v6624_v38 = vld [vmem:[#allocation13 + $0x5f8] sm:$0xff] }
 0x4fe   : > { %11016 = vmatprep.subr.bf16.mxu1 %v12795_v42  ;;  %10173 = vmatprep.mubr.msk.f32.mxu0 %vm1409_vm0, %v6621_v15 }
 0x500   : > { %10146 = vmatmul.mubr.msk.f32.gmra.mrb[140].mxu1 %vm1409_vm0, %v6463_v4  ;;  %10174 = vmatmul.mubr.msk.f32.gmra.mrb[140].mxu0 %vm1409_vm0, %v6622_v31 }
 0x501   : > { %11018 = vmatpush3.bf16.msra.mxu1 %v12795_v42  ;;  %10148 = vmatprep.mubr.msk.f32.mxu1 %vm1409_vm0, %v6464_v27  ;;  %v6779_v42 = vld [vmem:[#allocation13 + $0x618] sm:$0xff] }
 0x502   : > { %11020 = vmatprep.subr.bf16.mxu1 %v12807_v34  ;;  %10176 = vmatprep.mubr.msk.f32.mxu0 %vm1409_vm0, %v6623_v39 }
 0x504   : > { %10149 = vmatmul.mubr.msk.f32.gmra.mrb[142].mxu1 %vm1409_vm0, %v6465_v61  ;;  %10177 = vmatmul.mubr.msk.f32.gmra.mrb[142].mxu0 %vm1409_vm0, %v6624_v38 }
 0x505   : > { %11022 = vmatpush3.bf16.msra.mxu1 %v12807_v34  ;;  %10195 = vmatprep.mubr.msk.f32.mxu1 %vm1409_vm0, %v6776_v57  ;;  %v6783_v34 = vld [vmem:[#allocation13 + $0x638] sm:$0xff]  ;;  %v8199_v57 = vld [vmem:[%s13691_s23 + $0x2] ss:$0 sm:$0xff] }
 0x508   : > { %10196 = vmatmul.mubr.msk.f32.vlgmr.msra.gmra.mrb[144].mxu1 %vm1409_vm0, %v6777_v50  ;;  %v8208_v50 = vld [vmem:[%s13691_s23 + $0x3] ss:$0 sm:$0xff] }
 0x509   : > { %10198 = vmatprep.mubr.msk.f32.mxu1 %vm1409_vm0, %v6778_v40 }
 0x50c   : > { %10199 = vmatmul.mubr.msk.f32.gmra.mrb[146].mxu1 %vm1409_vm0, %v6779_v42 }
 0x50d   : > { %10201 = vmatprep.mubr.msk.f32.mxu1 %vm1409_vm0, %v6780_v49 }
 0x510   : > { %10202 = vmatmul.mubr.msk.f32.gmra.mrb[148].mxu1 %vm1409_vm0, %v6781_v62 }
 0x511   : > { %10204 = vmatprep.mubr.msk.f32.mxu1 %vm1409_vm0, %v6782_v6 }
 0x514   : > { %10205 = vmatmul.mubr.msk.f32.gmra.mrb[150].mxu1 %vm1409_vm0, %v6783_v34 }
 0x51b   : > { %v9525_v35 = vpop.f32.mrb[48].mxu1  ;;  %v9553_v1 = vpop.f32.mrb[48].mxu0 }
 0x51c   : > { %v3103_v48 = vmul.f32 %v9525_v35, %v8181_v3  ;;  %v3262_v51 = vmul.f32 %v9553_v1, %v8190_v17  ;;  %v3058_v37 = vpop.f32.mrb[49].mxu1  ;;  %v3217_v10 = vpop.f32.mrb[49].mxu0 }
 0x51d   : > { %v3102_v52 = vmul.f32 %v8181_v3, %v3058_v37  ;;  %v3261_v54 = vmul.f32 %v8190_v17, %v3217_v10 }
 0x51e   : > { %v3270_v43 = vadd.f32 %v3262_v51, %v3103_v48 }
 0x51f   : > { %v3269_v63 = vadd.f32 %v3261_v54, %v3102_v52  ;;  %v9528_v23 = vpop.f32.mrb[50].mxu1  ;;  %v9556_v47 = vpop.f32.mrb[50].mxu0 }
 0x520   : > { %v3105_v28 = vmul.f32 %v9528_v23, %v8181_v3  ;;  %v3264_v30 = vmul.f32 %v9556_v47, %v8190_v17  ;;  %v3068_v24 = vpop.f32.mrb[51].mxu1  ;;  %v3227_v18 = vpop.f32.mrb[51].mxu0 }
 0x521   : > { %v3104_v53 = vmul.f32 %v8181_v3, %v3068_v24  ;;  %v3263_v41 = vmul.f32 %v8190_v17, %v3227_v18 }
 0x522   : > { %v3272_v21 = vadd.f32 %v3264_v30, %v3105_v28 }
 0x523   : > { %v3271_v45 = vadd.f32 %v3263_v41, %v3104_v53  ;;  %v9531_v14 = vpop.f32.mrb[52].mxu1  ;;  %v9559_v16 = vpop.f32.mrb[52].mxu0 }
 0x524   : > { %v3107_v11 = vmul.f32 %v9531_v14, %v8181_v3  ;;  %v3266_v55 = vmul.f32 %v9559_v16, %v8190_v17  ;;  %v3078_v32 = vpop.f32.mrb[53].mxu1  ;;  %v3237_v56 = vpop.f32.mrb[53].mxu0 }
 0x525   : > { %v3106_v13 = vmul.f32 %v8181_v3, %v3078_v32  ;;  %v3265_v60 = vmul.f32 %v8190_v17, %v3237_v56 }
 0x526   : > { %v3274_v46 = vadd.f32 %v3266_v55, %v3107_v11 }
 0x527   : > { %v3273_v59 = vadd.f32 %v3265_v60, %v3106_v13  ;;  %v9534_v29 = vpop.f32.mrb[54].mxu1  ;;  %v9562_v15 = vpop.f32.mrb[54].mxu0 }
 0x528   : > { %v3109_v4 = vmul.f32 %v9534_v29, %v8181_v3  ;;  %v3268_v31 = vmul.f32 %v9562_v15, %v8190_v17  ;;  %v3088_v27 = vpop.f32.mrb[55].mxu1  ;;  %v3247_v39 = vpop.f32.mrb[55].mxu0 }
 0x529   : > { %v3108_v61 = vmul.f32 %v8181_v3, %v3088_v27  ;;  %v3267_v38 = vmul.f32 %v8190_v17, %v3247_v39 }
 0x52a   : > { %v3276_v40 = vadd.f32 %v3268_v31, %v3109_v4 }
 0x52b   : > { %v3275_v42 = vadd.f32 %v3267_v38, %v3108_v61  ;;  %v9581_v49 = vpop.f32.mrb[56].mxu1  ;;  %v9609_v62 = vpop.f32.mrb[56].mxu0 }
 0x52c   : > { %v3421_v6 = vmul.f32 %v9581_v49, %v8199_v57  ;;  %v3376_v34 = vpop.f32.mrb[57].mxu1  ;;  %v3580_v35 = vmul.f32 %v9609_v62, %v8208_v50  ;;  %v3535_v1 = vpop.f32.mrb[57].mxu0 }
 0x52d   : > { %v3420_v48 = vmul.f32 %v8199_v57, %v3376_v34  ;;  %v3579_v51 = vmul.f32 %v8208_v50, %v3535_v1  ;;  %v8226_v34 = vld [vmem:[%s13691_s23 + $0x5] ss:$0 sm:$0xff] }
 0x52e   : > { %v3429_v3 = vadd.f32 %v3421_v6, %v3270_v43  ;;  %v8217_v6 = vld [vmem:[%s13691_s23 + $0x4] ss:$0 sm:$0xff] }
 0x52f   : > { %v3428_v17 = vadd.f32 %v3420_v48, %v3269_v63  ;;  %v9584_v37 = vpop.f32.mrb[58].mxu1  ;;  %v9612_v10 = vpop.f32.mrb[58].mxu0 }
 0x530   : > { %v3588_v52 = vadd.f32 %v3580_v35, %v3429_v3  ;;  %v3423_v54 = vmul.f32 %v9584_v37, %v8199_v57  ;;  %v3386_v23 = vpop.f32.mrb[59].mxu1  ;;  %v3582_v47 = vmul.f32 %v9612_v10, %v8208_v50  ;;  %v3545_v28 = vpop.f32.mrb[59].mxu0 }
 0x531   : > { %v3587_v30 = vadd.f32 %v3579_v51, %v3428_v17  ;;  %v3422_v24 = vmul.f32 %v8199_v57, %v3386_v23  ;;  %v3581_v18 = vmul.f32 %v8208_v50, %v3545_v28 }
 0x532   : > { %v3431_v53 = vadd.f32 %v3423_v54, %v3272_v21 }
 0x533   : > { %v3430_v41 = vadd.f32 %v3422_v24, %v3271_v45  ;;  %v9587_v14 = vpop.f32.mrb[60].mxu1  ;;  %v9615_v16 = vpop.f32.mrb[60].mxu0 }
 0x534   : > { %v3590_v11 = vadd.f32 %v3582_v47, %v3431_v53  ;;  %v3425_v55 = vmul.f32 %v9587_v14, %v8199_v57  ;;  %v3396_v32 = vpop.f32.mrb[61].mxu1  ;;  %v3584_v56 = vmul.f32 %v9615_v16, %v8208_v50  ;;  %v3555_v43 = vpop.f32.mrb[61].mxu0 }
 0x535   : > { %v3589_v63 = vadd.f32 %v3581_v18, %v3430_v41  ;;  %v3424_v13 = vmul.f32 %v8199_v57, %v3396_v32  ;;  %v3583_v60 = vmul.f32 %v8208_v50, %v3555_v43 }
 0x536   : > { %v3433_v29 = vadd.f32 %v3425_v55, %v3274_v46 }
 0x537   : > { %v3432_v15 = vadd.f32 %v3424_v13, %v3273_v59  ;;  %v9590_v4 = vpop.f32.mrb[62].mxu1  ;;  %v9618_v31 = vpop.f32.mrb[62].mxu0 }
 0x538   : > { %v3592_v27 = vadd.f32 %v3584_v56, %v3433_v29  ;;  %v3427_v39 = vmul.f32 %v9590_v4, %v8199_v57  ;;  %v3406_v61 = vpop.f32.mrb[63].mxu1  ;;  %v3586_v38 = vmul.f32 %v9618_v31, %v8208_v50  ;;  %v3565_v21 = vpop.f32.mrb[63].mxu0 }
 0x539   : > { %v3591_v45 = vadd.f32 %v3583_v60, %v3432_v15  ;;  %v3426_v49 = vmul.f32 %v8199_v57, %v3406_v61  ;;  %v3585_v62 = vmul.f32 %v8208_v50, %v3565_v21 }
 0x53a   : > { %v3435_v46 = vadd.f32 %v3427_v39, %v3276_v40 }
 0x53b   : > { %v3434_v59 = vadd.f32 %v3426_v49, %v3275_v42  ;;  %v9637_v35 = vpop.f32.mrb[64].mxu1  ;;  %v9665_v1 = vpop.f32.mrb[64].mxu0 }
 0x53c   : > { %v3594_v48 = vadd.f32 %v3586_v38, %v3435_v46  ;;  %v3739_v51 = vmul.f32 %v9637_v35, %v8217_v6  ;;  %v3694_v3 = vpop.f32.mrb[65].mxu1  ;;  %v3898_v17 = vmul.f32 %v9665_v1, %v8226_v34  ;;  %v3853_v37 = vpop.f32.mrb[65].mxu0 }
 0x53d   : > { %v3593_v10 = vadd.f32 %v3585_v62, %v3434_v59  ;;  %v3738_v57 = vmul.f32 %v8217_v6, %v3694_v3  ;;  %v3897_v50 = vmul.f32 %v8226_v34, %v3853_v37  ;;  %v8244_v3 = vld [vmem:[%s13691_s23 + $0x7] ss:$0 sm:$0xff] }
 0x53e   : > { %v3747_v54 = vadd.f32 %v3739_v51, %v3588_v52  ;;  %v8235_v51 = vld [vmem:[%s13691_s23 + $0x6] ss:$0 sm:$0xff] }
 0x53f   : > { %v3746_v23 = vadd.f32 %v3738_v57, %v3587_v30  ;;  %v9640_v47 = vpop.f32.mrb[66].mxu1  ;;  %v9668_v28 = vpop.f32.mrb[66].mxu0 }
 0x540   : > { %v3906_v24 = vadd.f32 %v3898_v17, %v3747_v54  ;;  %v3741_v18 = vmul.f32 %v9640_v47, %v8217_v6  ;;  %v3704_v53 = vpop.f32.mrb[67].mxu1  ;;  %v3900_v41 = vmul.f32 %v9668_v28, %v8226_v34  ;;  %v3863_v40 = vpop.f32.mrb[67].mxu0 }
 0x541   : > { %v3905_v42 = vadd.f32 %v3897_v50, %v3746_v23  ;;  %v3740_v14 = vmul.f32 %v8217_v6, %v3704_v53  ;;  %v3899_v16 = vmul.f32 %v8226_v34, %v3863_v40 }
 0x542   : > { %v3749_v55 = vadd.f32 %v3741_v18, %v3590_v11 }
 0x543   : > { %v3748_v32 = vadd.f32 %v3740_v14, %v3589_v63  ;;  %v9643_v56 = vpop.f32.mrb[68].mxu1  ;;  %v9671_v43 = vpop.f32.mrb[68].mxu0 }
 0x544   : > { %v3908_v13 = vadd.f32 %v3900_v41, %v3749_v55  ;;  %v3743_v60 = vmul.f32 %v9643_v56, %v8217_v6  ;;  %v3714_v29 = vpop.f32.mrb[69].mxu1  ;;  %v3902_v15 = vmul.f32 %v9671_v43, %v8226_v34  ;;  %v3873_v52 = vpop.f32.mrb[69].mxu0 }
 0x545   : > { %v3907_v30 = vadd.f32 %v3899_v16, %v3748_v32  ;;  %v3742_v4 = vmul.f32 %v8217_v6, %v3714_v29  ;;  %v3901_v31 = vmul.f32 %v8226_v34, %v3873_v52 }
 0x546   : > { %v3751_v39 = vadd.f32 %v3743_v60, %v3592_v27 }
 0x547   : > { %v3750_v61 = vadd.f32 %v3742_v4, %v3591_v45  ;;  %v9646_v38 = vpop.f32.mrb[70].mxu1  ;;  %v9674_v21 = vpop.f32.mrb[70].mxu0 }
 0x548   : > { %v3910_v49 = vadd.f32 %v3902_v15, %v3751_v39  ;;  %v3745_v62 = vmul.f32 %v9646_v38, %v8217_v6  ;;  %v3724_v46 = vpop.f32.mrb[71].mxu1  ;;  %v3904_v59 = vmul.f32 %v9674_v21, %v8226_v34  ;;  %v3883_v11 = vpop.f32.mrb[71].mxu0 }
 0x549   : > { %v3909_v63 = vadd.f32 %v3901_v31, %v3750_v61  ;;  %v3744_v35 = vmul.f32 %v8217_v6, %v3724_v46  ;;  %v3903_v1 = vmul.f32 %v8226_v34, %v3883_v11 }
 0x54a   : > { %v3753_v27 = vadd.f32 %v3745_v62, %v3594_v48 }
 0x54b   : > { %v3752_v45 = vadd.f32 %v3744_v35, %v3593_v10  ;;  %v9693_v17 = vpop.f32.mrb[72].mxu1  ;;  %v9721_v37 = vpop.f32.mrb[72].mxu0 }
 0x54c   : > { %v3912_v57 = vadd.f32 %v3904_v59, %v3753_v27  ;;  %v4057_v50 = vmul.f32 %v9693_v17, %v8235_v51  ;;  %v4012_v54 = vpop.f32.mrb[73].mxu1  ;;  %v4216_v23 = vmul.f32 %v9721_v37, %v8244_v3  ;;  %v4171_v47 = vpop.f32.mrb[73].mxu0 }
 0x54d   : > { %v3911_v28 = vadd.f32 %v3903_v1, %v3752_v45  ;;  %v4056_v6 = vmul.f32 %v8235_v51, %v4012_v54  ;;  %v4215_v34 = vmul.f32 %v8244_v3, %v4171_v47  ;;  %v8262_v54 = vld [vmem:[%s13691_s23 + $0x9] ss:$0 sm:$0xff] }
 0x54e   : > { %v4065_v18 = vadd.f32 %v4057_v50, %v3906_v24  ;;  %v8253_v50 = vld [vmem:[%s13691_s23 + $0x8] ss:$0 sm:$0xff] }
 0x54f   : > { %v4064_v53 = vadd.f32 %v4056_v6, %v3905_v42  ;;  %v9696_v41 = vpop.f32.mrb[74].mxu1  ;;  %v9724_v40 = vpop.f32.mrb[74].mxu0 }
 0x550   : > { %v4224_v14 = vadd.f32 %v4216_v23, %v4065_v18  ;;  %v4059_v16 = vmul.f32 %v9696_v41, %v8235_v51  ;;  %v4022_v55 = vpop.f32.mrb[75].mxu1  ;;  %v4218_v32 = vmul.f32 %v9724_v40, %v8244_v3  ;;  %v4181_v48 = vpop.f32.mrb[75].mxu0 }
 0x551   : > { %v4223_v10 = vadd.f32 %v4215_v34, %v4064_v53  ;;  %v4058_v56 = vmul.f32 %v8235_v51, %v4022_v55  ;;  %v4217_v43 = vmul.f32 %v8244_v3, %v4181_v48 }
 0x552   : > { %v4067_v60 = vadd.f32 %v4059_v16, %v3908_v13 }
 0x553   : > { %v4066_v29 = vadd.f32 %v4058_v56, %v3907_v30  ;;  %v9699_v15 = vpop.f32.mrb[76].mxu1  ;;  %v9727_v52 = vpop.f32.mrb[76].mxu0 }
 0x554   : > { %v4226_v4 = vadd.f32 %v4218_v32, %v4067_v60  ;;  %v4061_v31 = vmul.f32 %v9699_v15, %v8235_v51  ;;  %v4032_v39 = vpop.f32.mrb[77].mxu1  ;;  %v4220_v61 = vmul.f32 %v9727_v52, %v8244_v3  ;;  %v4191_v24 = vpop.f32.mrb[77].mxu0 }
 0x555   : > { %v4225_v42 = vadd.f32 %v4217_v43, %v4066_v29  ;;  %v4060_v38 = vmul.f32 %v8235_v51, %v4032_v39  ;;  %v4219_v21 = vmul.f32 %v8244_v3, %v4191_v24 }
 0x556   : > { %v4069_v62 = vadd.f32 %v4061_v31, %v3910_v49 }
 0x557   : > { %v4068_v46 = vadd.f32 %v4060_v38, %v3909_v63  ;;  %v9702_v59 = vpop.f32.mrb[78].mxu1  ;;  %v9730_v11 = vpop.f32.mrb[78].mxu0 }
 0x558   : > { %v4228_v35 = vadd.f32 %v4220_v61, %v4069_v62  ;;  %v4063_v1 = vmul.f32 %v9702_v59, %v8235_v51  ;;  %v4042_v27 = vpop.f32.mrb[79].mxu1  ;;  %v4222_v45 = vmul.f32 %v9730_v11, %v8244_v3  ;;  %v4201_v13 = vpop.f32.mrb[79].mxu0 }
 0x559   : > { %v4227_v30 = vadd.f32 %v4219_v21, %v4068_v46  ;;  %v4062_v17 = vmul.f32 %v8235_v51, %v4042_v27  ;;  %v4221_v37 = vmul.f32 %v8244_v3, %v4201_v13 }
 0x55a   : > { %v4071_v49 = vadd.f32 %v4063_v1, %v3912_v57 }
 0x55b   : > { %v4070_v63 = vadd.f32 %v4062_v17, %v3911_v28  ;;  %v9749_v23 = vpop.f32.mrb[80].mxu1  ;;  %v9777_v47 = vpop.f32.mrb[80].mxu0 }
 0x55c   : > { %v4230_v6 = vadd.f32 %v4222_v45, %v4071_v49  ;;  %v4375_v34 = vmul.f32 %v9749_v23, %v8253_v50  ;;  %v4330_v18 = vpop.f32.mrb[81].mxu1  ;;  %v4534_v53 = vmul.f32 %v9777_v47, %v8262_v54  ;;  %v4489_v41 = vpop.f32.mrb[81].mxu0 }
 0x55d   : > { %v4229_v40 = vadd.f32 %v4221_v37, %v4070_v63  ;;  %v4374_v51 = vmul.f32 %v8253_v50, %v4330_v18  ;;  %v4533_v3 = vmul.f32 %v8262_v54, %v4489_v41  ;;  %v8280_v18 = vld [vmem:[%s13691_s23 + $0xb] ss:$0 sm:$0xff] }
 0x55e   : > { %v4383_v16 = vadd.f32 %v4375_v34, %v4224_v14  ;;  %v8271_v34 = vld [vmem:[%s13691_s23 + $0xa] ss:$0 sm:$0xff] }
 0x55f   : > { %v4382_v55 = vadd.f32 %v4374_v51, %v4223_v10  ;;  %v9752_v32 = vpop.f32.mrb[82].mxu1  ;;  %v9780_v48 = vpop.f32.mrb[82].mxu0 }
 0x560   : > { %v4542_v56 = vadd.f32 %v4534_v53, %v4383_v16  ;;  %v4377_v43 = vmul.f32 %v9752_v32, %v8253_v50  ;;  %v4340_v60 = vpop.f32.mrb[83].mxu1  ;;  %v4536_v29 = vmul.f32 %v9780_v48, %v8262_v54  ;;  %v4499_v57 = vpop.f32.mrb[83].mxu0 }
 0x561   : > { %v4541_v28 = vadd.f32 %v4533_v3, %v4382_v55  ;;  %v4376_v15 = vmul.f32 %v8253_v50, %v4340_v60  ;;  %v4535_v52 = vmul.f32 %v8262_v54, %v4499_v57 }
 0x562   : > { %v4385_v31 = vadd.f32 %v4377_v43, %v4226_v4 }
 0x563   : > { %v4384_v39 = vadd.f32 %v4376_v15, %v4225_v42  ;;  %v9755_v61 = vpop.f32.mrb[84].mxu1  ;;  %v9783_v24 = vpop.f32.mrb[84].mxu0 }
 0x564   : > { %v4544_v38 = vadd.f32 %v4536_v29, %v4385_v31  ;;  %v4379_v21 = vmul.f32 %v9755_v61, %v8253_v50  ;;  %v4350_v62 = vpop.f32.mrb[85].mxu1  ;;  %v4538_v46 = vmul.f32 %v9783_v24, %v8262_v54  ;;  %v4509_v14 = vpop.f32.mrb[85].mxu0 }
 0x565   : > { %v4543_v10 = vadd.f32 %v4535_v52, %v4384_v39  ;;  %v4378_v59 = vmul.f32 %v8253_v50, %v4350_v62  ;;  %v4537_v11 = vmul.f32 %v8262_v54, %v4509_v14 }
 0x566   : > { %v4387_v1 = vadd.f32 %v4379_v21, %v4228_v35 }
 0x567   : > { %v4386_v27 = vadd.f32 %v4378_v59, %v4227_v30  ;;  %v9758_v45 = vpop.f32.mrb[86].mxu1  ;;  %v9786_v13 = vpop.f32.mrb[86].mxu0 }
 0x568   : > { %v4546_v17 = vadd.f32 %v4538_v46, %v4387_v1  ;;  %v4381_v37 = vmul.f32 %v9758_v45, %v8253_v50  ;;  %v4360_v49 = vpop.f32.mrb[87].mxu1  ;;  %v4540_v63 = vmul.f32 %v9786_v13, %v8262_v54  ;;  %v4519_v4 = vpop.f32.mrb[87].mxu0 }
 0x569   : > { %v4545_v42 = vadd.f32 %v4537_v11, %v4386_v27  ;;  %v4380_v23 = vmul.f32 %v8253_v50, %v4360_v49  ;;  %v4539_v47 = vmul.f32 %v8262_v54, %v4519_v4 }
 0x56a   : > { %v4389_v35 = vadd.f32 %v4381_v37, %v4230_v6 }
 0x56b   : > { %v4388_v30 = vadd.f32 %v4380_v23, %v4229_v40  ;;  %v9805_v53 = vpop.f32.mrb[88].mxu1  ;;  %v9833_v41 = vpop.f32.mrb[88].mxu0 }
 0x56c   : > { %v4548_v51 = vadd.f32 %v4540_v63, %v4389_v35  ;;  %v4693_v3 = vmul.f32 %v9805_v53, %v8271_v34  ;;  %v4648_v16 = vpop.f32.mrb[89].mxu1  ;;  %v4852_v55 = vmul.f32 %v9833_v41, %v8280_v18  ;;  %v4807_v32 = vpop.f32.mrb[89].mxu0 }
 0x56d   : > { %v4547_v48 = vadd.f32 %v4539_v47, %v4388_v30  ;;  %v4692_v50 = vmul.f32 %v8271_v34, %v4648_v16  ;;  %v4851_v54 = vmul.f32 %v8280_v18, %v4807_v32  ;;  %v8298_v16 = vld [vmem:[%s13691_s23 + $0xd] ss:$0 sm:$0xff] }
 0x56e   : > { %v4701_v43 = vadd.f32 %v4693_v3, %v4542_v56  ;;  %v8289_v3 = vld [vmem:[%s13691_s23 + $0xc] ss:$0 sm:$0xff] }
 0x56f   : > { %v4700_v60 = vadd.f32 %v4692_v50, %v4541_v28  ;;  %v9808_v29 = vpop.f32.mrb[90].mxu1  ;;  %v9836_v57 = vpop.f32.mrb[90].mxu0 }
 0x570   : > { %v4860_v15 = vadd.f32 %v4852_v55, %v4701_v43  ;;  %v4695_v52 = vmul.f32 %v9808_v29, %v8271_v34  ;;  %v4658_v31 = vpop.f32.mrb[91].mxu1  ;;  %v4854_v39 = vmul.f32 %v9836_v57, %v8280_v18  ;;  %v4817_v6 = vpop.f32.mrb[91].mxu0 }
 0x571   : > { %v4859_v40 = vadd.f32 %v4851_v54, %v4700_v60  ;;  %v4694_v61 = vmul.f32 %v8271_v34, %v4658_v31  ;;  %v4853_v24 = vmul.f32 %v8280_v18, %v4817_v6 }
 0x572   : > { %v4703_v21 = vadd.f32 %v4695_v52, %v4544_v38 }
 0x573   : > { %v4702_v62 = vadd.f32 %v4694_v61, %v4543_v10  ;;  %v9811_v46 = vpop.f32.mrb[92].mxu1  ;;  %v9839_v14 = vpop.f32.mrb[92].mxu0 }
 0x574   : > { %v4862_v59 = vadd.f32 %v4854_v39, %v4703_v21  ;;  %v4697_v11 = vmul.f32 %v9811_v46, %v8271_v34  ;;  %v4668_v1 = vpop.f32.mrb[93].mxu1  ;;  %v4856_v27 = vmul.f32 %v9839_v14, %v8280_v18  ;;  %v4827_v56 = vpop.f32.mrb[93].mxu0 }
 0x575   : > { %v4861_v28 = vadd.f32 %v4853_v24, %v4702_v62  ;;  %v4696_v45 = vmul.f32 %v8271_v34, %v4668_v1  ;;  %v4855_v13 = vmul.f32 %v8280_v18, %v4827_v56 }
 0x576   : > { %v4705_v37 = vadd.f32 %v4697_v11, %v4546_v17 }
 0x577   : > { %v4704_v49 = vadd.f32 %v4696_v45, %v4545_v42  ;;  %v9814_v63 = vpop.f32.mrb[94].mxu1  ;;  %v9842_v4 = vpop.f32.mrb[94].mxu0 }
 0x578   : > { %v4864_v23 = vadd.f32 %v4856_v27, %v4705_v37  ;;  %v4699_v47 = vmul.f32 %v9814_v63, %v8271_v34  ;;  %v4678_v35 = vpop.f32.mrb[95].mxu1  ;;  %v4858_v30 = vmul.f32 %v9842_v4, %v8280_v18  ;;  %v4837_v38 = vpop.f32.mrb[95].mxu0 }
 0x579   : > { %v4863_v10 = vadd.f32 %v4855_v13, %v4704_v49  ;;  %v4698_v53 = vmul.f32 %v8271_v34, %v4678_v35  ;;  %v4857_v41 = vmul.f32 %v8280_v18, %v4837_v38  ;;  %v7127_v35 = vld [vmem:[#allocation14 + $0x8] sm:$0xff] }
 0x57a   : > { %v4707_v17 = vadd.f32 %v4699_v47, %v4548_v51  ;;  %v7126_v47 = vld [vmem:[#allocation14] sm:$0xff] }
 0x57b   : > { %v4706_v42 = vadd.f32 %v4698_v53, %v4547_v48  ;;  %v9861_v55 = vpop.f32.mrb[96].mxu1  ;;  %v9889_v32 = vpop.f32.mrb[96].mxu0  ;;  %v11023_v53 = vpack.c.bf16 %v7127_v35, %v7126_v47 }
 0x57c   : > { %v4866_v50 = vadd.f32 %v4858_v30, %v4707_v17  ;;  %v5011_v54 = vmul.f32 %v9861_v55, %v8289_v3  ;;  %v4966_v43 = vpop.f32.mrb[97].mxu1  ;;  %v5170_v60 = vmul.f32 %v9889_v32, %v8298_v16  ;;  %v5125_v29 = vpop.f32.mrb[97].mxu0  ;;  %v7128_v30 = vld [vmem:[#allocation14 + $0x10] sm:$0xff]  ;;  %v7130_v55 = vld [vmem:[#allocation14 + $0x20] sm:$0xff]  ;;  %v7131_v32 = vld [vmem:[#allocation14 + $0x28] sm:$0xff] }
 0x57d   : > { %v4865_v57 = vadd.f32 %v4857_v41, %v4706_v42  ;;  %v5010_v34 = vmul.f32 %v8289_v3, %v4966_v43  ;;  %v5169_v18 = vmul.f32 %v8298_v16, %v5125_v29  ;;  %v7129_v41 = vld [vmem:[#allocation14 + $0x18] sm:$0xff]  ;;  %11024 = vmatprep.subr.bf16.mxu0 %v11023_v53 }
 0x57e   : > { %v5019_v52 = vadd.f32 %v5011_v54, %v4860_v15  ;;  %v11027_v42 = vpack.c.bf16 %v7129_v41, %v7128_v30  ;;  %11026 = vmatpush3.bf16.msra.mxu0 %v11023_v53 }
 0x57f   : > { %v5018_v31 = vadd.f32 %v5010_v34, %v4859_v40  ;;  %v9864_v39 = vpop.f32.mrb[98].mxu1  ;;  %v9892_v6 = vpop.f32.mrb[98].mxu0 }
 0x580   : > { %v5178_v61 = vadd.f32 %v5170_v60, %v5019_v52  ;;  %v5013_v24 = vmul.f32 %v9864_v39, %v8289_v3  ;;  %v4976_v21 = vpop.f32.mrb[99].mxu1  ;;  %v5172_v62 = vmul.f32 %v9892_v6, %v8298_v16  ;;  %v5135_v51 = vpop.f32.mrb[99].mxu0  ;;  %11028 = vmatprep.subr.bf16.mxu0 %v11027_v42  ;;  %v11031_v6 = vpack.c.bf16 %v7131_v32, %v7130_v55  ;;  %v7136_v32 = vld [vmem:[#allocation14 + $0x50] sm:$0xff] }
 0x581   : > { %v5177_v48 = vadd.f32 %v5169_v18, %v5018_v31  ;;  %v5012_v46 = vmul.f32 %v8289_v3, %v4976_v21  ;;  %v5171_v14 = vmul.f32 %v8298_v16, %v5135_v51  ;;  %v7132_v51 = vld [vmem:[#allocation14 + $0x30] sm:$0xff] }
 0x582   : > { %v5021_v11 = vadd.f32 %v5013_v24, %v4862_v59  ;;  %11030 = vmatpush3.bf16.msra.mxu0 %v11027_v42 }
 0x583   : > { %v5020_v1 = vadd.f32 %v5012_v46, %v4861_v28  ;;  %v9867_v27 = vpop.f32.mrb[100].mxu1  ;;  %v9895_v56 = vpop.f32.mrb[100].mxu0  ;;  %11032 = vmatprep.subr.bf16.mxu0 %v11031_v6 }
 0x584   : > { %v13237_v45 = vadd.f32 %v5172_v62, %v5021_v11  ;;  %v5015_v13 = vmul.f32 %v9867_v27, %v8289_v3  ;;  %v4986_v37 = vpop.f32.mrb[101].mxu1  ;;  %v5174_v15 = vmul.f32 %v9895_v56, %v8298_v16  ;;  %v5145_v40 = vpop.f32.mrb[101].mxu0 }
 0x585   : > { %v13239_v49 = vadd.f32 %v5171_v14, %v5020_v1  ;;  %v5014_v63 = vmul.f32 %v8289_v3, %v4986_v37  ;;  %v5173_v4 = vmul.f32 %v8298_v16, %v5145_v40 }
 0x586   : > { %v5023_v38 = vadd.f32 %v5015_v13, %v4864_v23  ;;  %v13246_v23 = vld [vmem:[%s13691_s23 + $0xe] ss:$0 sm:$0xff]  ;;  %11034 = vmatpush3.bf16.msra.mxu0 %v11031_v6 }
 0x587   : > { %v5022_v59 = vadd.f32 %v5014_v63, %v4863_v10  ;;  %v9870_v28 = vpop.f32.mrb[102].mxu1  ;;  %v9898_v17 = vpop.f32.mrb[102].mxu0  ;;  %v13251_v10 = vld [vmem:[%s13691_s23 + $0xf] ss:$0 sm:$0xff]  ;;  %v7134_v63 = vld [vmem:[#allocation14 + $0x40] sm:$0xff] }
 0x588   : > { %v13241_v54 = vadd.f32 %v5174_v15, %v5023_v38  ;;  %v5017_v43 = vmul.f32 %v9870_v28, %v8289_v3  ;;  %v4996_v60 = vpop.f32.mrb[103].mxu1  ;;  %v5176_v29 = vmul.f32 %v9898_v17, %v8298_v16  ;;  %v5155_v34 = vpop.f32.mrb[103].mxu0 }
 0x589   : > { %v5181_v18 = vadd.f32 %v5173_v4, %v5022_v59  ;;  %v5016_v52 = vmul.f32 %v8289_v3, %v4996_v60  ;;  %v5175_v31 = vmul.f32 %v8298_v16, %v5155_v34  ;;  %v7133_v3 = vld [vmem:[#allocation14 + $0x38] sm:$0xff]  ;;  %v7135_v4 = vld [vmem:[#allocation14 + $0x48] sm:$0xff] }
 0x58a   : > { %v5025_v39 = vadd.f32 %v5017_v43, %v4866_v50  ;;  %v11039_v28 = vpack.c.bf16 %v7135_v4, %v7134_v63  ;;  %v7137_v43 = vld [vmem:[#allocation14 + $0x58] sm:$0xff] }
 0x58b   : > { %v5024_v24 = vadd.f32 %v5016_v52, %v4865_v57  ;;  %v9917_v21 = vpop.f32.mrb[104].mxu1  ;;  %v9945_v62 = vpop.f32.mrb[104].mxu0  ;;  %v11035_v57 = vpack.c.bf16 %v7133_v3, %v7132_v51  ;;  %v7138_v3 = vld [vmem:[#allocation14 + $0x60] sm:$0xff] }
 0x58c   : > { %v5184_v16 = vadd.f32 %v5176_v29, %v5025_v39  ;;  %v5329_v46 = vmul.f32 %v9917_v21, %v13246_v23  ;;  %v5284_v14 = vpop.f32.mrb[105].mxu1  ;;  %v5488_v11 = vmul.f32 %v9945_v62, %v13251_v10  ;;  %v5443_v1 = vpop.f32.mrb[105].mxu0 }
 0x58d   : > { %v5183_v27 = vadd.f32 %v5175_v31, %v5024_v24  ;;  %v5328_v56 = vmul.f32 %v13246_v23, %v5284_v14  ;;  %v5487_v13 = vmul.f32 %v13251_v10, %v5443_v1  ;;  %11036 = vmatprep.subr.bf16.mxu0 %v11035_v57 }
 0x58e   : > { %v5337_v50 = vadd.f32 %v5329_v46, %v5178_v61  ;;  %11038 = vmatpush3.bf16.msra.mxu0 %v11035_v57  ;;  %v7139_v46 = vld [vmem:[#allocation14 + $0x68] sm:$0xff] }
 0x58f   : > { %v5336_v37 = vadd.f32 %v5328_v56, %v5177_v48  ;;  %v9920_v15 = vpop.f32.mrb[106].mxu1  ;;  %v9948_v40 = vpop.f32.mrb[106].mxu0  ;;  %11040 = vmatprep.subr.bf16.mxu0 %v11039_v28 }
 0x590   : > { %v13257_v47 = vadd.f32 %v5488_v11, %v5337_v50  ;;  %v5331_v35 = vmul.f32 %v9920_v15, %v13246_v23  ;;  %v5294_v30 = vpop.f32.mrb[107].mxu1  ;;  %v5490_v38 = vmul.f32 %v9948_v40, %v13251_v10  ;;  %v5453_v53 = vpop.f32.mrb[107].mxu0  ;;  %v11047_v40 = vpack.c.bf16 %v7139_v46, %v7138_v3 }
 0x591   : > { %v5495_v41 = vadd.f32 %v5487_v13, %v5336_v37  ;;  %v5330_v59 = vmul.f32 %v13246_v23, %v5294_v30  ;;  %v5489_v61 = vmul.f32 %v13251_v10, %v5453_v53  ;;  %v7140_v30 = vld [vmem:[#allocation14 + $0x70] sm:$0xff] }
 0x592   : > { %v5339_v48 = vadd.f32 %v5331_v35, %v13237_v45  ;;  %11042 = vmatpush3.bf16.msra.mxu0 %v11039_v28 }
 0x593   : > { %v5338_v17 = vadd.f32 %v5330_v59, %v13239_v49  ;;  %v9923_v42 = vpop.f32.mrb[108].mxu1  ;;  %v9951_v55 = vpop.f32.mrb[108].mxu0  ;;  %v11043_v49 = vpack.c.bf16 %v7137_v43, %v7136_v32 }
 0x594   : > { %v5498_v60 = vadd.f32 %v5490_v38, %v5339_v48  ;;  %v5333_v29 = vmul.f32 %v9923_v42, %v13246_v23  ;;  %v5304_v34 = vpop.f32.mrb[109].mxu1  ;;  %v5492_v52 = vmul.f32 %v9951_v55, %v13251_v10  ;;  %v5463_v31 = vpop.f32.mrb[109].mxu0  ;;  %v7141_v38 = vld [vmem:[#allocation14 + $0x78] sm:$0xff] }
 0x595   : > { %v5497_v39 = vadd.f32 %v5489_v61, %v5338_v17  ;;  %v5332_v6 = vmul.f32 %v13246_v23, %v5304_v34  ;;  %v5491_v45 = vmul.f32 %v13251_v10, %v5463_v31  ;;  %11044 = vmatprep.subr.bf16.mxu0 %v11043_v49  ;;  %v13280_v55 = vpop.permute.xlu1 %2911  ;;  %v11051_v28 = vpack.c.bf16 %v7141_v38, %v7140_v30 }
 0x596   : > { %v5341_v24 = vadd.f32 %v5333_v29, %v13241_v54  ;;  %v8325_v54 = vld [vmem:[%s13691_s23 + $0x10] ss:$0 sm:$0xff]  ;;  %11046 = vmatpush3.bf16.msra.mxu0 %v11043_v49 }
 0x597   : > { %v5340_v21 = vadd.f32 %v5332_v6, %v5181_v18  ;;  %v9926_v62 = vpop.f32.mrb[110].mxu1  ;;  %v9954_v51 = vpop.f32.mrb[110].mxu0  ;;  %v8334_v18 = vld [vmem:[%s13691_s23 + $0x11] ss:$0 sm:$0xff]  ;;  %11048 = vmatprep.subr.bf16.mxu0 %v11047_v40 }
 0x598   : > { %v5500_v14 = vadd.f32 %v5492_v52, %v5341_v24  ;;  %v5335_v11 = vmul.f32 %v9926_v62, %v13246_v23  ;;  %v5314_v1 = vpop.f32.mrb[111].mxu1  ;;  %v5494_v56 = vmul.f32 %v9954_v51, %v13251_v10  ;;  %v5473_v13 = vpop.f32.mrb[111].mxu0 }
 0x599   : > { %v5499_v50 = vadd.f32 %v5491_v45, %v5340_v21  ;;  %v5334_v37 = vmul.f32 %v13246_v23, %v5314_v1  ;;  %v5493_v57 = vmul.f32 %v13251_v10, %v5473_v13 }
 0x59a   : > { %v5343_v15 = vadd.f32 %v5335_v11, %v5184_v16  ;;  %11050 = vmatpush3.bf16.msra.mxu0 %v11047_v40 }
 0x59b   : > { %v5342_v63 = vadd.f32 %v5334_v37, %v5183_v27  ;;  %v9973_v4 = vpop.f32.mrb[112].mxu1  ;;  %v10001_v35 = vpop.f32.mrb[112].mxu0  ;;  %11052 = vmatprep.subr.bf16.mxu0 %v11051_v28 }
 0x59c   : > { %v5502_v23 = vadd.f32 %v5494_v56, %v5343_v15  ;;  %v5647_v53 = vmul.f32 %v9973_v4, %v8325_v54  ;;  %v5602_v10 = vpop.f32.mrb[113].mxu1  ;;  %v5806_v59 = vmul.f32 %v10001_v35, %v8334_v18  ;;  %v5761_v61 = vpop.f32.mrb[113].mxu0 }
 0x59d   : > { %v5501_v48 = vadd.f32 %v5493_v57, %v5342_v63  ;;  %v5646_v17 = vmul.f32 %v8325_v54, %v5602_v10  ;;  %v5805_v42 = vmul.f32 %v8334_v18, %v5761_v61  ;;  %v13283_v57 = vpop.permute.xlu1 %7011  ;;  %v8343_v61 = vld [vmem:[%s13691_s23 + $0x12] ss:$0 sm:$0xff] }
 0x59e   : > { %v5655_v16 = vadd.f32 %v5647_v53, %v13257_v47  ;;  %11054 = vmatpush3.bf16.msra.mxu0 %v11051_v28 }
 0x59f   : > { %v5654_v27 = vadd.f32 %v5646_v17, %v5495_v41  ;;  %v9976_v32 = vpop.f32.mrb[114].mxu1  ;;  %v10004_v43 = vpop.f32.mrb[114].mxu0  ;;  %v8352_v17 = vld [vmem:[%s13691_s23 + $0x13] ss:$0 sm:$0xff] }
 0x5a0   : > { %v5814_v29 = vadd.f32 %v5806_v59, %v5655_v16  ;;  %v5649_v34 = vmul.f32 %v9976_v32, %v8325_v54  ;;  %v5612_v52 = vpop.f32.mrb[115].mxu1  ;;  %v5808_v31 = vmul.f32 %v10004_v43, %v8334_v18  ;;  %v5771_v6 = vpop.f32.mrb[115].mxu0 }
 0x5a1   : > { %v5813_v45 = vadd.f32 %v5805_v42, %v5654_v27  ;;  %v5648_v24 = vmul.f32 %v8325_v54, %v5612_v52  ;;  %v5807_v21 = vmul.f32 %v8334_v18, %v5771_v6 }
 0x5a2   : > { %v5657_v62 = vadd.f32 %v5649_v34, %v5498_v60 }
 0x5a3   : > { %v5656_v49 = vadd.f32 %v5648_v24, %v5497_v39  ;;  %v9979_v51 = vpop.f32.mrb[116].mxu1  ;;  %v10007_v3 = vpop.f32.mrb[116].mxu0 }
 0x5a4   : > { %v5816_v47 = vadd.f32 %v5808_v31, %v5657_v62  ;;  %v5651_v46 = vmul.f32 %v9979_v51, %v8325_v54  ;;  %v5622_v11 = vpop.f32.mrb[117].mxu1  ;;  %v5810_v41 = vmul.f32 %v10007_v3, %v8334_v18  ;;  %v5781_v1 = vpop.f32.mrb[117].mxu0 }
 0x5a5   : > { %v5815_v56 = vadd.f32 %v5807_v21, %v5656_v49  ;;  %v5650_v13 = vmul.f32 %v8325_v54, %v5622_v11  ;;  %v5809_v37 = vmul.f32 %v8334_v18, %v5781_v1  ;;  %v13291_v31 = vpop.permute.xlu1 %7083 }
 0x5a6   : > { %v5659_v15 = vadd.f32 %v5651_v46, %v5500_v14 }
 0x5a7   : > { %v5658_v63 = vadd.f32 %v5650_v13, %v5499_v50  ;;  %v9982_v4 = vpop.f32.mrb[118].mxu1  ;;  %v10010_v40 = vpop.f32.mrb[118].mxu0 }
 0x5a8   : > { %v5818_v60 = vadd.f32 %v5810_v41, %v5659_v15  ;;  %v5653_v35 = vmul.f32 %v9982_v4, %v8325_v54  ;;  %v5632_v39 = vpop.f32.mrb[119].mxu1  ;;  %v5812_v30 = vmul.f32 %v10010_v40, %v8334_v18  ;;  %v5791_v38 = vpop.f32.mrb[119].mxu0 }
 0x5a9   : > { %v5817_v53 = vadd.f32 %v5809_v37, %v5658_v63  ;;  %v5652_v10 = vmul.f32 %v8325_v54, %v5632_v39  ;;  %v5811_v59 = vmul.f32 %v8334_v18, %v5791_v38  ;;  %v13293_v38 = vpop.permute.xlu1 %7007 }
 0x5aa   : > { %v5661_v14 = vadd.f32 %v5653_v35, %v5502_v23 }
 0x5ab   : > { %v5660_v50 = vadd.f32 %v5652_v10, %v5501_v48  ;;  %v10029_v42 = vpop.f32.mrb[120].mxu1  ;;  %v10057_v16 = vpop.f32.mrb[120].mxu0 }
 0x5ac   : > { %v5820_v28 = vadd.f32 %v5812_v30, %v5661_v14  ;;  %v5965_v27 = vmul.f32 %v10029_v42, %v8343_v61  ;;  %v5920_v32 = vpop.f32.mrb[121].mxu1  ;;  %v6124_v43 = vmul.f32 %v10057_v16, %v8352_v17  ;;  %v6079_v34 = vpop.f32.mrb[121].mxu0 }
 0x5ad   : > { %v5819_v52 = vadd.f32 %v5811_v59, %v5660_v50  ;;  %v5964_v54 = vmul.f32 %v8343_v61, %v5920_v32  ;;  %v6123_v18 = vmul.f32 %v8352_v17, %v6079_v34 }
 0x5ae   : > { %v5973_v6 = vadd.f32 %v5965_v27, %v5814_v29 }
 0x5af   : > { %v5972_v24 = vadd.f32 %v5964_v54, %v5813_v45  ;;  %v10032_v21 = vpop.f32.mrb[122].mxu1  ;;  %v10060_v62 = vpop.f32.mrb[122].mxu0  ;;  %v8361_v54 = vld [vmem:[%s13691_s23 + $0x14] ss:$0 sm:$0xff] }
 0x5b0   : > { %v6132_v49 = vadd.f32 %v6124_v43, %v5973_v6  ;;  %v5967_v51 = vmul.f32 %v10032_v21, %v8343_v61  ;;  %v5930_v23 = vpop.f32.mrb[123].mxu1  ;;  %v6126_v48 = vmul.f32 %v10060_v62, %v8352_v17  ;;  %v6089_v3 = vpop.f32.mrb[123].mxu0 }
 0x5b1   : > { %v6131_v46 = vadd.f32 %v6123_v18, %v5972_v24  ;;  %v5966_v11 = vmul.f32 %v8343_v61, %v5930_v23  ;;  %v6125_v41 = vmul.f32 %v8352_v17, %v6089_v3  ;;  %v8370_v18 = vld [vmem:[%s13691_s23 + $0x15] ss:$0 sm:$0xff] }
 0x5b2   : > { %v5975_v1 = vadd.f32 %v5967_v51, %v5816_v47 }
 0x5b3   : > { %v5974_v13 = vadd.f32 %v5966_v11, %v5815_v56  ;;  %v10035_v37 = vpop.f32.mrb[124].mxu1  ;;  %v10063_v15 = vpop.f32.mrb[124].mxu0 }
 0x5b4   : > { %v6134_v63 = vadd.f32 %v6126_v48, %v5975_v1  ;;  %v5969_v4 = vmul.f32 %v10035_v37, %v8343_v61  ;;  %v5940_v40 = vpop.f32.mrb[125].mxu1  ;;  %v6128_v35 = vmul.f32 %v10063_v15, %v8352_v17  ;;  %v6099_v29 = vpop.f32.mrb[125].mxu0 }
 0x5b5   : > { %v6133_v45 = vadd.f32 %v6125_v41, %v5974_v13  ;;  %v5968_v39 = vmul.f32 %v8343_v61, %v5940_v40  ;;  %v6127_v30 = vmul.f32 %v8352_v17, %v6099_v29  ;;  %v13301_v11 = vpop.permute.xlu1 %7079 }
 0x5b6   : > { %v5977_v10 = vadd.f32 %v5969_v4, %v5818_v60 }
 0x5b7   : > { %v5976_v59 = vadd.f32 %v5968_v39, %v5817_v53  ;;  %v10038_v14 = vpop.f32.mrb[126].mxu1  ;;  %v10066_v50 = vpop.f32.mrb[126].mxu0 }
 0x5b8   : > { %v6136_v42 = vadd.f32 %v6128_v35, %v5977_v10  ;;  %v5971_v16 = vmul.f32 %v10038_v14, %v8343_v61  ;;  %v5950_v47 = vpop.f32.mrb[127].mxu1  ;;  %v6130_v56 = vmul.f32 %v10066_v50, %v8352_v17  ;;  %v6109_v27 = vpop.f32.mrb[127].mxu0 }
 0x5b9   : > { %v6135_v32 = vadd.f32 %v6127_v30, %v5976_v59  ;;  %v5970_v43 = vmul.f32 %v8343_v61, %v5950_v47  ;;  %v6129_v34 = vmul.f32 %v8352_v17, %v6109_v27 }
 0x5ba   : > { %v5979_v60 = vadd.f32 %v5971_v16, %v5820_v28 }
 0x5bb   : > { %v5978_v53 = vadd.f32 %v5970_v43, %v5819_v52  ;;  %v10085_v6 = vpop.f32.mrb[128].mxu1  ;;  %v10113_v24 = vpop.f32.mrb[128].mxu0 }
 0x5bc   : > { %v6138_v21 = vadd.f32 %v6130_v56, %v5979_v60  ;;  %v6283_v62 = vmul.f32 %v10085_v6, %v8361_v54  ;;  %v6238_v51 = vpop.f32.mrb[129].mxu1  ;;  %v6442_v23 = vmul.f32 %v10113_v24, %v8370_v18  ;;  %v6397_v48 = vpop.f32.mrb[129].mxu0  ;;  %v7263_v60 = vld [vmem:[#allocation16 + $0x8] sm:$0xff] }
 0x5bd   : > { %v6137_v3 = vadd.f32 %v6129_v34, %v5978_v53  ;;  %v6282_v61 = vmul.f32 %v8361_v54, %v6238_v51  ;;  %v6441_v17 = vmul.f32 %v8370_v18, %v6397_v48  ;;  %v7262_v34 = vld [vmem:[#allocation16] sm:$0xff]  ;;  %v7264_v53 = vld [vmem:[#allocation16 + $0x10] sm:$0xff]  ;;  %v13309_v6 = vpop.permute.xlu1 %2921 }
 0x5be   : > { %v6291_v41 = vadd.f32 %v6283_v62, %v6132_v49 }
 0x5bf   : > { %v6290_v1 = vadd.f32 %v6282_v61, %v6131_v46  ;;  %v10088_v13 = vpop.f32.mrb[130].mxu1  ;;  %v10116_v37 = vpop.f32.mrb[130].mxu0  ;;  %v7266_v61 = vld [vmem:[#allocation16 + $0x20] sm:$0xff] }
 0x5c0   : > { %v13303_v15 = vadd.f32 %v6442_v23, %v6291_v41  ;;  %v6285_v28 = vmul.f32 %v10088_v13, %v8361_v54  ;;  %v6248_v52 = vpop.f32.mrb[131].mxu1  ;;  %v6444_v4 = vmul.f32 %v10116_v37, %v8370_v18  ;;  %v6407_v40 = vpop.f32.mrb[131].mxu0 }
 0x5c1   : > { %v6449_v35 = vadd.f32 %v6441_v17, %v6290_v1  ;;  %v6284_v29 = vmul.f32 %v8361_v54, %v6248_v52  ;;  %v6443_v39 = vmul.f32 %v8370_v18, %v6407_v40  ;;  %v7267_v17 = vld [vmem:[#allocation16 + $0x28] sm:$0xff] }
 0x5c2   : > { %v6293_v30 = vadd.f32 %v6285_v28, %v6134_v63  ;;  %v11055_v63 = vpack.c.bf16 %v7263_v60, %v7262_v34  ;;  %v13329_v34 = vpop.permute.xlu1 %7091 }
 0x5c3   : > { %v6292_v10 = vadd.f32 %v6284_v29, %v6133_v45  ;;  %v10091_v59 = vpop.f32.mrb[132].mxu1  ;;  %v10119_v14 = vpop.f32.mrb[132].mxu0  ;;  %v7265_v45 = vld [vmem:[#allocation16 + $0x18] sm:$0xff] }
 0x5c4   : > { %v13305_v50 = vadd.f32 %v6444_v4, %v6293_v30  ;;  %v6287_v16 = vmul.f32 %v10091_v59, %v8361_v54  ;;  %v6258_v49 = vpop.f32.mrb[133].mxu1  ;;  %v6446_v46 = vmul.f32 %v10119_v14, %v8370_v18  ;;  %v6417_v47 = vpop.f32.mrb[133].mxu0  ;;  %v11059_v48 = vpack.c.bf16 %v7265_v45, %v7264_v53  ;;  %11056 = vmatprep.subr.bf16.mxu1 %v11055_v63  ;;  %v7268_v14 = vld [vmem:[#allocation16 + $0x30] sm:$0xff]  ;;  %v7270_v45 = vld [vmem:[#allocation16 + $0x40] sm:$0xff] }
 0x5c5   : > { %v13307_v56 = vadd.f32 %v6443_v39, %v6292_v10  ;;  %v6286_v27 = vmul.f32 %v8361_v54, %v6258_v49  ;;  %v6445_v43 = vmul.f32 %v8370_v18, %v6417_v47  ;;  %11058 = vmatpush3.bf16.msra.mxu1 %v11055_v63  ;;  %v11063_v39 = vpack.c.bf16 %v7267_v17, %v7266_v61 }
 0x5c6   : > { %v6295_v24 = vadd.f32 %v6287_v16, %v6136_v42  ;;  %v13316_v42 = vld [vmem:[%s13691_s23 + $0x16] ss:$0 sm:$0xff]  ;;  %11060 = vmatprep.subr.bf16.mxu1 %v11059_v48 }
 0x5c7   : > { %v6294_v62 = vadd.f32 %v6286_v27, %v6135_v32  ;;  %v10094_v51 = vpop.f32.mrb[134].mxu1  ;;  %v10122_v23 = vpop.f32.mrb[134].mxu0  ;;  %v13321_v32 = vld [vmem:[%s13691_s23 + $0x17] ss:$0 sm:$0xff] }
 0x5c8   : > { %v13311_v41 = vadd.f32 %v6446_v46, %v6295_v24  ;;  %v6289_v1 = vmul.f32 %v10094_v51, %v8361_v54  ;;  %v6268_v13 = vpop.f32.mrb[135].mxu1  ;;  %v6448_v37 = vmul.f32 %v10122_v23, %v8370_v18  ;;  %v6427_v28 = vpop.f32.mrb[135].mxu0 }
 0x5c9   : > { %v6453_v52 = vadd.f32 %v6445_v43, %v6294_v62  ;;  %v6288_v4 = vmul.f32 %v8361_v54, %v6268_v13  ;;  %v6447_v40 = vmul.f32 %v8370_v18, %v6427_v28  ;;  %v7269_v54 = vld [vmem:[#allocation16 + $0x38] sm:$0xff]  ;;  %11062 = vmatpush3.bf16.msra.mxu1 %v11059_v48  ;;  %v7271_v62 = vld [vmem:[#allocation16 + $0x48] sm:$0xff] }
 0x5ca   : > { %v6297_v29 = vadd.f32 %v6289_v1, %v6138_v21  ;;  %11064 = vmatprep.subr.bf16.mxu1 %v11063_v39  ;;  %v11067_v60 = vpack.c.bf16 %v7269_v54, %v7268_v14 }
 0x5cb   : > { %v6296_v30 = vadd.f32 %v6288_v4, %v6137_v3  ;;  %v10141_v10 = vpop.f32.mrb[136].mxu1  ;;  %v10169_v59 = vpop.f32.mrb[136].mxu0 }
 0x5cc   : > { %v13323_v18 = vadd.f32 %v6448_v37, %v6297_v29  ;;  %v6601_v16 = vmul.f32 %v10141_v10, %v13316_v42  ;;  %v6556_v49 = vpop.f32.mrb[137].mxu1  ;;  %v6760_v46 = vmul.f32 %v10169_v59, %v13321_v32  ;;  %v6715_v47 = vpop.f32.mrb[137].mxu0  ;;  %v7272_v29 = vld [vmem:[#allocation16 + $0x50] sm:$0xff] }
 0x5cd   : > { %v6455_v27 = vadd.f32 %v6447_v40, %v6296_v30  ;;  %v6600_v43 = vmul.f32 %v13316_v42, %v6556_v49  ;;  %v6759_v21 = vmul.f32 %v13321_v32, %v6715_v47  ;;  %11066 = vmatpush3.bf16.msra.mxu1 %v11063_v39  ;;  %v7273_v30 = vld [vmem:[#allocation16 + $0x58] sm:$0xff] }
 0x5ce   : > { %v6609_v3 = vadd.f32 %v6601_v16, %v13303_v15  ;;  %11068 = vmatprep.subr.bf16.mxu1 %v11067_v60  ;;  %v11075_v47 = vpack.c.bf16 %v7273_v30, %v7272_v29 }
 0x5cf   : > { %v6608_v53 = vadd.f32 %v6600_v43, %v6449_v35  ;;  %v10144_v24 = vpop.f32.mrb[138].mxu1  ;;  %v10172_v63 = vpop.f32.mrb[138].mxu0  ;;  %v11071_v35 = vpack.c.bf16 %v7271_v62, %v7270_v45 }
 0x5d0   : > { %v6768_v51 = vadd.f32 %v6760_v46, %v6609_v3  ;;  %v6603_v23 = vmul.f32 %v10144_v24, %v13316_v42  ;;  %v6566_v61 = vpop.f32.mrb[139].mxu1  ;;  %v6762_v17 = vmul.f32 %v10172_v63, %v13321_v32  ;;  %v6725_v1 = vpop.f32.mrb[139].mxu0  ;;  %v7275_v24 = vld [vmem:[#allocation16 + $0x68] sm:$0xff] }
 0x5d1   : > { %v6767_v13 = vadd.f32 %v6759_v21, %v6608_v53  ;;  %v6602_v48 = vmul.f32 %v13316_v42, %v6566_v61  ;;  %v6761_v37 = vmul.f32 %v13321_v32, %v6725_v1  ;;  %11070 = vmatpush3.bf16.msra.mxu1 %v11067_v60  ;;  %v13342_v46 = vpop.permute.xlu1 %2916  ;;  %v7274_v53 = vld [vmem:[#allocation16 + $0x60] sm:$0xff] }
 0x5d2   : > { %v6611_v15 = vadd.f32 %v6603_v23, %v13305_v50  ;;  %11072 = vmatprep.subr.bf16.mxu1 %v11071_v35 }
 0x5d3   : > { %v6610_v28 = vadd.f32 %v6602_v48, %v13307_v56  ;;  %v10147_v4 = vpop.f32.mrb[140].mxu1  ;;  %v10175_v40 = vpop.f32.mrb[140].mxu0  ;;  %v11079_v48 = vpack.c.bf16 %v7275_v24, %v7274_v53 }
 0x5d4   : > { %v6770_v10 = vadd.f32 %v6762_v17, %v6611_v15  ;;  %v6605_v59 = vmul.f32 %v10147_v4, %v13316_v42  ;;  %v6576_v14 = vpop.f32.mrb[141].mxu1  ;;  %v6764_v54 = vmul.f32 %v10175_v40, %v13321_v32  ;;  %v6735_v16 = vpop.f32.mrb[141].mxu0 }
 0x5d5   : > { %v6769_v49 = vadd.f32 %v6761_v37, %v6610_v28  ;;  %v6604_v39 = vmul.f32 %v13316_v42, %v6576_v14  ;;  %v6763_v50 = vmul.f32 %v13321_v32, %v6735_v16  ;;  %11074 = vmatpush3.bf16.msra.mxu1 %v11071_v35  ;;  %v13353_v28 = vpop.permute.xlu1 %7015 }
 0x5d6   : > { %v6613_v56 = vadd.f32 %v6605_v59, %v13311_v41  ;;  %v8397_v41 = vld [vmem:[%s13691_s23 + $0x18] ss:$0 sm:$0xff]  ;;  %11076 = vmatprep.subr.bf16.mxu1 %v11075_v47 }
 0x5d7   : > { %v6612_v43 = vadd.f32 %v6604_v39, %v6453_v52  ;;  %v10150_v21 = vpop.f32.mrb[142].mxu1  ;;  %v10178_v3 = vpop.f32.mrb[142].mxu0 }
 0x5d8   : > { %v6772_v63 = vadd.f32 %v6764_v54, %v6613_v56  ;;  %v6607_v45 = vmul.f32 %v10150_v21, %v13316_v42  ;;  %v6586_v62 = vpop.f32.mrb[143].mxu1  ;;  %v6766_v23 = vmul.f32 %v10178_v3, %v13321_v32  ;;  %v6745_v61 = vpop.f32.mrb[143].mxu0 }
 0x5d9   : > { %v6771_v17 = vadd.f32 %v6763_v50, %v6612_v43  ;;  %v6606_v60 = vmul.f32 %v13316_v42, %v6586_v62  ;;  %v6765_v1 = vmul.f32 %v13321_v32, %v6745_v61  ;;  %11078 = vmatpush3.bf16.msra.mxu1 %v11075_v47  ;;  %v13361_v39 = vpop.permute.xlu1 %7087 }
 0x5da   : > { %v6615_v52 = vadd.f32 %v6607_v45, %v13323_v18  ;;  %11080 = vmatprep.subr.bf16.mxu1 %v11079_v48 }
 0x5db   : > { %v6614_v37 = vadd.f32 %v6606_v60, %v6455_v27  ;;  %v10197_v15 = vpop.f32.mrb[144].mxu1 }
 0x5dc   : > { %v6774_v4 = vadd.f32 %v6766_v23, %v6615_v52  ;;  %v6919_v40 = vmul.f32 %v10197_v15, %v8397_v41  ;;  %v6874_v29 = vpop.f32.mrb[145].mxu1 }
 0x5dd   : > { %v6773_v30 = vadd.f32 %v6765_v1, %v6614_v37  ;;  %v6918_v42 = vmul.f32 %v8397_v41, %v6874_v29  ;;  %11082 = vmatpush3.bf16.msra.mxu1 %v11079_v48  ;;  %v13382_v48 = vpop.permute.xlu1 %2931 }
 0x5de   : > { %v13355_v32 = vadd.f32 %v6919_v40, %v6768_v51 }
 0x5df   : > { %v13357_v59 = vadd.f32 %v6918_v42, %v6767_v13  ;;  %v10200_v35 = vpop.f32.mrb[146].mxu1 }
 0x5e0   : > { %v6943_v18 = vmul.f32 0.044715, %v13355_v32  ;;  %v6921_v14 = vmul.f32 %v10200_v35, %v8397_v41  ;;  %v6884_v54 = vpop.f32.mrb[147].mxu1 }
 0x5e1   : > { %v6942_v27 = vmul.f32 0.044715, %v13357_v59  ;;  %v6920_v16 = vmul.f32 %v8397_v41, %v6884_v54 }
 0x5e2   : > { %v6951_v50 = vmul.f32 %v6943_v18, %v13355_v32  ;;  %v13364_v56 = vadd.f32 %v6921_v14, %v6770_v10 }
 0x5e3   : > { %v6950_v51 = vmul.f32 %v6942_v27, %v13357_v59  ;;  %v13367_v47 = vadd.f32 %v6920_v16, %v6769_v49  ;;  %v10203_v13 = vpop.f32.mrb[148].mxu1  ;;  %v13377_v49 = vpop.permute.xlu0 %2906 }
 0x5e4   : > { %v6959_v43 = vmul.f32 %v6951_v50, %v13355_v32  ;;  %v6945_v21 = vmul.f32 0.044715, %v13364_v56  ;;  %v6923_v3 = vmul.f32 %v10203_v13, %v8397_v41  ;;  %v6894_v53 = vpop.f32.mrb[149].mxu1 }
 0x5e5   : > { %v6958_v24 = vmul.f32 %v6950_v51, %v13357_v59  ;;  %v6944_v45 = vmul.f32 0.044715, %v13367_v47  ;;  %v6922_v62 = vmul.f32 %v8397_v41, %v6894_v53 }
 0x5e6   : > { %v6967_v23 = vadd.f32 %v6959_v43, %v13355_v32  ;;  %v6953_v10 = vmul.f32 %v6945_v21, %v13364_v56  ;;  %v13375_v61 = vadd.f32 %v6923_v3, %v6772_v63 }
 0x5e7   : > { %v6952_v60 = vmul.f32 %v6944_v45, %v13367_v47  ;;  %v13380_v1 = vadd.f32 %v6922_v62, %v6771_v17  ;;  %v10206_v52 = vpop.f32.mrb[150].mxu1  ;;  %v6966_v15 = vadd.f32 %v6958_v24, %v13357_v59  ;;  %v7020_v3 = vpop.permute.xlu0 %7019 }
 0x5e8   : > { %v6975_v37 = vmul.f32 0.7978846, %v6967_v23  ;;  %v6961_v40 = vmul.f32 %v6953_v10, %v13364_v56  ;;  %v6947_v29 = vmul.f32 0.044715, %v13375_v61  ;;  %v6904_v42 = vpop.f32.mrb[151].mxu1  ;;  %v6925_v18 = vmul.f32 %v10206_v52, %v8397_v41  ;;  %v13400_v62 = vpop.permute.xlu1 %7099 }
 0x5e9   : > { %v6960_v63 = vmul.f32 %v6952_v60, %v13367_v47  ;;  %v6946_v35 = vmul.f32 0.044715, %v13380_v1  ;;  %v6924_v54 = vmul.f32 %v8397_v41, %v6904_v42  ;;  %v6974_v21 = vmul.f32 0.7978846, %v6966_v15 }
 0x5ea   : > { %11359 = vtanh.f32 %v6975_v37  ;;  %v6969_v17 = vadd.f32 %v6961_v40, %v13364_v56  ;;  %v6955_v14 = vmul.f32 %v6947_v29, %v13375_v61  ;;  %v13393_v50 = vadd.f32 %v6925_v18, %v6774_v4 }
 0x5eb   : > { %v6968_v27 = vadd.f32 %v6960_v63, %v13367_v47  ;;  %v6954_v16 = vmul.f32 %v6946_v35, %v13380_v1  ;;  %v13396_v43 = vadd.f32 %v6924_v54, %v6773_v30  ;;  %v7028_v40 = vpop.permute.xlu0 %7027  ;;  %v6935_v18 = vmul.f32 0.5, %v13355_v32 }
 0x5ec   : > { %v6977_v51 = vmul.f32 0.7978846, %v6969_v17  ;;  %v6963_v13 = vmul.f32 %v6955_v14, %v13375_v61  ;;  %v6949_v45 = vmul.f32 0.044715, %v13393_v50  ;;  %v7024_v63 = vpop.permute.xlu1 %7023  ;;  %v6936_v32 = vmul.f32 0.5, %v13367_v47 }
 0x5ed   : > { %v6976_v53 = vmul.f32 0.7978846, %v6968_v27  ;;  %v6962_v24 = vmul.f32 %v6954_v16, %v13380_v1  ;;  %v6948_v4 = vmul.f32 0.044715, %v13396_v43 }
 0x5ee   : > { %11361 = vtanh.f32 %v6977_v51  ;;  %v6971_v41 = vadd.f32 %v6963_v13, %v13375_v61  ;;  %v6957_v30 = vmul.f32 %v6949_v45, %v13393_v50 }
 0x5ef   : > { %11363 = vtanh.f32 %v6976_v53  ;;  %v6970_v23 = vadd.f32 %v6962_v24, %v13380_v1  ;;  %v6956_v60 = vmul.f32 %v6948_v4, %v13396_v43  ;;  %v2927_v13 = vpop.permute.xlu0 %2926  ;;  %v2945_v24 = vmul.f32 %v13280_v55, %v12761_v5 }
 0x5f0   : > { %v6979_v10 = vmul.f32 0.7978846, %v6971_v41  ;;  %11365 = vtanh.f32 %v6974_v21  ;;  %v6965_v37 = vmul.f32 %v6957_v30, %v13393_v50  ;;  %v6937_v21 = vmul.f32 0.5, %v13364_v56  ;;  %v13416_v4 = vpop.permute.xlu1 %7095 }
 0x5f1   : > { %v6978_v52 = vmul.f32 0.7978846, %v6970_v23  ;;  %v6964_v15 = vmul.f32 %v6956_v60, %v13396_v43  ;;  %v2944_v56 = vmul.f32 %v13377_v49, %v12763_v7  ;;  %v2947_v5 = vmul.f32 %v13309_v6, %v12771_v9 }
 0x5f2   : > { %11367 = vtanh.f32 %v6979_v10  ;;  %v6973_v29 = vadd.f32 %v6965_v37, %v13393_v50  ;;  %v6934_v10 = vmul.f32 0.5, %v13357_v59 }
 0x5f3   : > { %11369 = vtanh.f32 %v6978_v52  ;;  %v6972_v35 = vadd.f32 %v6964_v15, %v13396_v43 }
 0x5f4   : > { %v11360_v42 = vpop.eup %11359  ;;  %v6981_v17 = vmul.f32 0.7978846, %v6973_v29  ;;  %v2942_v6 = vpop.permute.xlu1 %2941 }
 0x5f5   : > { %v6991_v14 = vadd.f32 1.0, %v11360_v42  ;;  %v6980_v54 = vmul.f32 0.7978846, %v6972_v35  ;;  %v6938_v35 = vmul.f32 0.5, %v13380_v1  ;;  %v2949_v1 = vmul.f32 %v13382_v48, %v12785_v19 }
 0x5f6   : > { %11371 = vtanh.f32 %v6981_v17  ;;  %v2951_v19 = vmul.f32 %v2942_v6, %v12799_v44 }
 0x5f7   : > { %v6999_v27 = vmul.f32 %v6991_v14, %v6935_v18  ;;  %11373 = vtanh.f32 %v6980_v54  ;;  %v2946_v18 = vmul.f32 %v13342_v46, %v12773_v2  ;;  %v2937_v14 = vpop.permute.xlu0 %2936  ;;  %v6941_v46 = vmul.f32 0.5, %v13393_v50 }
 0x5f8   : > { %v11362_v16 = vpop.eup %11361  ;;  %v2950_v50 = vmul.f32 %v2937_v14, %v12803_v58 }
 0x5f9   : > { %v11364_v51 = vpop.eup %11363  ;;  %v6993_v53 = vadd.f32 1.0, %v11362_v16  ;;  %v7039_v45 = vmul.f32 %v13283_v57, %v6999_v27  ;;  %v6939_v57 = vmul.f32 0.5, %v13375_v61 }
 0x5fa   : > { %v11366_v41 = vpop.eup %11365  ;;  %v6992_v23 = vadd.f32 1.0, %v11364_v51 }
 0x5fb   : > { %v7001_v30 = vmul.f32 %v6993_v53, %v6937_v21  ;;  %v6990_v60 = vadd.f32 1.0, %v11366_v41  ;;  %v13420_v52 = vadd.f32 %v7039_v45, %v2945_v24  ;;  %v2948_v24 = vmul.f32 %v2927_v13, %v12787_v25 }
 0x5fc   : > { %v11368_v37 = vpop.eup %11367  ;;  %v7000_v15 = vmul.f32 %v6992_v23, %v6936_v32 }
 0x5fd   : > { %v11370_v55 = vpop.eup %11369  ;;  %v6995_v29 = vadd.f32 1.0, %v11368_v37  ;;  %v6998_v47 = vmul.f32 %v6990_v60, %v6934_v10  ;;  %v7041_v42 = vmul.f32 %v7020_v3, %v7001_v30  ;;  %v7036_v60 = vpop.permute.xlu0 %7035 }
 0x5fe   : > { %v6994_v59 = vadd.f32 1.0, %v11370_v55  ;;  %v7040_v17 = vmul.f32 %v13353_v28, %v7000_v15 }
 0x5ff   : > { %v7003_v7 = vmul.f32 %v6995_v29, %v6939_v57  ;;  %v7038_v49 = vmul.f32 %v13293_v38, %v6998_v47  ;;  %v7054_v54 = vadd.f32 %v6999_v27, %v6998_v47  ;;  %v13432_v9 = vadd.f32 %v7041_v42, %v2947_v5 }
 0x600   : > { %v7002_v61 = vmul.f32 %v6994_v59, %v6938_v35  ;;  %v7048_v16 = vadd.f32 %v7040_v17, %v2946_v18  ;;  %v11372_v51 = vpop.eup %11371  ;;  %v6940_v27 = vmul.f32 0.5, %v13396_v43 }
 0x601   : > { %v7046_v3 = vadd.f32 %v7038_v49, %v2944_v56  ;;  %v7055_v21 = vadd.f32 %v7054_v54, %v7000_v15  ;;  %v7043_v53 = vmul.f32 %v7028_v40, %v7003_v7  ;;  %v11374_v2 = vpop.eup %11373  ;;  %v6997_v28 = vadd.f32 1.0, %v11372_v51  ;;  %v7032_v15 = vpop.permute.xlu1 %7031 }
 0x602   : > { %v7042_v38 = vmul.f32 %v7024_v63, %v7002_v61  ;;  %v6996_v45 = vadd.f32 1.0, %v11374_v2 }
 0x603   : > { %v7056_v41 = vadd.f32 %v7055_v21, %v7001_v30  ;;  %v7051_v32 = vadd.f32 %v7043_v53, %v2949_v1  ;;  %v7005_v23 = vmul.f32 %v6997_v28, %v6941_v46 }
 0x604   : > { %v7050_v10 = vadd.f32 %v7042_v38, %v2948_v24  ;;  %v7004_v37 = vmul.f32 %v6996_v45, %v6940_v27 }
 0x605   : > { %v7057_v56 = vadd.f32 %v7056_v41, %v7002_v61  ;;  %v7045_v48 = vmul.f32 %v7036_v60, %v7005_v23 }
 0x606   : > { %v7044_v5 = vmul.f32 %v7032_v15, %v7004_v37 }
 0x607   : > { %v7058_v40 = vadd.f32 %v7057_v56, %v7003_v7  ;;  %v7053_v25 = vadd.f32 %v7045_v48, %v2951_v19  ;;  %v7104_v7 = vpop.permute.xlu1 %7103 }
 0x608   : > { %v7052_v13 = vadd.f32 %v7044_v5, %v2950_v50 }
 0x609   : > { %v7059_v63 = vadd.f32 %v7058_v40, %v7004_v37 }
 0x60b   : > { %v7060_v43 = vadd.f32 %v7059_v63, %v7005_v23  ;;  %v7108_v61 = vpop.permute.xlu1 %7107 }
 0x60d   : > { %v7061_v55 = vrot.slane %v7060_v43, 4 }
 0x60f   : > { %v7062_v30 = vadd.f32 %v7061_v55, %v7060_v43 }
 0x611   : > { %v7063_v57 = vrot.slane %v7062_v30, 2 }
 0x613   : > { %v7064_v29 = vadd.f32 %v7063_v57, %v7062_v30 }
 0x615   : > { %v7065_v47 = vrot.slane %v7064_v29, 1 }
 0x617   : > { %v7066_v42 = vadd.f32 %v7065_v47, %v7064_v29 }
 0x619   : > { %v7068_v35 = vmul.f32 0.015625, %v7066_v42 }
 0x61b   : > { %v7070_v59 = vmul.f32 0.044715, %v7068_v35  ;;  %v7069_v14 = vmul.f32 0.5, %v7068_v35 }
 0x61d   : > { %v7071_v18 = vmul.f32 %v7070_v59, %v7068_v35 }
 0x61f   : > { %v7072_v17 = vmul.f32 %v7071_v18, %v7068_v35 }
 0x621   : > { %v7073_v44 = vadd.f32 %v7072_v17, %v7068_v35 }
 0x623   : > { %v7074_v49 = vmul.f32 0.7978846, %v7073_v44 }
 0x625   : > { %11375 = vtanh.f32 %v7074_v49 }
 0x62f   : > { %v11376_v58 = vpop.eup %11375 }
 0x630   : > { %v7076_v54 = vadd.f32 1.0, %v11376_v58  ;;  %v11409_v58 = vld [vmem:[%s12320_s22 + $0x8] sm:$0xff] }
 0x632   : > { %v7077_v6 = vmul.f32 %v7076_v54, %v7069_v14 }
 0x634   : > { %v7110_v51 = vmul.f32 %v13301_v11, %v7077_v6  ;;  %v7111_v21 = vmul.f32 %v13291_v31, %v7077_v6  ;;  %v7112_v1 = vmul.f32 %v13361_v39, %v7077_v6  ;;  %v7113_v53 = vmul.f32 %v13329_v34, %v7077_v6  ;;  %v7276_v34 = vld [vmem:[#allocation16 + $0x70] sm:$0xff]  ;;  %v7277_v39 = vld [vmem:[#allocation16 + $0x78] sm:$0xff] }
 0x635   : > { %v7114_v2 = vmul.f32 %v13416_v4, %v7077_v6  ;;  %v7115_v46 = vmul.f32 %v13400_v62, %v7077_v6  ;;  %v7116_v28 = vmul.f32 %v7104_v7, %v7077_v6  ;;  %v7117_v24 = vmul.f32 %v7108_v61, %v7077_v6  ;;  %v8089_v4 = vld [vmem:[%s13692_s2] ss:$0 sm:$0xff]  ;;  %s8410_s2 = sshll.u32 %s11975_s26, 10  ;;  %s7877_s26 = scalar_lea.sflag [#allocation4], %s12314_s7 }
 0x636   : > { %v7118_v38 = vadd.f32 %v7110_v51, %v7046_v3  ;;  %v7119_v27 = vadd.f32 %v7111_v21, %v13420_v52  ;;  %v7120_v45 = vadd.f32 %v7112_v1, %v7048_v16  ;;  %v7121_v41 = vadd.f32 %v7113_v53, %v13432_v9  ;;  %v8398_v52 = vld [vmem:[%s13693_s16] ss:$0 sm:$0xff]  ;;  %v11411_v21 = vld [vmem:[%s12320_s22 + $0x10] sm:$0xff]  ;;  %s13699_s16 = sld [smem:[#allocation45_spill]] }
 0x637   : > { %v7122_v23 = vadd.f32 %v7114_v2, %v7050_v10  ;;  %v7123_v11 = vadd.f32 %v7115_v46, %v7051_v32  ;;  %v7124_v60 = vadd.f32 %v7116_v28, %v7052_v13  ;;  %v7125_v31 = vadd.f32 %v7117_v24, %v7053_v25 }
 0x638   : > { %10239 = vmatprep.mubr.f32.mxu0 %v7118_v38  ;;  %v11083_v62 = vpack.c.bf16 %v7277_v39, %v7276_v34  ;;  %v1112_v16 = vadd.f32 %v12489_v8, %v8089_v4  ;;  %v1107_v10 = vadd.f32 %v8089_v4, %v12491_v12  ;;  %v1122_v48 = vadd.f32 %v12495_v20, %v8089_v4  ;;  %v7532_v39 = vld [vmem:[#allocation17] sm:$0xff] }
 0x639   : > { %10240 = vmatmul.mubr.f32.vlgmr.msra.gmra.mrb[144].mxu0 %v7119_v27  ;;  %v1117_v5 = vadd.f32 %v8089_v4, %v12499_v22  ;;  %v1132_v43 = vadd.f32 %v12509_v26, %v8089_v4  ;;  %v1127_v30 = vadd.f32 %v8089_v4, %v12511_v0  ;;  %v1142_v22 = vadd.f32 %v12519_v33, %v8089_v4  ;;  %v8399_v0 = vld [vmem:[%s13694_s12] ss:$0 sm:$0xff]  ;;  %s11831_s12 = smov [#allocation20]  }
 0x63a   : > { %10242 = vmatprep.mubr.f32.mxu0 %v7120_v45  ;;  %11084 = vmatprep.subr.bf16.mxu1 %v11083_v62  ;;  %v1137_v59 = vadd.f32 %v8089_v4, %v12521_v36  ;;  %v11410_v36 = vld [vmem:[%s12320_s22] sm:$0xff] }
 0x63b   : > { %11086 = vmatpush3.bf16.msra.mxu1 %v11083_v62  ;;  %v7533_v62 = vld [vmem:[#allocation17 + $0x8] sm:$0xff] }
 0x63c   : > { %s13561_s14 = scalar_lea.hbm %s13699_s16, %s8410_s2 }
 0x63d   : > { %10243 = vmatmul.mubr.f32.gmra.mrb[146].mxu0 %v7121_v41 }
 0x63e   : > { %10245 = vmatprep.mubr.f32.mxu0 %v7122_v23  ;;  %v11412_v23 = vld [vmem:[%s12320_s22 + $0x18] sm:$0xff] }
 0x641   : > { %10246 = vmatmul.mubr.f32.gmra.mrb[148].mxu0 %v7123_v11 }
 0x642   : > { %10248 = vmatprep.mubr.f32.mxu0 %v7124_v60  ;;  %v11413_v60 = vld [vmem:[%s12320_s22 + $0x20] sm:$0xff] }
 0x645   : > { %10249 = vmatmul.mubr.f32.gmra.mrb[150].mxu0 %v7125_v31 }
 0x70c   : > { %v10241_v9 = vpop.f32.mrb[144].mxu0 }
 0x70d   : > { %v7221_v3 = vadd.f32 %v10241_v9, %v8398_v52  ;;  %v7215_v32 = vpop.f32.mrb[145].mxu0 }
 0x70e   : > { %v7216_v37 = vadd.f32 %v8398_v52, %v7215_v32  ;;  %v7535_v32 = vld [vmem:[#allocation17 + $0x18] sm:$0xff] }
 0x70f   : > { %v7255_v56 = vmul.f32 %v7221_v3, %v1112_v16  ;;  %v11087_v16 = vpack.c.bf16 %v7533_v62, %v7532_v39  ;;  %v7534_v3 = vld [vmem:[#allocation17 + $0x10] sm:$0xff] }
 0x710   : > { %v7254_v15 = vmul.f32 %v7216_v37, %v1107_v10  ;;  %v10244_v19 = vpop.f32.mrb[146].mxu0  ;;  %v11414_v10 = vld [vmem:[%s12320_s22 + $0x28] sm:$0xff] }
 0x711   : > { %v7231_v40 = vadd.f32 %v10244_v19, %v8398_v52  ;;  %v7225_v50 = vpop.f32.mrb[147].mxu0  ;;  %11088 = vmatprep.subr.bf16.mxu0 %v11087_v16  ;;  %v11091_v19 = vpack.c.bf16 %v7535_v32, %v7534_v3 }
 0x712   : > { %v7226_v25 = vadd.f32 %v8398_v52, %v7225_v50  ;;  %10283 = vmatprep.mubr.f32.mxu1 %v7254_v15  ;;  %11090 = vmatpush3.bf16.msra.mxu0 %v11087_v16 }
 0x713   : > { %v7257_v63 = vmul.f32 %v7231_v40, %v1122_v48  ;;  %10284 = vmatmul.mubr.f32.vlgmr.msra.gmra.mrb[152].mxu1 %v7255_v56  ;;  %v11415_v56 = vld [vmem:[%s12320_s22 + $0x30] sm:$0xff]  ;;  %11092 = vmatprep.subr.bf16.mxu0 %v11091_v19  ;;  %v7537_v40 = vld [vmem:[#allocation17 + $0x28] sm:$0xff] }
 0x714   : > { %v7256_v13 = vmul.f32 %v7226_v25, %v1117_v5  ;;  %v10247_v8 = vpop.f32.mrb[148].mxu0  ;;  %v7536_v48 = vld [vmem:[#allocation17 + $0x20] sm:$0xff] }
 0x715   : > { %v7241_v55 = vadd.f32 %v10247_v8, %v8398_v52  ;;  %v7235_v12 = vpop.f32.mrb[149].mxu0  ;;  %v7539_v8 = vld [vmem:[#allocation17 + $0x38] sm:$0xff] }
 0x716   : > { %v7236_v57 = vadd.f32 %v8398_v52, %v7235_v12  ;;  %10286 = vmatprep.mubr.f32.mxu1 %v7256_v13  ;;  %11094 = vmatpush3.bf16.msra.mxu0 %v11091_v19  ;;  %v7538_v13 = vld [vmem:[#allocation17 + $0x30] sm:$0xff] }
 0x717   : > { %v7259_v29 = vmul.f32 %v7241_v55, %v1132_v43  ;;  %10287 = vmatmul.mubr.f32.gmra.mrb[154].mxu1 %v7257_v63  ;;  %v11095_v63 = vpack.c.bf16 %v7537_v40, %v7536_v48  ;;  %v11416_v43 = vld [vmem:[%s12320_s22 + $0x38] sm:$0xff]  ;;  %v11099_v12 = vpack.c.bf16 %v7539_v8, %v7538_v13  ;;  %s11731_s22 = sshll.u32 %s11831_s12, 4  ;;  %s11732_s22 = int_to_ptr.vmem [resolvable:$false] %s11731_s22 }
 0x718   : > { %v7258_v20 = vmul.f32 %v7236_v57, %v1127_v30  ;;  %v10250_v47 = vpop.f32.mrb[150].mxu0  ;;  %v7540_v30 = vld [vmem:[#allocation17 + $0x40] sm:$0xff]  ;;  %v7541_v57 = vld [vmem:[#allocation17 + $0x48] sm:$0xff] }
 0x719   : > { %v7251_v42 = vadd.f32 %v10250_v47, %v8398_v52  ;;  %v7245_v35 = vpop.f32.mrb[151].mxu0  ;;  %11096 = vmatprep.subr.bf16.mxu0 %v11095_v63  ;;  %v7542_v47 = vld [vmem:[#allocation17 + $0x50] sm:$0xff] }
 0x71a   : > { %v7246_v18 = vadd.f32 %v8398_v52, %v7245_v35  ;;  %10289 = vmatprep.mubr.f32.mxu1 %v7258_v20  ;;  %11098 = vmatpush3.bf16.msra.mxu0 %v11095_v63  ;;  %v11103_v20 = vpack.c.bf16 %v7541_v57, %v7540_v30  ;;  %v7544_v35 = vld [vmem:[#allocation17 + $0x60] sm:$0xff] }
 0x71b   : > { %v7261_v26 = vmul.f32 %v7251_v42, %v1142_v22  ;;  %10290 = vmatmul.mubr.f32.gmra.mrb[156].mxu1 %v7259_v29  ;;  %11100 = vmatprep.subr.bf16.mxu0 %v11099_v12  ;;  %v7543_v22 = vld [vmem:[#allocation17 + $0x58] sm:$0xff] }
 0x71c   : > { %v7260_v17 = vmul.f32 %v7246_v18, %v1137_v59  ;;  %v11107_v42 = vpack.c.bf16 %v7543_v22, %v7542_v47  ;;  %v7545_v59 = vld [vmem:[#allocation17 + $0x68] sm:$0xff] }
 0x71d   : > { %v11111_v18 = vpack.c.bf16 %v7545_v59, %v7544_v35 }
 0x71e   : > { %10292 = vmatprep.mubr.f32.mxu1 %v7260_v17  ;;  %11102 = vmatpush3.bf16.msra.mxu0 %v11099_v12  ;;  %v7547_v17 = vld [vmem:[#allocation17 + $0x78] sm:$0xff] }
 0x71f   : > { %10293 = vmatmul.mubr.f32.gmra.mrb[158].mxu1 %v7261_v26  ;;  %11104 = vmatprep.subr.bf16.mxu0 %v11103_v20  ;;  %v7546_v26 = vld [vmem:[#allocation17 + $0x70] sm:$0xff] }
 0x722   : > { %11106 = vmatpush3.bf16.msra.mxu0 %v11103_v20 }
 0x723   : > { %11108 = vmatprep.subr.bf16.mxu0 %v11107_v42 }
 0x726   : > { %11110 = vmatpush3.bf16.msra.mxu0 %v11107_v42 }
 0x727   : > { %11112 = vmatprep.subr.bf16.mxu0 %v11111_v18 }
 0x72a   : > { %11114 = vmatpush3.bf16.msra.mxu0 %v11111_v18 }
 0x7e6   : > { %v10285_v44 = vpop.f32.mrb[152].mxu1 }
 0x7e7   : > { %v7357_v33 = vadd.f32 %v10285_v44, %v8399_v0  ;;  %v7351_v49 = vpop.f32.mrb[153].mxu1  ;;  %v7732_v44 = vld [vmem:[#allocation19] sm:$0xff] }
 0x7e8   : > { %v7352_v7 = vadd.f32 %v8399_v0, %v7351_v49 }
 0x7e9   : > { %v13467_v14 = vadd.f32 %v11409_v58, %v7357_v33  ;;  %v7733_v33 = vld [vmem:[#allocation19 + $0x8] sm:$0xff] }
 0x7ea   : > { %v13470_v54 = vadd.f32 %v11410_v36, %v7352_v7  ;;  %v10288_v6 = vpop.f32.mrb[154].mxu1  ;;  %v11119_v49 = vpack.c.bf16 %v7733_v33, %v7732_v44 }
 0x7eb   : > { %7402 = vadd.xlane.f32.xlu1 %v13467_v14  ;;  %v7361_v61 = vpop.f32.mrb[155].mxu1  ;;  %v7417_v2 = vmul.f32 %v13467_v14, %v13467_v14  ;;  %v7367_v28 = vadd.f32 %v10288_v6, %v8399_v0 }
 0x7ec   : > { %v7362_v51 = vadd.f32 %v8399_v0, %v7361_v61  ;;  %7400 = vadd.xlane.f32.xlu0 %v13470_v54  ;;  %v7416_v27 = vmul.f32 %v13470_v54, %v13470_v54  ;;  %11120 = vmatprep.subr.bf16.mxu1 %v11119_v49 }
 0x7ed   : > { %v13485_v11 = vadd.f32 %v11412_v23, %v7367_v28  ;;  %11122 = vmatpush3.bf16.msra.mxu1 %v11119_v49 }
 0x7ee   : > { %v13475_v1 = vadd.f32 %v11411_v21, %v7362_v51  ;;  %v10291_v53 = vpop.f32.mrb[156].mxu1 }
 0x7ef   : > { %v7371_v46 = vpop.f32.mrb[157].mxu1  ;;  %v7377_v34 = vadd.f32 %v10291_v53, %v8399_v0  ;;  %v7419_v52 = vmul.f32 %v13485_v11, %v13485_v11 }
 0x7f0   : > { %7426 = vadd.xlane.f32.xlu0 %v7417_v2  ;;  %7404 = vadd.xlane.f32.xlu1 %v13475_v1  ;;  %v7372_v24 = vadd.f32 %v8399_v0, %v7371_v46  ;;  %v7418_v45 = vmul.f32 %v13475_v1, %v13475_v1 }
 0x7f1   : > { %v13497_v37 = vadd.f32 %v11414_v10, %v7377_v34 }
 0x7f2   : > { %v10294_v38 = vpop.f32.mrb[158].mxu1  ;;  %v13488_v31 = vadd.f32 %v11413_v60, %v7372_v24 }
 0x7f3   : > { %v7381_v41 = vpop.f32.mrb[159].mxu1  ;;  %v7387_v50 = vadd.f32 %v10294_v38, %v8399_v0  ;;  %v7421_v5 = vmul.f32 %v13497_v37, %v13497_v37 }
 0x7f4   : > { %7424 = vadd.xlane.f32.xlu0 %v7416_v27  ;;  %7428 = vadd.xlane.f32.xlu1 %v7418_v45  ;;  %v7382_v4 = vadd.f32 %v8399_v0, %v7381_v41  ;;  %v7420_v9 = vmul.f32 %v13488_v31, %v13488_v31  ;;  %v11115_v0 = vpack.c.bf16 %v7547_v17, %v7546_v26  ;;  %v8400_v17 = vld [vmem:[%s13695_s1] ss:$0 sm:$0xff]  ;;  %s873_s1 = scalar_lea.vmem [#allocation20], %s8075_s0 }
 0x7f5   : > { %v13509_v55 = vadd.f32 %v11416_v43, %v7387_v50  ;;  %s7890_s0 = sshll.u32 %s873_s1, 4  ;;  %s13555_s0 = int_to_ptr.vmem [resolvable:$true] %s7890_s0 }
 0x7f6   : > { %v13500_v15 = vadd.f32 %v11415_v56, %v7382_v4  ;;  %11116 = vmatprep.subr.bf16.mxu0 %v11115_v0  ;;  %p11734_p4 = scmp.lt.s32.totalorder %s13555_s0, %s11732_s22 }
 0x7f7   : > { %v7423_v29 = vmul.f32 %v13509_v55, %v13509_v55  ;;  %11118 = vmatpush3.bf16.msra.mxu0 %v11115_v0 }
 0x7f8   : > { %7406 = vadd.xlane.f32.xlu0 %v13485_v11  ;;  %7408 = vadd.xlane.f32.xlu1 %v13488_v31  ;;  %v7422_v25 = vmul.f32 %v13500_v15, %v13500_v15 }
 0x7fc   : > { %7430 = vadd.xlane.f32.xlu0 %v7419_v52  ;;  %7432 = vadd.xlane.f32.xlu1 %v7420_v9 }
 0x800   : > { %7410 = vadd.xlane.f32.xlu0 %v13497_v37  ;;  %7412 = vadd.xlane.f32.xlu1 %v13500_v15 }
 0x804   : > { %7434 = vadd.xlane.f32.xlu0 %v7421_v5  ;;  %7436 = vadd.xlane.f32.xlu1 %v7422_v25 }
 0x808   : > { %7414 = vadd.xlane.f32.xlu0 %v13509_v55 }
 0x80c   : > { %7438 = vadd.xlane.f32.xlu0 %v7423_v29 }
 0x878   : > { %v7403_v7 = vpop.xlane.xlu1 %7402 }
 0x879   : > { %v7401_v58 = vpop.xlane.xlu0 %7400  ;;  %v7441_v36 = vmul.f32 0.0625, %v7403_v7 }
 0x87a   : > { %v7440_v6 = vmul.f32 0.0625, %v7401_v58 }
 0x87b   : > { %v7457_v21 = vmul.f32 %v7441_v36, %v7441_v36  ;;  %v7473_v30 = vsub.f32 %v13467_v14, %v7441_v36  ;;  %v8401_v36 = vld [vmem:[%s13696_s10] ss:$0 sm:$0xff] }
 0x87c   : > { %v7456_v28 = vmul.f32 %v7440_v6, %v7440_v6  ;;  %v7472_v57 = vsub.f32 %v13470_v54, %v7440_v6 }
 0x87d   : > { %v7405_v61 = vpop.xlane.xlu1 %7404  ;;  %v7427_v51 = vpop.xlane.xlu0 %7426 }
 0x87e   : > { %v7442_v53 = vmul.f32 0.0625, %v7405_v61  ;;  %v7449_v2 = vmul.f32 0.0625, %v7427_v51 }
 0x880   : > { %v7465_v46 = vsub.f32 %v7449_v2, %v7457_v21  ;;  %v7458_v27 = vmul.f32 %v7442_v53, %v7442_v53  ;;  %v7474_v29 = vsub.f32 %v13475_v1, %v7442_v53 }
 0x881   : > { %v7429_v24 = vpop.xlane.xlu1 %7428  ;;  %v7425_v38 = vpop.xlane.xlu0 %7424 }
 0x882   : > { %v7481_v45 = vadd.f32 1e-05, %v7465_v46  ;;  %v7450_v41 = vmul.f32 0.0625, %v7429_v24  ;;  %v7448_v23 = vmul.f32 0.0625, %v7425_v38 }
 0x884   : > { %11377 = vrsqrt.f32 %v7481_v45  ;;  %v7466_v60 = vsub.f32 %v7450_v41, %v7458_v27  ;;  %v7464_v34 = vsub.f32 %v7448_v23, %v7456_v28 }
 0x885   : > { %v7409_v39 = vpop.xlane.xlu1 %7408  ;;  %v7407_v62 = vpop.xlane.xlu0 %7406 }
 0x886   : > { %v7482_v4 = vadd.f32 1e-05, %v7466_v60  ;;  %v7480_v52 = vadd.f32 1e-05, %v7464_v34  ;;  %v7444_v9 = vmul.f32 0.0625, %v7409_v39  ;;  %v13514_v16 = vmul.f32 0.0625, %v7407_v62 }
 0x888   : > { %11379 = vrsqrt.f32 %v7482_v4  ;;  %v7460_v10 = vmul.f32 %v7444_v9, %v7444_v9  ;;  %v7459_v56 = vmul.f32 %v13514_v16, %v13514_v16  ;;  %v7476_v28 = vsub.f32 %v13488_v31, %v7444_v9 }
 0x889   : > { %11381 = vrsqrt.f32 %v7480_v52  ;;  %v7433_v3 = vpop.xlane.xlu1 %7432  ;;  %v7431_v32 = vpop.xlane.xlu0 %7430  ;;  %v7475_v45 = vsub.f32 %v13485_v11, %v13514_v16 }
 0x88a   : > { %v7452_v19 = vmul.f32 0.0625, %v7433_v3  ;;  %v7451_v48 = vmul.f32 0.0625, %v7431_v32 }
 0x88c   : > { %v7468_v40 = vsub.f32 %v7452_v19, %v7460_v10  ;;  %v7467_v50 = vsub.f32 %v7451_v48, %v7459_v56 }
 0x88d   : > { %v7411_v5 = vpop.xlane.xlu0 %7410  ;;  %v7413_v25 = vpop.xlane.xlu1 %7412 }
 0x88e   : > { %v11378_v63 = vpop.eup %11377  ;;  %v7484_v13 = vadd.f32 1e-05, %v7468_v40  ;;  %v7483_v8 = vadd.f32 1e-05, %v7467_v50  ;;  %v7445_v43 = vmul.f32 0.0625, %v7411_v5  ;;  %v7446_v12 = vmul.f32 0.0625, %v7413_v25 }
 0x88f   : > { %v7497_v20 = vmul.f32 %v11378_v63, %v7473_v30 }
 0x890   : > { %11383 = vrsqrt.f32 %v7484_v13  ;;  %v7461_v35 = vmul.f32 %v7445_v43, %v7445_v43  ;;  %v7462_v59 = vmul.f32 %v7446_v12, %v7446_v12  ;;  %v7477_v56 = vsub.f32 %v13497_v37, %v7445_v43 }
 0x891   : > { %11385 = vrsqrt.f32 %v7483_v8  ;;  %v7435_v47 = vpop.xlane.xlu0 %7434  ;;  %v7437_v22 = vpop.xlane.xlu1 %7436  ;;  %v7511_v6 = vmul.f32 %v8400_v17, %v7497_v20  ;;  %v7478_v16 = vsub.f32 %v13500_v15, %v7446_v12  ;;  %v7734_v20 = vld [vmem:[#allocation19 + $0x10] sm:$0xff]  ;;  %v7735_v12 = vld [vmem:[#allocation19 + $0x18] sm:$0xff] }
 0x892   : > { %v11380_v42 = vpop.eup %11379  ;;  %v7453_v18 = vmul.f32 0.0625, %v7435_v47  ;;  %v7454_v26 = vmul.f32 0.0625, %v7437_v22  ;;  %v11123_v47 = vpack.c.bf16 %v7735_v12, %v7734_v20  ;;  %v7736_v22 = vld [vmem:[#allocation19 + $0x20] sm:$0xff] }
 0x893   : > { %v11382_v0 = vpop.eup %11381  ;;  %v7498_v44 = vmul.f32 %v11380_v42, %v7474_v29  ;;  %v7525_v38 = vadd.f32 %v8401_v36, %v7511_v6  ;;  %v7737_v42 = vld [vmem:[#allocation19 + $0x28] sm:$0xff] }
 0x894   : > { %v7469_v33 = vsub.f32 %v7453_v18, %v7461_v35  ;;  %v7470_v49 = vsub.f32 %v7454_v26, %v7462_v59  ;;  %v7496_v7 = vmul.f32 %v11382_v0, %v7472_v57  ;;  %11124 = vmatprep.subr.bf16.mxu1 %v11123_v47  ;;  %v11127_v35 = vpack.c.bf16 %v7737_v42, %v7736_v22  ;;  %v7738_v59 = vld [vmem:[#allocation19 + $0x30] sm:$0xff]  ;;  %v7739_v18 = vld [vmem:[#allocation19 + $0x38] sm:$0xff]  ;;  %v7740_v0 = vld [vmem:[#allocation19 + $0x40] sm:$0xff] }
 0x895   : > { %v7415_v58 = vpop.xlane.xlu0 %7414  ;;  %v7512_v61 = vmul.f32 %v8400_v17, %v7498_v44  ;;  %11126 = vmatpush3.bf16.msra.mxu1 %v11123_v47  ;;  %v11131_v26 = vpack.c.bf16 %v7739_v18, %v7738_v59  ;;  %v7741_v44 = vld [vmem:[#allocation19 + $0x48] sm:$0xff] }
 0x896   : > { %v7485_v51 = vadd.f32 1e-05, %v7469_v33  ;;  %v7486_v21 = vadd.f32 1e-05, %v7470_v49  ;;  %v7447_v53 = vmul.f32 0.0625, %v7415_v58  ;;  %v7510_v2 = vmul.f32 %v8400_v17, %v7496_v7  ;;  %11128 = vmatprep.subr.bf16.mxu1 %v11127_v35  ;;  %v7742_v33 = vld [vmem:[#allocation19 + $0x50] sm:$0xff] }
 0x897   : > { %v7526_v60 = vadd.f32 %v8401_v36, %v7512_v61  ;;  %v7743_v49 = vld [vmem:[#allocation19 + $0x58] sm:$0xff]  ;;  %v7744_v58 = vld [vmem:[#allocation19 + $0x60] sm:$0xff]  ;;  %v7746_v61 = vld [vmem:[#allocation19 + $0x70] sm:$0xff] }
 0x898   : > { %11387 = vrsqrt.f32 %v7485_v51  ;;  %v7524_v46 = vadd.f32 %v8401_v36, %v7510_v2  ;;  %v7463_v41 = vmul.f32 %v7447_v53, %v7447_v53  ;;  %v7479_v8 = vsub.f32 %v13509_v55, %v7447_v53  ;;  %v7747_v51 = vld [vmem:[#allocation19 + $0x78] sm:$0xff]  ;;  %v8402_v53 = vld [vmem:[%s13697_s8] ss:$0 sm:$0xff]  ;;  %s11727_s8 = scalar_lea.vmem %s13555_s0, 1024 }
 0x899   : > { %11389 = vrsqrt.f32 %v7486_v21  ;;  %v7439_v24 = vpop.xlane.xlu0 %7438  ;;  %11130 = vmatpush3.bf16.msra.mxu1 %v11127_v35  ;;  %v11139_v7 = vpack.c.bf16 %v7743_v49, %v7742_v33  ;;  %v11147_v21 = vpack.c.bf16 %v7747_v51, %v7746_v61  ;;  %p11728_p13 = scmp.ne.s32.totalorder %s13555_s0, %s11727_s8 }
 0x89a   : > { %v11384_v27 = vpop.eup %11383  ;;  %10327 = vmatprep.mubr.f32.mxu0 %v7524_v46  ;;  %v7455_v23 = vmul.f32 0.0625, %v7439_v24  ;;  %11132 = vmatprep.subr.bf16.mxu1 %v11131_v26 }
 0x89b   : > { %v11386_v34 = vpop.eup %11385  ;;  %10328 = vmatmul.mubr.f32.vlgmr.msra.gmra.mrb[152].mxu0 %v7525_v38  ;;  %v7500_v39 = vmul.f32 %v11384_v27, %v7476_v28  ;;  %p11729_p2 = pnand %p11728_p13, %p13700_p0 }
 0x89c   : > { %v7471_v62 = vsub.f32 %v7455_v23, %v7463_v41  ;;  %10330 = vmatprep.mubr.f32.mxu0 %v7526_v60  ;;  %v7499_v4 = vmul.f32 %v11386_v34, %v7475_v45 }
 0x89d   : > { %v7514_v52 = vmul.f32 %v8400_v17, %v7500_v39  ;;  %11134 = vmatpush3.bf16.msra.mxu1 %v11131_v26  ;;  %p11730_p8 = pneg %p11729_p2 }
 0x89e   : > { %v7487_v3 = vadd.f32 1e-05, %v7471_v62  ;;  %v7513_v9 = vmul.f32 %v8400_v17, %v7499_v4 }
 0x89f   : > { %v7528_v32 = vadd.f32 %v8401_v36, %v7514_v52 }
 0x8a0   : > { %11391 = vrsqrt.f32 %v7487_v3  ;;  %v7527_v10 = vadd.f32 %v8401_v36, %v7513_v9 }
 0x8a2   : > { %v11388_v19 = vpop.eup %11387  ;;  %10331 = vmatmul.mubr.f32.gmra.mrb[154].mxu0 %v7527_v10 }
 0x8a3   : > { %v11390_v48 = vpop.eup %11389  ;;  %10333 = vmatprep.mubr.f32.mxu0 %v7528_v32  ;;  %v7501_v40 = vmul.f32 %v11388_v19, %v7477_v56 }
 0x8a4   : > { %v7502_v50 = vmul.f32 %v11390_v48, %v7478_v16 }
 0x8a5   : > { %v7515_v5 = vmul.f32 %v8400_v17, %v7501_v40 }
 0x8a6   : > { %v7516_v25 = vmul.f32 %v8400_v17, %v7502_v50 }
 0x8a7   : > { %v7529_v63 = vadd.f32 %v8401_v36, %v7515_v5 }
 0x8a8   : > { %v7530_v13 = vadd.f32 %v8401_v36, %v7516_v25 }
 0x8a9   : > { %10334 = vmatmul.mubr.f32.gmra.mrb[156].mxu0 %v7529_v63 }
 0x8aa   : > { %v11392_v30 = vpop.eup %11391  ;;  %10336 = vmatprep.mubr.f32.mxu0 %v7530_v13 }
 0x8ab   : > { %v7503_v57 = vmul.f32 %v11392_v30, %v7479_v8 }
 0x8ad   : > { %v7517_v29 = vmul.f32 %v8400_v17, %v7503_v57  ;;  %v11135_v17 = vpack.c.bf16 %v7741_v44, %v7740_v0 }
 0x8af   : > { %v7531_v43 = vadd.f32 %v8401_v36, %v7517_v29  ;;  %11136 = vmatprep.subr.bf16.mxu1 %v11135_v17  ;;  %v7745_v36 = vld [vmem:[#allocation19 + $0x68] sm:$0xff] }
 0x8b0   : > { %11138 = vmatpush3.bf16.msra.mxu1 %v11135_v17  ;;  %v11143_v6 = vpack.c.bf16 %v7745_v36, %v7744_v58 }
 0x8b1   : > { %10337 = vmatmul.mubr.f32.gmra.mrb[158].mxu0 %v7531_v43  ;;  %11140 = vmatprep.subr.bf16.mxu1 %v11139_v7 }
 0x8b4   : > { %11142 = vmatpush3.bf16.msra.mxu1 %v11139_v7 }
 0x8b5   : > { %11144 = vmatprep.subr.bf16.mxu1 %v11143_v6 }
 0x8b8   : > { %11146 = vmatpush3.bf16.msra.mxu1 %v11143_v6 }
 0x8b9   : > { %11148 = vmatprep.subr.bf16.mxu1 %v11147_v21 }
 0x8bc   : > { %11150 = vmatpush3.bf16.msra.mxu1 %v11147_v21 }
 0x96e   : > { %v10329_v2 = vpop.f32.mrb[152].mxu0 }
 0x96f   : > { %v7627_v46 = vadd.f32 %v10329_v2, %v8402_v53  ;;  %v7621_v28 = vpop.f32.mrb[153].mxu0 }
 0x970   : > { %v7622_v24 = vadd.f32 %v8402_v53, %v7621_v28 }
 0x971   : > { %v7669_v38 = vmul.f32 0.044715, %v7627_v46  ;;  %v7661_v6 = vmul.f32 0.5, %v7627_v46 }
 0x972   : > { %v7668_v27 = vmul.f32 0.044715, %v7622_v24  ;;  %v7660_v7 = vmul.f32 0.5, %v7622_v24 }
 0x973   : > { %v7677_v45 = vmul.f32 %v7669_v38, %v7627_v46 }
 0x974   : > { %v7676_v41 = vmul.f32 %v7668_v27, %v7622_v24 }
 0x975   : > { %v7685_v23 = vmul.f32 %v7677_v45, %v7627_v46  ;;  %v10332_v60 = vpop.f32.mrb[154].mxu0 }
 0x976   : > { %v13536_v34 = vadd.f32 %v10332_v60, %v8402_v53  ;;  %v7631_v39 = vpop.f32.mrb[155].mxu0  ;;  %v7684_v62 = vmul.f32 %v7676_v41, %v7622_v24 }
 0x977   : > { %v7693_v4 = vadd.f32 %v7685_v23, %v7627_v46  ;;  %v7632_v52 = vadd.f32 %v8402_v53, %v7631_v39 }
 0x978   : > { %v7671_v3 = vmul.f32 0.044715, %v13536_v34  ;;  %v7692_v9 = vadd.f32 %v7684_v62, %v7622_v24  ;;  %v7663_v46 = vmul.f32 0.5, %v13536_v34 }
 0x979   : > { %v7701_v32 = vmul.f32 0.7978846, %v7693_v4  ;;  %v7670_v10 = vmul.f32 0.044715, %v7632_v52  ;;  %v7662_v24 = vmul.f32 0.5, %v7632_v52 }
 0x97a   : > { %v7679_v56 = vmul.f32 %v7671_v3, %v13536_v34  ;;  %v7700_v19 = vmul.f32 0.7978846, %v7692_v9 }
 0x97b   : > { %11393 = vtanh.f32 %v7701_v32  ;;  %v7678_v16 = vmul.f32 %v7670_v10, %v7632_v52 }
 0x97c   : > { %v10335_v48 = vpop.f32.mrb[156].mxu0  ;;  %11395 = vtanh.f32 %v7700_v19  ;;  %v7687_v40 = vmul.f32 %v7679_v56, %v13536_v34 }
 0x97d   : > { %v7647_v50 = vadd.f32 %v10335_v48, %v8402_v53  ;;  %v7641_v5 = vpop.f32.mrb[157].mxu0  ;;  %v7686_v25 = vmul.f32 %v7678_v16, %v7632_v52 }
 0x97e   : > { %v7642_v63 = vadd.f32 %v8402_v53, %v7641_v5  ;;  %v7695_v13 = vadd.f32 %v7687_v40, %v13536_v34 }
 0x97f   : > { %v7673_v8 = vmul.f32 0.044715, %v7647_v50  ;;  %v7694_v30 = vadd.f32 %v7686_v25, %v7632_v52  ;;  %v7665_v40 = vmul.f32 0.5, %v7647_v50 }
 0x980   : > { %v7672_v57 = vmul.f32 0.044715, %v7642_v63  ;;  %v7703_v29 = vmul.f32 0.7978846, %v7695_v13  ;;  %v7664_v16 = vmul.f32 0.5, %v7642_v63 }
 0x981   : > { %v7681_v43 = vmul.f32 %v7673_v8, %v7647_v50  ;;  %v7702_v20 = vmul.f32 0.7978846, %v7694_v30 }
 0x982   : > { %v7680_v12 = vmul.f32 %v7672_v57, %v7642_v63  ;;  %11397 = vtanh.f32 %v7703_v29 }
 0x983   : > { %11399 = vtanh.f32 %v7702_v20  ;;  %v7689_v47 = vmul.f32 %v7681_v43, %v7647_v50 }
 0x984   : > { %v10338_v22 = vpop.f32.mrb[158].mxu0  ;;  %v7688_v42 = vmul.f32 %v7680_v12, %v7642_v63 }
 0x985   : > { %v11394_v35 = vpop.eup %11393  ;;  %v7657_v59 = vadd.f32 %v10338_v22, %v8402_v53  ;;  %v7651_v18 = vpop.f32.mrb[159].mxu0  ;;  %v7697_v26 = vadd.f32 %v7689_v47, %v7647_v50 }
 0x986   : > { %v11396_v0 = vpop.eup %11395  ;;  %v7652_v44 = vadd.f32 %v8402_v53, %v7651_v18  ;;  %v7717_v17 = vadd.f32 1.0, %v11394_v35  ;;  %v7696_v33 = vadd.f32 %v7688_v42, %v7642_v63  ;;  %v8403_v63 = vld [vmem:[%s13698_s3] ss:$0 sm:$0xff]  ;;  %s11733_s3 = scalar_lea.vmem %s11732_s22, 2048 }
 0x987   : > { %v7675_v49 = vmul.f32 0.044715, %v7657_v59  ;;  %v7716_v58 = vadd.f32 1.0, %v11396_v0  ;;  %v7705_v36 = vmul.f32 0.7978846, %v7697_v26  ;;  %v7667_v57 = vmul.f32 0.5, %v7657_v59  ;;  %p11735_p10 = scmp.lt.s32.totalorder %s11733_s3, %s11727_s8 }
 0x988   : > { %v7674_v61 = vmul.f32 0.044715, %v7652_v44  ;;  %v7704_v51 = vmul.f32 0.7978846, %v7696_v33  ;;  %v7725_v38 = vmul.f32 %v7717_v17, %v7661_v6  ;;  %v7666_v8 = vmul.f32 0.5, %v7652_v44 }
 0x989   : > { %v7683_v21 = vmul.f32 %v7675_v49, %v7657_v59  ;;  %v7724_v2 = vmul.f32 %v7716_v58, %v7660_v7  ;;  %11401 = vtanh.f32 %v7705_v36  ;;  %p11736_p11 = por %p11735_p10, %p11734_p4 }
 0x98a   : > { %v7682_v28 = vmul.f32 %v7674_v61, %v7652_v44  ;;  %11403 = vtanh.f32 %v7704_v51 }
 0x98b   : > { %10371 = vmatprep.mubr.f32.mxu1 %v7724_v2  ;;  %v7691_v27 = vmul.f32 %v7683_v21, %v7657_v59  ;;  %p11737_p3 = pnand %p11736_p11, %p11730_p8 }
 0x98c   : > { %v11398_v45 = vpop.eup %11397  ;;  %10372 = vmatmul.mubr.f32.vlgmr.msra.gmra.mrb[160].mxu1 %v7725_v38  ;;  %v7690_v53 = vmul.f32 %v7682_v28, %v7652_v44 }
 0x98d   : > { %v11400_v41 = vpop.eup %11399  ;;  %v7719_v23 = vadd.f32 1.0, %v11398_v45  ;;  %v7699_v60 = vadd.f32 %v7691_v27, %v7657_v59 }
 0x98e   : > { %v7718_v39 = vadd.f32 1.0, %v11400_v41  ;;  %v7698_v62 = vadd.f32 %v7690_v53, %v7652_v44 }
 0x98f   : > { %v7707_v4 = vmul.f32 0.7978846, %v7699_v60  ;;  %v7727_v32 = vmul.f32 %v7719_v23, %v7663_v46 }
 0x990   : > { %v7726_v3 = vmul.f32 %v7718_v39, %v7662_v24  ;;  %v7706_v9 = vmul.f32 0.7978846, %v7698_v62 }
 0x991   : > { %11405 = vtanh.f32 %v7707_v4 }
 0x992   : > { %10374 = vmatprep.mubr.f32.mxu1 %v7726_v3  ;;  %11407 = vtanh.f32 %v7706_v9 }
 0x993   : > { %v11402_v10 = vpop.eup %11401  ;;  %10375 = vmatmul.mubr.f32.gmra.mrb[162].mxu1 %v7727_v32 }
 0x994   : > { %v11404_v56 = vpop.eup %11403  ;;  %v7721_v19 = vadd.f32 1.0, %v11402_v10 }
 0x995   : > { %v7720_v48 = vadd.f32 1.0, %v11404_v56 }
 0x996   : > { %v7729_v52 = vmul.f32 %v7721_v19, %v7665_v40 }
 0x997   : > { %v7728_v5 = vmul.f32 %v7720_v48, %v7664_v16 }
 0x999   : > { %10377 = vmatprep.mubr.f32.mxu1 %v7728_v5 }
 0x99a   : > { %10378 = vmatmul.mubr.f32.gmra.mrb[164].mxu1 %v7729_v52 }
 0x99b   : > { %v11406_v25 = vpop.eup %11405 }
 0x99c   : > { %v11408_v34 = vpop.eup %11407  ;;  %v7723_v13 = vadd.f32 1.0, %v11406_v25 }
 0x99d   : > { %v7722_v30 = vadd.f32 1.0, %v11408_v34 }
 0x99e   : > { %v7731_v43 = vmul.f32 %v7723_v13, %v7667_v57 }
 0x99f   : > { %v7730_v29 = vmul.f32 %v7722_v30, %v7666_v8 }
 0x9a1   : > { %10380 = vmatprep.mubr.f32.mxu1 %v7730_v29 }
 0x9a2   : > { %10381 = vmatmul.mubr.f32.gmra.mrb[166].mxu1 %v7731_v43 }
 0xa5f   : > { %v10373_v50 = vpop.f32.mrb[160].mxu1 }
 0xa60   : > { %v7827_v20 = vadd.f32 %v10373_v50, %v8403_v63  ;;  %v7821_v12 = vpop.f32.mrb[161].mxu1 }
 0xa61   : > { %v7822_v47 = vadd.f32 %v8403_v63, %v7821_v12 }
 0xa62   : > { %v7861_v22 = vadd.f32 %v7827_v20, %v13467_v14 }
 0xa63   : > { %v7860_v42 = vadd.f32 %v7822_v47, %v13470_v54 }
 0xa64   : > { %7869 = vst [vmem:[%s873_s1 + $0x8] sm:$0xff] %v7861_v22 }
 0xa65   : > { %7868 = vst [vmem:[%s873_s1] sm:$0xff] %v7860_v42 }
 0xa66   : > { %v10376_v35 = vpop.f32.mrb[162].mxu1 }
 0xa67   : > { %v7837_v59 = vadd.f32 %v10376_v35, %v8403_v63  ;;  %v7831_v18 = vpop.f32.mrb[163].mxu1 }
 0xa68   : > { %v7832_v26 = vadd.f32 %v8403_v63, %v7831_v18 }
 0xa69   : > { %v7863_v0 = vadd.f32 %v7837_v59, %v13485_v11 }
 0xa6a   : > { %v7862_v44 = vadd.f32 %v7832_v26, %v13475_v1 }
 0xa6b   : > { %7871 = vst [vmem:[%s873_s1 + $0x18] sm:$0xff] %v7863_v0 }
 0xa6c   : > { %7870 = vst [vmem:[%s873_s1 + $0x10] sm:$0xff] %v7862_v44 }
 0xa6d   : > { %v10379_v17 = vpop.f32.mrb[164].mxu1 }
 0xa6e   : > { %v7847_v33 = vadd.f32 %v10379_v17, %v8403_v63  ;;  %v7841_v14 = vpop.f32.mrb[165].mxu1 }
 0xa6f   : > { %v7842_v49 = vadd.f32 %v8403_v63, %v7841_v14 }
 0xa70   : > { %v7865_v54 = vadd.f32 %v7847_v33, %v13497_v37 }
 0xa71   : > { %v7864_v7 = vadd.f32 %v7842_v49, %v13488_v31 }
 0xa72   : > { %7873 = vst [vmem:[%s873_s1 + $0x28] sm:$0xff] %v7865_v54 }
 0xa73   : > { %7872 = vst [vmem:[%s873_s1 + $0x20] sm:$0xff] %v7864_v7 }
 0xa75   : > { %v10382_v58 = vpop.f32.mrb[166].mxu1 }
 0xa76   : > { %v7857_v11 = vadd.f32 %v10382_v58, %v8403_v63  ;;  %v7851_v36 = vpop.f32.mrb[167].mxu1 }
 0xa77   : > { %v7852_v1 = vadd.f32 %v8403_v63, %v7851_v36 }
 0xa78   : > { %v7867_v6 = vadd.f32 %v7857_v11, %v13509_v55 }
 0xa79   : > { %v7866_v31 = vadd.f32 %v7852_v1, %v13500_v15 }
 0xa7a   : > { %7875 = vst [vmem:[%s873_s1 + $0x38] sm:$0xff] %v7867_v6 }
 0xa7b   : > { %7874 = vst [vmem:[%s873_s1 + $0x30] sm:$0xff] %v7866_v31 }
 0xa7c   : > { %11740 = shalt.err (!%p11737_p3)
}
 0xa7d   : > { %s11741_s1 = scalar_lea.hbm %s13561_s14, 1024  ;;  %s11745_s10 = scalar_lea.hbm %s13699_s16, 2048 }
 0xa7e   : > { %p11742_p5 = scmp.ne.s32.totalorder %s13561_s14, %s11741_s1  ;;  %p11746_p9 = scmp.lt.u32.totalorder %s13561_s14, %s13699_s16 }
 0xa7f   : > { %p11747_p12 = scmp.lt.u32.totalorder %s11745_s10, %s11741_s1  ;;  %p11749_p13 = scmp.lt.u32.totalorder %s11741_s1, %s13561_s14 }
 0xa80   : > { %p11743_p7 = pnand %p11742_p5, %p13700_p0 }
 0xa81   : > { %p11748_p1 = por %p11747_p12, %p11746_p9 }
 0xa82   : > { %p11744_p6 = pneg %p11743_p7 }
 0xa83   : > { %p11750_p2 = por %p11749_p13, %p11748_p1 }
 0xa85   : > { %p11751_p8 = pnand %p11750_p2, %p11744_p6 }
 0xa87   : > { %11754 = shalt.err (!%p11751_p8)
}
 0xa88   : > { %s11832_s8 = smov 128   ;;  %s11833_s3 = smov 8  }
 0xa89   : > { %11193 = dma.vmem_to_hbm [thread:$0]  (%p13700_p0), %s13555_s0, 1024, %s13561_s14, %s7877_s26, %s11832_s8, %s11832_s8, %s11833_s3  }
 0xa8a PF: > { %s7905_s2 = sand.u32 1, %s11801_s4   ;;  %p13701_p4 = scmp.ne.s32.totalorder %s13671_s27, 0 }
 0xa8b   : > { %p13702_p10 = scmp.ge.s32.totalorder %s11813_s25, 2  ;;  %s7906_s1 = scalar_lea.sflag [#allocation4], %s7905_s2 }
 0xa8d   : > { %p11231_p11 = pnand %p13702_p10, %p13701_p4 }
 0xa8f   : > { %11796 = dma.done.wait (!%p11231_p11), %s7906_s1, 1024  }
 0xa90   : > { %11798 = vsyncadd (!%p11231_p11), %s7906_s1, 4294966272  ;;  %p41_p3 = scmp.ge.s32.totalorder %s12232_s6, 4   ;;  %s13703_s4 = smov %s11805_s30 }
 0xa91   : > { %s13704_s30 = smov %s11809_s24  ;;  %s13705_s24 = smov %s12243_s5 }
 0xa92   : > { %s13706_s25 = smov %s12232_s6  ;;  %43 = sbr.rel (!%p41_p3) target bundleno = 29 (0x1d), region = 229 }
 0xa99   :  { %7911 = vsyncpa [#allocation3], 1 }
 0xa9a   :  { %7913 = vsyncpa [#allocation3 + $0x1], 1 }
 0xa9b   :  { %7914 = vsyncpa [#allocation6], 1 }
 0xa9c   :  { %7915 = vsyncpa [#allocation9], 1 }
 0xa9d   :  { %7916 = vsyncpa [#allocation12], 1 }
 0xa9e   :  { %7917 = vsyncpa [#allocation15], 1 }
 0xa9f   :  { %7918 = vsyncpa [#allocation18], 1 }
 0xaa0   :  { %7919 = vsyncpa [#allocation4], 1 }
 0xaa1   :  { %7921 = vsyncpa [#allocation4 + $0x1], 1 }

</bundles_post_ra>
